<compile_context>
chip_gen: v5e
topology: v5e:2x2
jax: 0.10.0
libtpu: 0.0.40
codegen_flags: <defaults>
</compile_context>

<pallas_src>
import functools

import jax
import jax.numpy as jnp
from jax.experimental import pallas as pl
from jax.experimental.pallas import tpu as pltpu

EPS = 1e-4     # BatchNorm2d eps in the reference module
SLOPE = 0.01   # F.leaky_relu default negative_slope


# ----------------------------------------------------------------------------
# Pallas kernels (whole-array VMEM blocks, no grid -> single launch each)
# ----------------------------------------------------------------------------
def _conv_bn_leaky_kernel(w_ref, p_ref, o_ref, *, eps, slope):
    """Y = W @ P (channel-major, lane-dense) -> train-mode BatchNorm -> LeakyReLU."""
    y = jnp.dot(w_ref[...], p_ref[...], preferred_element_type=jnp.float32)  # (C, NHW)
    mean = jnp.mean(y, axis=1, keepdims=True)                       # per-channel stats
    var = jnp.mean((y - mean) * (y - mean), axis=1, keepdims=True)  # biased batch var
    yn = (y - mean) * jax.lax.rsqrt(var + eps)                      # rsqrt -> EUP
    o_ref[...] = jnp.where(yn >= 0.0, yn, slope * yn)


def _conv_sigmoid_kernel(w_ref, p_ref, o_ref):
    """Y = W @ P -> numerically stable sigmoid."""
    y = jnp.dot(w_ref[...], p_ref[...], preferred_element_type=jnp.float32)
    t = jnp.exp(-jnp.abs(y))                                        # exp -> EUP, t in (0,1]
    o_ref[...] = jnp.where(y >= 0.0, 1.0, t) / (1.0 + t)


def _latent_decode_kernel(x_ref, wfc_ref, kd_ref, o_ref, *, eps, slope, n_ch, blk):
    """fc1 -> LeakyReLU -> (2x upsample + ConvTranspose2d(2,4,7) folded into one dense
    matrix) -> per-channel train-mode BatchNorm -> LeakyReLU, in a single launch."""
    z = jnp.dot(x_ref[...], wfc_ref[...], preferred_element_type=jnp.float32)  # (N, 2)
    z = jnp.where(z >= 0.0, z, slope * z)
    d = jnp.dot(z, kd_ref[...], preferred_element_type=jnp.float32)            # (N, n_ch*blk)
    for c in range(n_ch):                                   # n_ch = 4, unrolled
        b = d[:, c * blk:(c + 1) * blk]                     # (N, 64) = one channel
        m = jnp.mean(jnp.mean(b, axis=1, keepdims=True), axis=0, keepdims=True)
        sq = (b - m) * (b - m)
        v = jnp.mean(jnp.mean(sq, axis=1, keepdims=True), axis=0, keepdims=True)
        bn = (b - m) * jax.lax.rsqrt(v + eps)
        o_ref[:, c * blk:(c + 1) * blk] = jnp.where(bn >= 0.0, bn, slope * bn)


def _vmem_call(kernel, out_shape, *inputs):
    return pl.pallas_call(
        kernel,
        out_shape=jax.ShapeDtypeStruct(out_shape, jnp.float32),
        in_specs=[pl.BlockSpec(memory_space=pltpu.MemorySpace.VMEM)] * len(inputs),
        out_specs=pl.BlockSpec(memory_space=pltpu.MemorySpace.VMEM),
    )(*inputs)


# ----------------------------------------------------------------------------
# Host-side layout glue (XLA): im2col / pool / upsample in channel-major (C,N,H,W)
# ----------------------------------------------------------------------------
def _im2col_T(x, k, pad):
    # x: (C, N, H, W) -> patches (C*k*k, N*Ho*Wo). Row order (c, ky, kx) matches
    # W.reshape(Cout, Cin*k*k); column order (n, ho, wo) -> lane-dense conv output.
    c, n, h, w = x.shape
    xp = jnp.pad(x, ((0, 0), (0, 0), (pad, pad), (pad, pad)))
    ho = h + 2 * pad - k + 1
    wo = w + 2 * pad - k + 1
    cols = [xp[:, :, i:i + ho, j:j + wo] for i in range(k) for j in range(k)]
    p = jnp.stack(cols, axis=1).reshape(c, k, k, n, ho, wo)
    return p.reshape(c * k * k, n * ho * wo), (n, ho, wo)


def _maxpool2x2(x):  # (C, N, H, W), non-overlapping 2x2
    return jnp.maximum(
        jnp.maximum(x[:, :, 0::2, 0::2], x[:, :, 0::2, 1::2]),
        jnp.maximum(x[:, :, 1::2, 0::2], x[:, :, 1::2, 1::2]))


def _upsample2x(x):  # nearest, (C, N, H, W)
    return jnp.repeat(jnp.repeat(x, 2, axis=2), 2, axis=3)


def _convT_as_conv_weight(w_t):
    # ConvTranspose2d(stride=1, pad=p) == Conv2d(flipped kernel, swapped channels,
    # pad=k-1-p). w_t: (Cin, Cout, k, k) -> (Cout, Cin*k*k).
    cout = w_t.shape[1]
    return jnp.flip(w_t, axis=(2, 3)).transpose(1, 0, 2, 3).reshape(cout, -1)


def _deconv1_dense_matrix(w_t):
    # deconv1 input is the latent replicated onto a 2x2 grid (1x1 -> 2x2 nearest
    # upsample), so ConvTranspose2d(2, 4, 7, padding=0) collapses to a dense map:
    #   out[n, co, y, x] = sum_ci z[n, ci] * K[ci, co, y, x],  y, x in [0, 8)
    # with K = sum over the 4 input taps of shifted deconv weights.
    p = lambda dy, dx: jnp.pad(w_t, ((0, 0), (0, 0), (dy, 1 - dy), (dx, 1 - dx)))
    k = p(0, 0) + p(0, 1) + p(1, 0) + p(1, 1)                # (2, 4, 8, 8)
    return k.reshape(2, 4 * 8 * 8)


def _conv_bn_leaky_stage(x_cnhw, wmat, k, pad):
    patches, (n, ho, wo) = _im2col_T(x_cnhw, k, pad)
    cout = wmat.shape[0]
    y = _vmem_call(functools.partial(_conv_bn_leaky_kernel, eps=EPS, slope=SLOPE),
                   (cout, n * ho * wo), wmat, patches)
    return y.reshape(cout, n, ho, wo)


# ----------------------------------------------------------------------------
# AE forward
# ----------------------------------------------------------------------------
def init_params(key):
    ks = jax.random.split(key, 6)
    scale = 0.1
    return {
        "conv1": scale * jax.random.normal(ks[0], (8, 1, 5, 5), jnp.float32),
        "conv2": scale * jax.random.normal(ks[1], (4, 8, 5, 5), jnp.float32),
        "fc1": scale * jax.random.normal(ks[2], (2, 4 * 7 * 7), jnp.float32),
        "deconv1": scale * jax.random.normal(ks[3], (2, 4, 7, 7), jnp.float32),
        "deconv2": scale * jax.random.normal(ks[4], (4, 8, 5, 5), jnp.float32),
        "deconv3": scale * jax.random.normal(ks[5], (8, 1, 5, 5), jnp.float32),
    }


def ae_forward(x, params):
    n = x.shape[0]
    x = x.transpose(1, 0, 2, 3)                                  # (1, N, 28, 28), CNHW

    # ---- Encoder: conv -> bn -> leaky fused, pool on host ----
    x = _conv_bn_leaky_stage(x, params["conv1"].reshape(8, -1), k=5, pad=2)  # (8,N,28,28)
    x = _maxpool2x2(x)                                           # (8, N, 14, 14)
    x = _conv_bn_leaky_stage(x, params["conv2"].reshape(4, -1), k=5, pad=2)  # (4,N,14,14)
    x = _maxpool2x2(x)                                           # (4, N, 7, 7)

    # ---- Bottleneck: fc1 + leaky + upsample + deconv1 + bn3 + leaky in one kernel ----
    flat = x.transpose(1, 0, 2, 3).reshape(n, -1)                # (N, 196), (c,h,w) order
    kd = _deconv1_dense_matrix(params["deconv1"])                # (2, 256)
    d = _vmem_call(
        functools.partial(_latent_decode_kernel, eps=EPS, slope=SLOPE, n_ch=4, blk=64),
        (n, 4 * 64), flat, params["fc1"].T, kd)                  # (N, 256) = (N, 4*8*8)
    x = d.reshape(n, 4, 8, 8).transpose(1, 0, 2, 3)              # (4, N, 8, 8)

    # ---- Decoder tail ----
    x = _upsample2x(x)                                           # (4, N, 16, 16)
    x = _conv_bn_leaky_stage(x, _convT_as_conv_weight(params["deconv2"]),
                             k=5, pad=5 - 1 - 3)                 # (8, N, 14, 14)
    x = _upsample2x(x)                                           # (8, N, 28, 28)
    patches, (n2, ho, wo) = _im2col_T(x, 5, 5 - 1 - 2)           # deconv3 as conv, pad 2
    y = _vmem_call(_conv_sigmoid_kernel, (1, n2 * ho * wo),
                   _convT_as_conv_weight(params["deconv3"]), patches)  # (1, N*784)
    return y.reshape(1, n, 28, 28).transpose(1, 0, 2, 3)         # (N, 1, 28, 28)


if __name__ == "__main__":
    # Input size is dictated by fc1 = Linear(4*7*7, 2): 28x28 single-channel images.
    key = jax.random.PRNGKey(0)
    x = jax.random.uniform(key, (2, 1, 28, 28), dtype=jnp.float32)
    params = init_params(jax.random.PRNGKey(42))

    y = jax.jit(ae_forward)(x, params)
    y = jax.block_until_ready(y)

    assert y.shape == (2, 1, 28, 28), y.shape
    assert bool(jnp.all(jnp.isfinite(y)))
    assert bool(jnp.all((y >= 0.0) & (y <= 1.0)))  # sigmoid range
    print("KERNEL_OK")
</pallas_src>

<mosaic_0001>
module attributes {stable_mosaic.version = 11 : i64} {
  func.func @_conv_bn_leaky_kernel(%arg0: memref<8x25xf32, #tpu.memory_space<vmem>>, %arg1: memref<25x1568xf32, #tpu.memory_space<vmem>>, %arg2: memref<8x1568xf32, #tpu.memory_space<vmem>>) attributes {dimension_semantics = [], scalar_prefetch = 0 : i64, scratch_operands = 0 : i64, tpu.core_type = #tpu.core_type<tc>} {
    %c0 = arith.constant 0 : index
    %c0_0 = arith.constant 0 : index
    %0 = vector.load %arg0[%c0, %c0_0] : memref<8x25xf32, #tpu.memory_space<vmem>>, vector<8x25xf32>
    %c0_1 = arith.constant 0 : index
    %c0_2 = arith.constant 0 : index
    %1 = vector.load %arg1[%c0_1, %c0_2] : memref<25x1568xf32, #tpu.memory_space<vmem>>, vector<25x1568xf32>
    %cst = arith.constant dense<0.000000e+00> : vector<8x1568xf32>
    %2 = tpu.matmul %0, %1, %cst {dimension_numbers = #tpu.dot_dimension_numbers<[1], [0], [0], [1], [0, 0, 1, 1], [], []>} : vector<8x25xf32>, vector<25x1568xf32>, vector<8x1568xf32> -> vector<8x1568xf32>
    %cst_3 = arith.constant dense<0.000000e+00> : vector<8xf32>
    %3 = vector.multi_reduction <add>, %2, %cst_3 [1] : vector<8x1568xf32> to vector<8xf32>
    %4 = vector.shape_cast %3 : vector<8xf32> to vector<8x1xf32>
    %cst_4 = arith.constant 1.568000e+03 : f32
    %5 = vector.broadcast %cst_4 : f32 to vector<8x1xf32>
    %6 = arith.divf %4, %5 : vector<8x1xf32>
    %7 = vector.broadcast %6 : vector<8x1xf32> to vector<8x1568xf32>
    %8 = arith.subf %2, %7 : vector<8x1568xf32>
    %9 = vector.broadcast %6 : vector<8x1xf32> to vector<8x1568xf32>
    %10 = arith.subf %2, %9 : vector<8x1568xf32>
    %11 = arith.mulf %8, %10 : vector<8x1568xf32>
    %cst_5 = arith.constant dense<0.000000e+00> : vector<8xf32>
    %12 = vector.multi_reduction <add>, %11, %cst_5 [1] : vector<8x1568xf32> to vector<8xf32>
    %13 = vector.shape_cast %12 : vector<8xf32> to vector<8x1xf32>
    %cst_6 = arith.constant 1.568000e+03 : f32
    %14 = vector.broadcast %cst_6 : f32 to vector<8x1xf32>
    %15 = arith.divf %13, %14 : vector<8x1xf32>
    %16 = vector.broadcast %6 : vector<8x1xf32> to vector<8x1568xf32>
    %17 = arith.subf %2, %16 : vector<8x1568xf32>
    %cst_7 = arith.constant 9.99999974E-5 : f32
    %18 = vector.broadcast %cst_7 : f32 to vector<8x1xf32>
    %19 = arith.addf %15, %18 : vector<8x1xf32>
    %20 = math.rsqrt %19 : vector<8x1xf32>
    %21 = vector.broadcast %20 : vector<8x1xf32> to vector<8x1568xf32>
    %22 = arith.mulf %17, %21 : vector<8x1568xf32>
    %cst_8 = arith.constant 0.000000e+00 : f32
    %23 = vector.broadcast %cst_8 : f32 to vector<8x1568xf32>
    %24 = arith.cmpf oge, %22, %23 : vector<8x1568xf32>
    %cst_9 = arith.constant 0.00999999977 : f32
    %25 = vector.broadcast %cst_9 : f32 to vector<8x1568xf32>
    %26 = arith.mulf %25, %22 : vector<8x1568xf32>
    %27 = arith.select %24, %22, %26 : vector<8x1568xi1>, vector<8x1568xf32>
    %c0_10 = arith.constant 0 : index
    %c0_11 = arith.constant 0 : index
    %28 = vector.load %arg2[%c0_10, %c0_11] : memref<8x1568xf32, #tpu.memory_space<vmem>>, vector<8x1568xf32>
    tpu.vector_store %arg2[%c0_10, %c0_11], %27 {strides = array<i32>} : memref<8x1568xf32, #tpu.memory_space<vmem>>, vector<8x1568xf32>,
    return
  }
}

module attributes {stable_mosaic.version = 11 : i64} {
  func.func @_conv_bn_leaky_kernel(%arg0: memref<4x200xf32, #tpu.memory_space<vmem>>, %arg1: memref<200x392xf32, #tpu.memory_space<vmem>>, %arg2: memref<4x392xf32, #tpu.memory_space<vmem>>) attributes {dimension_semantics = [], scalar_prefetch = 0 : i64, scratch_operands = 0 : i64, tpu.core_type = #tpu.core_type<tc>} {
    %c0 = arith.constant 0 : index
    %c0_0 = arith.constant 0 : index
    %0 = vector.load %arg0[%c0, %c0_0] : memref<4x200xf32, #tpu.memory_space<vmem>>, vector<4x200xf32>
    %c0_1 = arith.constant 0 : index
    %c0_2 = arith.constant 0 : index
    %1 = vector.load %arg1[%c0_1, %c0_2] : memref<200x392xf32, #tpu.memory_space<vmem>>, vector<200x392xf32>
    %cst = arith.constant dense<0.000000e+00> : vector<4x392xf32>
    %2 = tpu.matmul %0, %1, %cst {dimension_numbers = #tpu.dot_dimension_numbers<[1], [0], [0], [1], [0, 0, 1, 1], [], []>} : vector<4x200xf32>, vector<200x392xf32>, vector<4x392xf32> -> vector<4x392xf32>
    %cst_3 = arith.constant dense<0.000000e+00> : vector<4xf32>
    %3 = vector.multi_reduction <add>, %2, %cst_3 [1] : vector<4x392xf32> to vector<4xf32>
    %4 = vector.shape_cast %3 : vector<4xf32> to vector<4x1xf32>
    %cst_4 = arith.constant 3.920000e+02 : f32
    %5 = vector.broadcast %cst_4 : f32 to vector<4x1xf32>
    %6 = arith.divf %4, %5 : vector<4x1xf32>
    %7 = vector.broadcast %6 : vector<4x1xf32> to vector<4x392xf32>
    %8 = arith.subf %2, %7 : vector<4x392xf32>
    %9 = vector.broadcast %6 : vector<4x1xf32> to vector<4x392xf32>
    %10 = arith.subf %2, %9 : vector<4x392xf32>
    %11 = arith.mulf %8, %10 : vector<4x392xf32>
    %cst_5 = arith.constant dense<0.000000e+00> : vector<4xf32>
    %12 = vector.multi_reduction <add>, %11, %cst_5 [1] : vector<4x392xf32> to vector<4xf32>
    %13 = vector.shape_cast %12 : vector<4xf32> to vector<4x1xf32>
    %cst_6 = arith.constant 3.920000e+02 : f32
    %14 = vector.broadcast %cst_6 : f32 to vector<4x1xf32>
    %15 = arith.divf %13, %14 : vector<4x1xf32>
    %16 = vector.broadcast %6 : vector<4x1xf32> to vector<4x392xf32>
    %17 = arith.subf %2, %16 : vector<4x392xf32>
    %cst_7 = arith.constant 9.99999974E-5 : f32
    %18 = vector.broadcast %cst_7 : f32 to vector<4x1xf32>
    %19 = arith.addf %15, %18 : vector<4x1xf32>
    %20 = math.rsqrt %19 : vector<4x1xf32>
    %21 = vector.broadcast %20 : vector<4x1xf32> to vector<4x392xf32>
    %22 = arith.mulf %17, %21 : vector<4x392xf32>
    %cst_8 = arith.constant 0.000000e+00 : f32
    %23 = vector.broadcast %cst_8 : f32 to vector<4x392xf32>
    %24 = arith.cmpf oge, %22, %23 : vector<4x392xf32>
    %cst_9 = arith.constant 0.00999999977 : f32
    %25 = vector.broadcast %cst_9 : f32 to vector<4x392xf32>
    %26 = arith.mulf %25, %22 : vector<4x392xf32>
    %27 = arith.select %24, %22, %26 : vector<4x392xi1>, vector<4x392xf32>
    %c0_10 = arith.constant 0 : index
    %c0_11 = arith.constant 0 : index
    %28 = vector.load %arg2[%c0_10, %c0_11] : memref<4x392xf32, #tpu.memory_space<vmem>>, vector<4x392xf32>
    tpu.vector_store %arg2[%c0_10, %c0_11], %27 {strides = array<i32>} : memref<4x392xf32, #tpu.memory_space<vmem>>, vector<4x392xf32>,
    return
  }
}

module attributes {stable_mosaic.version = 11 : i64} {
  func.func @_latent_decode_kernel(%arg0: memref<2x196xf32, #tpu.memory_space<vmem>>, %arg1: memref<196x2xf32, #tpu.memory_space<vmem>>, %arg2: memref<2x256xf32, #tpu.memory_space<vmem>>, %arg3: memref<2x256xf32, #tpu.memory_space<vmem>>) attributes {dimension_semantics = [], scalar_prefetch = 0 : i64, scratch_operands = 0 : i64, tpu.core_type = #tpu.core_type<tc>} {
    %c0 = arith.constant 0 : index
    %c0_0 = arith.constant 0 : index
    %0 = vector.load %arg0[%c0, %c0_0] : memref<2x196xf32, #tpu.memory_space<vmem>>, vector<2x196xf32>
    %c0_1 = arith.constant 0 : index
    %c0_2 = arith.constant 0 : index
    %1 = vector.load %arg1[%c0_1, %c0_2] : memref<196x2xf32, #tpu.memory_space<vmem>>, vector<196x2xf32>
    %cst = arith.constant dense<0.000000e+00> : vector<2x2xf32>
    %2 = tpu.matmul %0, %1, %cst {dimension_numbers = #tpu.dot_dimension_numbers<[1], [0], [0], [1], [0, 0, 1, 1], [], []>} : vector<2x196xf32>, vector<196x2xf32>, vector<2x2xf32> -> vector<2x2xf32>
    %cst_3 = arith.constant 0.000000e+00 : f32
    %3 = vector.broadcast %cst_3 : f32 to vector<2x2xf32>
    %4 = arith.cmpf oge, %2, %3 : vector<2x2xf32>
    %cst_4 = arith.constant 0.00999999977 : f32
    %5 = vector.broadcast %cst_4 : f32 to vector<2x2xf32>
    %6 = arith.mulf %5, %2 : vector<2x2xf32>
    %7 = arith.select %4, %2, %6 : vector<2x2xi1>, vector<2x2xf32>
    %c0_5 = arith.constant 0 : index
    %c0_6 = arith.constant 0 : index
    %8 = vector.load %arg2[%c0_5, %c0_6] : memref<2x256xf32, #tpu.memory_space<vmem>>, vector<2x256xf32>
    %cst_7 = arith.constant dense<0.000000e+00> : vector<2x256xf32>
    %9 = tpu.matmul %7, %8, %cst_7 {dimension_numbers = #tpu.dot_dimension_numbers<[1], [0], [0], [1], [0, 0, 1, 1], [], []>} : vector<2x2xf32>, vector<2x256xf32>, vector<2x256xf32> -> vector<2x256xf32>
    %10 = vector.extract_strided_slice %9 {offsets = [0, 0], sizes = [2, 64], strides = [1, 1]} : vector<2x256xf32> to vector<2x64xf32>
    %cst_8 = arith.constant dense<0.000000e+00> : vector<2xf32>
    %11 = vector.multi_reduction <add>, %10, %cst_8 [1] : vector<2x64xf32> to vector<2xf32>
    %12 = vector.shape_cast %11 : vector<2xf32> to vector<2x1xf32>
    %cst_9 = arith.constant 6.400000e+01 : f32
    %13 = vector.broadcast %cst_9 : f32 to vector<2x1xf32>
    %14 = arith.divf %12, %13 : vector<2x1xf32>
    %cst_10 = arith.constant dense<0.000000e+00> : vector<1xf32>
    %15 = vector.multi_reduction <add>, %14, %cst_10 [0] : vector<2x1xf32> to vector<1xf32>
    %16 = vector.shape_cast %15 : vector<1xf32> to vector<1x1xf32>
    %cst_11 = arith.constant 2.000000e+00 : f32
    %17 = vector.broadcast %cst_11 : f32 to vector<1x1xf32>
    %18 = arith.divf %16, %17 : vector<1x1xf32>
    %19 = vector.broadcast %18 : vector<1x1xf32> to vector<2x64xf32>
    %20 = arith.subf %10, %19 : vector<2x64xf32>
    %21 = vector.broadcast %18 : vector<1x1xf32> to vector<2x64xf32>
    %22 = arith.subf %10, %21 : vector<2x64xf32>
    %23 = arith.mulf %20, %22 : vector<2x64xf32>
    %cst_12 = arith.constant dense<0.000000e+00> : vector<2xf32>
    %24 = vector.multi_reduction <add>, %23, %cst_12 [1] : vector<2x64xf32> to vector<2xf32>
    %25 = vector.shape_cast %24 : vector<2xf32> to vector<2x1xf32>
    %cst_13 = arith.constant 6.400000e+01 : f32
    %26 = vector.broadcast %cst_13 : f32 to vector<2x1xf32>
    %27 = arith.divf %25, %26 : vector<2x1xf32>
    %cst_14 = arith.constant dense<0.000000e+00> : vector<1xf32>
    %28 = vector.multi_reduction <add>, %27, %cst_14 [0] : vector<2x1xf32> to vector<1xf32>
    %29 = vector.shape_cast %28 : vector<1xf32> to vector<1x1xf32>
    %cst_15 = arith.constant 2.000000e+00 : f32
    %30 = vector.broadcast %cst_15 : f32 to vector<1x1xf32>
    %31 = arith.divf %29, %30 : vector<1x1xf32>
    %32 = vector.broadcast %18 : vector<1x1xf32> to vector<2x64xf32>
    %33 = arith.subf %10, %32 : vector<2x64xf32>
    %cst_16 = arith.constant 9.99999974E-5 : f32
    %34 = vector.broadcast %cst_16 : f32 to vector<1x1xf32>
    %35 = arith.addf %31, %34 : vector<1x1xf32>
    %36 = math.rsqrt %35 : vector<1x1xf32>
    %37 = vector.broadcast %36 : vector<1x1xf32> to vector<2x64xf32>
    %38 = arith.mulf %33, %37 : vector<2x64xf32>
    %cst_17 = arith.constant 0.000000e+00 : f32
    %39 = vector.broadcast %cst_17 : f32 to vector<2x64xf32>
    %40 = arith.cmpf oge, %38, %39 : vector<2x64xf32>
    %cst_18 = arith.constant 0.00999999977 : f32
    %41 = vector.broadcast %cst_18 : f32 to vector<2x64xf32>
    %42 = arith.mulf %41, %38 : vector<2x64xf32>
    %43 = arith.select %40, %38, %42 : vector<2x64xi1>, vector<2x64xf32>
    %c0_19 = arith.constant 0 : index
    %c0_20 = arith.constant 0 : index
    %44 = vector.load %arg3[%c0_19, %c0_20] : memref<2x256xf32, #tpu.memory_space<vmem>>, vector<2x64xf32>
    tpu.vector_store %arg3[%c0_19, %c0_20], %43 {strides = array<i32>} : memref<2x256xf32, #tpu.memory_space<vmem>>, vector<2x64xf32>,
    %45 = vector.extract_strided_slice %9 {offsets = [0, 64], sizes = [2, 64], strides = [1, 1]} : vector<2x256xf32> to vector<2x64xf32>
    %cst_21 = arith.constant dense<0.000000e+00> : vector<2xf32>
    %46 = vector.multi_reduction <add>, %45, %cst_21 [1] : vector<2x64xf32> to vector<2xf32>
    %47 = vector.shape_cast %46 : vector<2xf32> to vector<2x1xf32>
    %cst_22 = arith.constant 6.400000e+01 : f32
    %48 = vector.broadcast %cst_22 : f32 to vector<2x1xf32>
    %49 = arith.divf %47, %48 : vector<2x1xf32>
    %cst_23 = arith.constant dense<0.000000e+00> : vector<1xf32>
    %50 = vector.multi_reduction <add>, %49, %cst_23 [0] : vector<2x1xf32> to vector<1xf32>
    %51 = vector.shape_cast %50 : vector<1xf32> to vector<1x1xf32>
    %cst_24 = arith.constant 2.000000e+00 : f32
    %52 = vector.broadcast %cst_24 : f32 to vector<1x1xf32>
    %53 = arith.divf %51, %52 : vector<1x1xf32>
    %54 = vector.broadcast %53 : vector<1x1xf32> to vector<2x64xf32>
    %55 = arith.subf %45, %54 : vector<2x64xf32>
    %56 = vector.broadcast %53 : vector<1x1xf32> to vector<2x64xf32>
    %57 = arith.subf %45, %56 : vector<2x64xf32>
    %58 = arith.mulf %55, %57 : vector<2x64xf32>
    %cst_25 = arith.constant dense<0.000000e+00> : vector<2xf32>
    %59 = vector.multi_reduction <add>, %58, %cst_25 [1] : vector<2x64xf32> to vector<2xf32>
    %60 = vector.shape_cast %59 : vector<2xf32> to vector<2x1xf32>
    %cst_26 = arith.constant 6.400000e+01 : f32
    %61 = vector.broadcast %cst_26 : f32 to vector<2x1xf32>
    %62 = arith.divf %60, %61 : vector<2x1xf32>
    %cst_27 = arith.constant dense<0.000000e+00> : vector<1xf32>
    %63 = vector.multi_reduction <add>, %62, %cst_27 [0] : vector<2x1xf32> to vector<1xf32>
    %64 = vector.shape_cast %63 : vector<1xf32> to vector<1x1xf32>
    %cst_28 = arith.constant 2.000000e+00 : f32
    %65 = vector.broadcast %cst_28 : f32 to vector<1x1xf32>
    %66 = arith.divf %64, %65 : vector<1x1xf32>
    %67 = vector.broadcast %53 : vector<1x1xf32> to vector<2x64xf32>
    %68 = arith.subf %45, %67 : vector<2x64xf32>
    %cst_29 = arith.constant 9.99999974E-5 : f32
    %69 = vector.broadcast %cst_29 : f32 to vector<1x1xf32>
    %70 = arith.addf %66, %69 : vector<1x1xf32>
    %71 = math.rsqrt %70 : vector<1x1xf32>
    %72 = vector.broadcast %71 : vector<1x1xf32> to vector<2x64xf32>
    %73 = arith.mulf %68, %72 : vector<2x64xf32>
    %cst_30 = arith.constant 0.000000e+00 : f32
    %74 = vector.broadcast %cst_30 : f32 to vector<2x64xf32>
    %75 = arith.cmpf oge, %73, %74 : vector<2x64xf32>
    %cst_31 = arith.constant 0.00999999977 : f32
    %76 = vector.broadcast %cst_31 : f32 to vector<2x64xf32>
    %77 = arith.mulf %76, %73 : vector<2x64xf32>
    %78 = arith.select %75, %73, %77 : vector<2x64xi1>, vector<2x64xf32>
    %c0_32 = arith.constant 0 : index
    %c64 = arith.constant 64 : index
    %79 = vector.load %arg3[%c0_32, %c64] : memref<2x256xf32, #tpu.memory_space<vmem>>, vector<2x64xf32>
    tpu.vector_store %arg3[%c0_32, %c64], %78 {strides = array<i32>} : memref<2x256xf32, #tpu.memory_space<vmem>>, vector<2x64xf32>,
    %80 = vector.extract_strided_slice %9 {offsets = [0, 128], sizes = [2, 64], strides = [1, 1]} : vector<2x256xf32> to vector<2x64xf32>
    %cst_33 = arith.constant dense<0.000000e+00> : vector<2xf32>
    %81 = vector.multi_reduction <add>, %80, %cst_33 [1] : vector<2x64xf32> to vector<2xf32>
    %82 = vector.shape_cast %81 : vector<2xf32> to vector<2x1xf32>
    %cst_34 = arith.constant 6.400000e+01 : f32
    %83 = vector.broadcast %cst_34 : f32 to vector<2x1xf32>
    %84 = arith.divf %82, %83 : vector<2x1xf32>
    %cst_35 = arith.constant dense<0.000000e+00> : vector<1xf32>
    %85 = vector.multi_reduction <add>, %84, %cst_35 [0] : vector<2x1xf32> to vector<1xf32>
    %86 = vector.shape_cast %85 : vector<1xf32> to vector<1x1xf32>
    %cst_36 = arith.constant 2.000000e+00 : f32
    %87 = vector.broadcast %cst_36 : f32 to vector<1x1xf32>
    %88 = arith.divf %86, %87 : vector<1x1xf32>
    %89 = vector.broadcast %88 : vector<1x1xf32> to vector<2x64xf32>
    %90 = arith.subf %80, %89 : vector<2x64xf32>
    %91 = vector.broadcast %88 : vector<1x1xf32> to vector<2x64xf32>
    %92 = arith.subf %80, %91 : vector<2x64xf32>
    %93 = arith.mulf %90, %92 : vector<2x64xf32>
    %cst_37 = arith.constant dense<0.000000e+00> : vector<2xf32>
    %94 = vector.multi_reduction <add>, %93, %cst_37 [1] : vector<2x64xf32> to vector<2xf32>
    %95 = vector.shape_cast %94 : vector<2xf32> to vector<2x1xf32>
    %cst_38 = arith.constant 6.400000e+01 : f32
    %96 = vector.broadcast %cst_38 : f32 to vector<2x1xf32>
    %97 = arith.divf %95, %96 : vector<2x1xf32>
    %cst_39 = arith.constant dense<0.000000e+00> : vector<1xf32>
    %98 = vector.multi_reduction <add>, %97, %cst_39 [0] : vector<2x1xf32> to vector<1xf32>
    %99 = vector.shape_cast %98 : vector<1xf32> to vector<1x1xf32>
    %cst_40 = arith.constant 2.000000e+00 : f32
    %100 = vector.broadcast %cst_40 : f32 to vector<1x1xf32>
    %101 = arith.divf %99, %100 : vector<1x1xf32>
    %102 = vector.broadcast %88 : vector<1x1xf32> to vector<2x64xf32>
    %103 = arith.subf %80, %102 : vector<2x64xf32>
    %cst_41 = arith.constant 9.99999974E-5 : f32
    %104 = vector.broadcast %cst_41 : f32 to vector<1x1xf32>
    %105 = arith.addf %101, %104 : vector<1x1xf32>
    %106 = math.rsqrt %105 : vector<1x1xf32>
    %107 = vector.broadcast %106 : vector<1x1xf32> to vector<2x64xf32>
    %108 = arith.mulf %103, %107 : vector<2x64xf32>
    %cst_42 = arith.constant 0.000000e+00 : f32
    %109 = vector.broadcast %cst_42 : f32 to vector<2x64xf32>
    %110 = arith.cmpf oge, %108, %109 : vector<2x64xf32>
    %cst_43 = arith.constant 0.00999999977 : f32
    %111 = vector.broadcast %cst_43 : f32 to vector<2x64xf32>
    %112 = arith.mulf %111, %108 : vector<2x64xf32>
    %113 = arith.select %110, %108, %112 : vector<2x64xi1>, vector<2x64xf32>
    %c0_44 = arith.constant 0 : index
    %c128 = arith.constant 128 : index
    %114 = vector.load %arg3[%c0_44, %c128] : memref<2x256xf32, #tpu.memory_space<vmem>>, vector<2x64xf32>
    tpu.vector_store %arg3[%c0_44, %c128], %113 {strides = array<i32>} : memref<2x256xf32, #tpu.memory_space<vmem>>, vector<2x64xf32>,
    %115 = vector.extract_strided_slice %9 {offsets = [0, 192], sizes = [2, 64], strides = [1, 1]} : vector<2x256xf32> to vector<2x64xf32>
    %cst_45 = arith.constant dense<0.000000e+00> : vector<2xf32>
    %116 = vector.multi_reduction <add>, %115, %cst_45 [1] : vector<2x64xf32> to vector<2xf32>
    %117 = vector.shape_cast %116 : vector<2xf32> to vector<2x1xf32>
    %cst_46 = arith.constant 6.400000e+01 : f32
    %118 = vector.broadcast %cst_46 : f32 to vector<2x1xf32>
    %119 = arith.divf %117, %118 : vector<2x1xf32>
    %cst_47 = arith.constant dense<0.000000e+00> : vector<1xf32>
    %120 = vector.multi_reduction <add>, %119, %cst_47 [0] : vector<2x1xf32> to vector<1xf32>
    %121 = vector.shape_cast %120 : vector<1xf32> to vector<1x1xf32>
    %cst_48 = arith.constant 2.000000e+00 : f32
    %122 = vector.broadcast %cst_48 : f32 to vector<1x1xf32>
    %123 = arith.divf %121, %122 : vector<1x1xf32>
    %124 = vector.broadcast %123 : vector<1x1xf32> to vector<2x64xf32>
    %125 = arith.subf %115, %124 : vector<2x64xf32>
    %126 = vector.broadcast %123 : vector<1x1xf32> to vector<2x64xf32>
    %127 = arith.subf %115, %126 : vector<2x64xf32>
    %128 = arith.mulf %125, %127 : vector<2x64xf32>
    %cst_49 = arith.constant dense<0.000000e+00> : vector<2xf32>
    %129 = vector.multi_reduction <add>, %128, %cst_49 [1] : vector<2x64xf32> to vector<2xf32>
    %130 = vector.shape_cast %129 : vector<2xf32> to vector<2x1xf32>
    %cst_50 = arith.constant 6.400000e+01 : f32
    %131 = vector.broadcast %cst_50 : f32 to vector<2x1xf32>
    %132 = arith.divf %130, %131 : vector<2x1xf32>
    %cst_51 = arith.constant dense<0.000000e+00> : vector<1xf32>
    %133 = vector.multi_reduction <add>, %132, %cst_51 [0] : vector<2x1xf32> to vector<1xf32>
    %134 = vector.shape_cast %133 : vector<1xf32> to vector<1x1xf32>
    %cst_52 = arith.constant 2.000000e+00 : f32
    %135 = vector.broadcast %cst_52 : f32 to vector<1x1xf32>
    %136 = arith.divf %134, %135 : vector<1x1xf32>
    %137 = vector.broadcast %123 : vector<1x1xf32> to vector<2x64xf32>
    %138 = arith.subf %115, %137 : vector<2x64xf32>
    %cst_53 = arith.constant 9.99999974E-5 : f32
    %139 = vector.broadcast %cst_53 : f32 to vector<1x1xf32>
    %140 = arith.addf %136, %139 : vector<1x1xf32>
    %141 = math.rsqrt %140 : vector<1x1xf32>
    %142 = vector.broadcast %141 : vector<1x1xf32> to vector<2x64xf32>
    %143 = arith.mulf %138, %142 : vector<2x64xf32>
    %cst_54 = arith.constant 0.000000e+00 : f32
    %144 = vector.broadcast %cst_54 : f32 to vector<2x64xf32>
    %145 = arith.cmpf oge, %143, %144 : vector<2x64xf32>
    %cst_55 = arith.constant 0.00999999977 : f32
    %146 = vector.broadcast %cst_55 : f32 to vector<2x64xf32>
    %147 = arith.mulf %146, %143 : vector<2x64xf32>
    %148 = arith.select %145, %143, %147 : vector<2x64xi1>, vector<2x64xf32>
    %c0_56 = arith.constant 0 : index
    %c192 = arith.constant 192 : index
    %149 = vector.load %arg3[%c0_56, %c192] : memref<2x256xf32, #tpu.memory_space<vmem>>, vector<2x64xf32>
    tpu.vector_store %arg3[%c0_56, %c192], %148 {strides = array<i32>} : memref<2x256xf32, #tpu.memory_space<vmem>>, vector<2x64xf32>,
    return
  }
}

module attributes {stable_mosaic.version = 11 : i64} {
  func.func @_conv_bn_leaky_kernel(%arg0: memref<8x100xf32, #tpu.memory_space<vmem>>, %arg1: memref<100x392xf32, #tpu.memory_space<vmem>>, %arg2: memref<8x392xf32, #tpu.memory_space<vmem>>) attributes {dimension_semantics = [], scalar_prefetch = 0 : i64, scratch_operands = 0 : i64, tpu.core_type = #tpu.core_type<tc>} {
    %c0 = arith.constant 0 : index
    %c0_0 = arith.constant 0 : index
    %0 = vector.load %arg0[%c0, %c0_0] : memref<8x100xf32, #tpu.memory_space<vmem>>, vector<8x100xf32>
    %c0_1 = arith.constant 0 : index
    %c0_2 = arith.constant 0 : index
    %1 = vector.load %arg1[%c0_1, %c0_2] : memref<100x392xf32, #tpu.memory_space<vmem>>, vector<100x392xf32>
    %cst = arith.constant dense<0.000000e+00> : vector<8x392xf32>
    %2 = tpu.matmul %0, %1, %cst {dimension_numbers = #tpu.dot_dimension_numbers<[1], [0], [0], [1], [0, 0, 1, 1], [], []>} : vector<8x100xf32>, vector<100x392xf32>, vector<8x392xf32> -> vector<8x392xf32>
    %cst_3 = arith.constant dense<0.000000e+00> : vector<8xf32>
    %3 = vector.multi_reduction <add>, %2, %cst_3 [1] : vector<8x392xf32> to vector<8xf32>
    %4 = vector.shape_cast %3 : vector<8xf32> to vector<8x1xf32>
    %cst_4 = arith.constant 3.920000e+02 : f32
    %5 = vector.broadcast %cst_4 : f32 to vector<8x1xf32>
    %6 = arith.divf %4, %5 : vector<8x1xf32>
    %7 = vector.broadcast %6 : vector<8x1xf32> to vector<8x392xf32>
    %8 = arith.subf %2, %7 : vector<8x392xf32>
    %9 = vector.broadcast %6 : vector<8x1xf32> to vector<8x392xf32>
    %10 = arith.subf %2, %9 : vector<8x392xf32>
    %11 = arith.mulf %8, %10 : vector<8x392xf32>
    %cst_5 = arith.constant dense<0.000000e+00> : vector<8xf32>
    %12 = vector.multi_reduction <add>, %11, %cst_5 [1] : vector<8x392xf32> to vector<8xf32>
    %13 = vector.shape_cast %12 : vector<8xf32> to vector<8x1xf32>
    %cst_6 = arith.constant 3.920000e+02 : f32
    %14 = vector.broadcast %cst_6 : f32 to vector<8x1xf32>
    %15 = arith.divf %13, %14 : vector<8x1xf32>
    %16 = vector.broadcast %6 : vector<8x1xf32> to vector<8x392xf32>
    %17 = arith.subf %2, %16 : vector<8x392xf32>
    %cst_7 = arith.constant 9.99999974E-5 : f32
    %18 = vector.broadcast %cst_7 : f32 to vector<8x1xf32>
    %19 = arith.addf %15, %18 : vector<8x1xf32>
    %20 = math.rsqrt %19 : vector<8x1xf32>
    %21 = vector.broadcast %20 : vector<8x1xf32> to vector<8x392xf32>
    %22 = arith.mulf %17, %21 : vector<8x392xf32>
    %cst_8 = arith.constant 0.000000e+00 : f32
    %23 = vector.broadcast %cst_8 : f32 to vector<8x392xf32>
    %24 = arith.cmpf oge, %22, %23 : vector<8x392xf32>
    %cst_9 = arith.constant 0.00999999977 : f32
    %25 = vector.broadcast %cst_9 : f32 to vector<8x392xf32>
    %26 = arith.mulf %25, %22 : vector<8x392xf32>
    %27 = arith.select %24, %22, %26 : vector<8x392xi1>, vector<8x392xf32>
    %c0_10 = arith.constant 0 : index
    %c0_11 = arith.constant 0 : index
    %28 = vector.load %arg2[%c0_10, %c0_11] : memref<8x392xf32, #tpu.memory_space<vmem>>, vector<8x392xf32>
    tpu.vector_store %arg2[%c0_10, %c0_11], %27 {strides = array<i32>} : memref<8x392xf32, #tpu.memory_space<vmem>>, vector<8x392xf32>,
    return
  }
}

module attributes {stable_mosaic.version = 11 : i64} {
  func.func @_conv_sigmoid_kernel(%arg0: memref<1x200xf32, #tpu.memory_space<vmem>>, %arg1: memref<200x1568xf32, #tpu.memory_space<vmem>>, %arg2: memref<1x1568xf32, #tpu.memory_space<vmem>>) attributes {dimension_semantics = [], scalar_prefetch = 0 : i64, scratch_operands = 0 : i64, tpu.core_type = #tpu.core_type<tc>} {
    %c0 = arith.constant 0 : index
    %c0_0 = arith.constant 0 : index
    %0 = vector.load %arg0[%c0, %c0_0] : memref<1x200xf32, #tpu.memory_space<vmem>>, vector<1x200xf32>
    %c0_1 = arith.constant 0 : index
    %c0_2 = arith.constant 0 : index
    %1 = vector.load %arg1[%c0_1, %c0_2] : memref<200x1568xf32, #tpu.memory_space<vmem>>, vector<200x1568xf32>
    %cst = arith.constant dense<0.000000e+00> : vector<1x1568xf32>
    %2 = tpu.matmul %0, %1, %cst {dimension_numbers = #tpu.dot_dimension_numbers<[1], [0], [0], [1], [0, 0, 1, 1], [], []>} : vector<1x200xf32>, vector<200x1568xf32>, vector<1x1568xf32> -> vector<1x1568xf32>
    %3 = math.absf %2 : vector<1x1568xf32>
    %cst_3 = arith.constant 0.000000e+00 : f32
    %4 = vector.broadcast %cst_3 : f32 to vector<1x1568xf32>
    %5 = arith.subf %4, %3 : vector<1x1568xf32>
    %6 = math.exp %5 : vector<1x1568xf32>
    %cst_4 = arith.constant 0.000000e+00 : f32
    %7 = vector.broadcast %cst_4 : f32 to vector<1x1568xf32>
    %8 = arith.cmpf oge, %2, %7 : vector<1x1568xf32>
    %cst_5 = arith.constant 1.000000e+00 : f32
    %9 = vector.broadcast %cst_5 : f32 to vector<1x1568xf32>
    %10 = arith.select %8, %9, %6 : vector<1x1568xi1>, vector<1x1568xf32>
    %cst_6 = arith.constant 1.000000e+00 : f32
    %11 = vector.broadcast %cst_6 : f32 to vector<1x1568xf32>
    %12 = arith.addf %11, %6 : vector<1x1568xf32>
    %13 = arith.divf %10, %12 : vector<1x1568xf32>
    %c0_7 = arith.constant 0 : index
    %c0_8 = arith.constant 0 : index
    %14 = vector.load %arg2[%c0_7, %c0_8] : memref<1x1568xf32, #tpu.memory_space<vmem>>, vector<1x1568xf32>
    tpu.vector_store %arg2[%c0_7, %c0_8], %13 {strides = array<i32>} : memref<1x1568xf32, #tpu.memory_space<vmem>>, vector<1x1568xf32>,
    return
  }
}

</mosaic_0001>

<bundles_post_ra>
// kernel: ae_forward.5
= control target key start
LH: loop header
LB: loop body
LE: loop exit
PB: predicated region body
PF: predicated region fallthrough
CT: control target
= control target key end

     0   :  { %vm68_vm0 = vcmask 1040384   ;;  %vm64_vm1 = vcmask 203776   ;;  %vm379_vm2 = vcmask 261120   ;;  %s810_s1 = inlined_call_operand.vmem [shape: f32[25,1568], index: 1, kind: input, shape index: {}]   ;;  %s811_s0 = inlined_call_operand.vmem [shape: f32[8,25], index: 0, kind: input, shape index: {}]   ;;  %s812_s2 = inlined_call_operand.vmem [shape: f32[8,1568], index: 2, kind: output, shape index: {}]  }
   0x1   :  { %v53_v0 = vld [vmem:[%s810_s1 + $0x148] sm:$0x1]  ;;  %v51_v1 = vld [vmem:[%s810_s1 + $0x138] sm:$0x1]  ;;  %v52_v2 = vld [vmem:[%s810_s1 + $0x140] sm:$0x1] }
   0x2   :  { %518 = vmatpush.msk.msra.mxu2 %vm68_vm0, %v53_v0  ;;  %514 = vmatpush.msk.msra.mxu0 %vm68_vm0, %v51_v1  ;;  %v40_v3 = vld [vmem:[%s810_s1 + $0xe0] sm:$0xff]  ;;  %v54_v4 = vld [vmem:[%s810_s1 + $0x150] sm:$0x1]  ;;  %v39_v6 = vld [vmem:[%s810_s1 + $0xd8] sm:$0xff] }
   0x3   :  { %v38_v5 = vld [vmem:[%s810_s1 + $0xd0] sm:$0xff]  ;;  %516 = vmatpush.msk.msra.mxu1 %vm68_vm0, %v52_v2  ;;  %520 = vmatpush.msk.msra.mxu3 %vm68_vm0, %v54_v4  ;;  %v27_v7 = vld [vmem:[%s810_s1 + $0x78] sm:$0xff]  ;;  %v41_v8 = vld [vmem:[%s810_s1 + $0xe8] sm:$0xff] }
   0x4   :  { %161 = vmatpush.msra.mxu2 %v40_v3  ;;  %121 = vmatpush.msra.mxu0 %v38_v5  ;;  %v25_v9 = vld [vmem:[%s810_s1 + $0x68] sm:$0xff]  ;;  %v26_v10 = vld [vmem:[%s810_s1 + $0x70] sm:$0xff]  ;;  %v28_v12 = vld [vmem:[%s810_s1 + $0x80] sm:$0xff] }
   0x5   :  { %141 = vmatpush.msra.mxu1 %v39_v6  ;;  %181 = vmatpush.msra.mxu3 %v41_v8  ;;  %v14_v11 = vld [vmem:[%s810_s1 + $0x10] sm:$0xff]  ;;  %v12_v13 = vld [vmem:[%s810_s1] sm:$0xff]  ;;  %v13_v14 = vld [vmem:[%s810_s1 + $0x8] sm:$0xff] }
   0x6   :  { %162 = vmatpush.msra.mxu2 %v27_v7  ;;  %122 = vmatpush.msra.mxu0 %v25_v9  ;;  %v613_v15 = vld [vmem:[%s811_s0] sm:$0xff]  ;;  %v57_v16 = vld [vmem:[%s810_s1 + $0x168] sm:$0x1]  ;;  %v15_v17 = vld [vmem:[%s810_s1 + $0x18] sm:$0xff] }
   0x7   :  { %142 = vmatpush.msra.mxu1 %v26_v10  ;;  %182 = vmatpush.msra.mxu3 %v28_v12  ;;  %v55_v18 = vld [vmem:[%s810_s1 + $0x158] sm:$0x1]  ;;  %v44_v19 = vld [vmem:[%s810_s1 + $0x100] sm:$0xff]  ;;  %v58_v20 = vld [vmem:[%s810_s1 + $0x170] sm:$0x1] }
   0x8   :  { %163 = vmatpush.msra.mxu2 %v14_v11  ;;  %123 = vmatpush.msra.mxu0 %v12_v13  ;;  %v42_v21 = vld [vmem:[%s810_s1 + $0xf0] sm:$0xff]  ;;  %v56_v22 = vld [vmem:[%s810_s1 + $0x160] sm:$0x1]  ;;  %v31_v23 = vld [vmem:[%s810_s1 + $0x98] sm:$0xff] }
   0x9   :  { %143 = vmatpush.msra.mxu1 %v13_v14  ;;  %519 = vmatmul.msk.f32.vlgmr.msra.gmra.mxu2 %vm64_vm1, %v613_v15  ;;  %v45_v24 = vld [vmem:[%s810_s1 + $0x108] sm:$0xff]  ;;  %v43_v26 = vld [vmem:[%s810_s1 + $0xf8] sm:$0xff]  ;;  %v18_v27 = vld [vmem:[%s810_s1 + $0x30] sm:$0xff] }
   0xa   :  { %526 = vmatpush.msk.msrb.mxu2 %vm68_vm0, %v57_v16  ;;  %515 = vmatmul.msk.f32.vlgmr.msra.gmra.mxu0 %vm64_vm1, %v613_v15  ;;  %v29_v25 = vld [vmem:[%s810_s1 + $0x88] sm:$0xff]  ;;  %v32_v28 = vld [vmem:[%s810_s1 + $0xa0] sm:$0xff]  ;;  %v30_v30 = vld [vmem:[%s810_s1 + $0x90] sm:$0xff] }
   0xb   :  { %517 = vmatmul.msk.f32.vlgmr.msra.gmra.mxu1 %vm64_vm1, %v613_v15  ;;  %183 = vmatpush.msra.mxu3 %v15_v17  ;;  %v16_v29 = vld [vmem:[%s810_s1 + $0x20] sm:$0xff]  ;;  %v19_v31 = vld [vmem:[%s810_s1 + $0x38] sm:$0xff]  ;;  %v61_v32 = vld [vmem:[%s810_s1 + $0x188] sm:$0x1] }
   0xc   :  { %522 = vmatpush.msk.msrb.mxu0 %vm68_vm0, %v55_v18  ;;  %521 = vmatmul.msk.f32.vlgmr.msra.gmra.mxu3 %vm64_vm1, %v613_v15  ;;  %v59_v33 = vld [vmem:[%s810_s1 + $0x178] sm:$0x1]  ;;  %v17_v34 = vld [vmem:[%s810_s1 + $0x28] sm:$0xff]  ;;  %v48_v35 = vld [vmem:[%s810_s1 + $0x120] sm:$0xff] }
   0xd   :  { %241 = vmatpush.msrb.mxu2 %v44_v19  ;;  %528 = vmatpush.msk.msrb.mxu3 %vm68_vm0, %v58_v20  ;;  %v62_v36 = vld [vmem:[%s810_s1 + $0x190] sm:$0x1]  ;;  %v35_v38 = vld [vmem:[%s810_s1 + $0xb8] sm:$0xff]  ;;  %v60_v39 = vld [vmem:[%s810_s1 + $0x180] sm:$0x1] }
   0xe   :  { %201 = vmatpush.msrb.mxu0 %v42_v21  ;;  %524 = vmatpush.msk.msrb.mxu1 %vm68_vm0, %v56_v22  ;;  %v46_v37 = vld [vmem:[%s810_s1 + $0x110] sm:$0xff]  ;;  %v49_v40 = vld [vmem:[%s810_s1 + $0x128] sm:$0xff]  ;;  %v47_v43 = vld [vmem:[%s810_s1 + $0x118] sm:$0xff] }
   0xf   :  { %242 = vmatpush.msrb.mxu2 %v31_v23  ;;  %261 = vmatpush.msrb.mxu3 %v45_v24  ;;  %v33_v41 = vld [vmem:[%s810_s1 + $0xa8] sm:$0xff]  ;;  %v22_v42 = vld [vmem:[%s810_s1 + $0x50] sm:$0xff]  ;;  %v36_v44 = vld [vmem:[%s810_s1 + $0xc0] sm:$0xff] }
  0x10   :  { %202 = vmatpush.msrb.mxu0 %v29_v25  ;;  %221 = vmatpush.msrb.mxu1 %v43_v26  ;;  %v20_v45 = vld [vmem:[%s810_s1 + $0x40] sm:$0xff]  ;;  %v34_v46 = vld [vmem:[%s810_s1 + $0xb0] sm:$0xff]  ;;  %v23_v47 = vld [vmem:[%s810_s1 + $0x58] sm:$0xff] }
  0x11   :  { %243 = vmatpush.msrb.mxu2 %v18_v27  ;;  %262 = vmatpush.msrb.mxu3 %v32_v28  ;;  %v63_v48 = vld [vmem:[%s810_s1 + $0x198] sm:$0x1]  ;;  %v21_v49 = vld [vmem:[%s810_s1 + $0x48] sm:$0xff]  ;;  %v50_v50 = vld [vmem:[%s810_s1 + $0x130] sm:$0xff] }
  0x12   :  { %203 = vmatpush.msrb.mxu0 %v16_v29  ;;  %222 = vmatpush.msrb.mxu1 %v30_v30  ;;  %v37_v51 = vld [vmem:[%s810_s1 + $0xc8] sm:$0xff]  ;;  %v24_v52 = vld [vmem:[%s810_s1 + $0x60] sm:$0xff] }
  0x13   :  { %527 = vmatmul.msk.f32.vlgmr.msrb.gmra.mxu2 %vm64_vm1, %v613_v15  ;;  %263 = vmatpush.msrb.mxu3 %v19_v31 }
  0x14   :  { %534 = vmatpush.msk.msra.mxu2 %vm68_vm0, %v61_v32  ;;  %523 = vmatmul.msk.f32.vlgmr.msrb.gmra.mxu0 %vm64_vm1, %v613_v15 }
  0x15   :  { %530 = vmatpush.msk.msra.mxu0 %vm68_vm0, %v59_v33  ;;  %223 = vmatpush.msrb.mxu1 %v17_v34 }
  0x16   :  { %529 = vmatmul.msk.f32.vlgmr.msrb.gmra.mxu3 %vm64_vm1, %v613_v15  ;;  %321 = vmatpush.msra.mxu2 %v48_v35 }
  0x17   :  { %536 = vmatpush.msk.msra.mxu3 %vm68_vm0, %v62_v36  ;;  %281 = vmatpush.msra.mxu0 %v46_v37 }
  0x18   :  { %525 = vmatmul.msk.f32.vlgmr.msrb.gmra.mxu1 %vm64_vm1, %v613_v15  ;;  %322 = vmatpush.msra.mxu2 %v35_v38 }
  0x19   :  { %532 = vmatpush.msk.msra.mxu1 %vm68_vm0, %v60_v39  ;;  %341 = vmatpush.msra.mxu3 %v49_v40 }
  0x1a   :  { %282 = vmatpush.msra.mxu0 %v33_v41  ;;  %323 = vmatpush.msra.mxu2 %v22_v42 }
  0x1b   :  { %301 = vmatpush.msra.mxu1 %v47_v43  ;;  %342 = vmatpush.msra.mxu3 %v36_v44 }
  0x1c   :  { %283 = vmatpush.msra.mxu0 %v20_v45  ;;  %535 = vmatmul.msk.f32.vlgmr.msra.gmra.mxu2 %vm64_vm1, %v613_v15 }
  0x1d   :  { %302 = vmatpush.msra.mxu1 %v34_v46  ;;  %343 = vmatpush.msra.mxu3 %v23_v47 }
  0x1e   :  { %531 = vmatmul.msk.f32.vlgmr.msra.gmra.mxu0 %vm64_vm1, %v613_v15  ;;  %537 = vmatmul.msk.f32.vlgmr.msra.gmra.mxu3 %vm64_vm1, %v613_v15 }
  0x1f   :  { %538 = vmatpush.msk.msrb.mxu0 %vm68_vm0, %v63_v48  ;;  %303 = vmatpush.msra.mxu1 %v21_v49 }
  0x20   :  { %533 = vmatmul.msk.f32.vlgmr.msra.gmra.mxu1 %vm64_vm1, %v613_v15 }
  0x21   :  { %361 = vmatpush.msrb.mxu0 %v50_v50 }
  0x23   :  { %362 = vmatpush.msrb.mxu0 %v37_v51 }
  0x25   :  { %363 = vmatpush.msrb.mxu0 %v24_v52 }
  0x26   :  { %539 = vmatmul.msk.f32.vlgmr.msrb.gmra.mxu0 %vm64_vm1, %v613_v15  ;;  %v545_v15 = vmov 1568.0  }
  0x27   :  { %541 = vrcp.f32 %v545_v15 }
  0x2d   :  { %v542_v16 = vpop.eup %541 }
  0x2e   :  { %v385_v17 = vmul.f32 1568.0, %v542_v16  ;;  %vm389_vm3 = vweird.f32 %v542_v16 }
  0x30   :  { %v386_v18 = vsub.f32 1.0, %v385_v17 }
  0x32   :  { %v387_v19 = vmul.f32 %v542_v16, %v386_v18 }
  0x34   :  { %v388_v20 = vadd.f32 %v542_v16, %v387_v19 }
  0x36   :  { %v390_v21 = vsel %vm389_vm3, %v542_v16, %v388_v20 }
  0x87   :  { %v125_v53 = vpop.f32.mrf.mxu0 }
  0x88   :  { %v145_v54 = vpop.f32.mrf.mxu1 }
  0x89   :  { %v368_v55 = vadd.f32 %v145_v54, %v125_v53 }
  0x8c   :  { %v165_v56 = vpop.f32.mrf.mxu2 }
  0x8d   :  { %v369_v57 = vadd.f32 %v368_v55, %v165_v56 }
  0x8f   :  { %v185_v58 = vpop.f32.mrf.mxu3 }
  0x90   :  { %v370_v59 = vadd.f32 %v369_v57, %v185_v58 }
  0x91   :  { %v205_v60 = vpop.f32.mrf.mxu0 }
  0x92   :  { %v371_v61 = vadd.f32 %v370_v59, %v205_v60 }
  0x95   :  { %v225_v62 = vpop.f32.mrf.mxu1 }
  0x96   :  { %v372_v63 = vadd.f32 %v371_v61, %v225_v62  ;;  %v245_v0 = vpop.f32.mrf.mxu2 }
  0x98   :  { %v373_v1 = vadd.f32 %v372_v63, %v245_v0 }
  0x99   :  { %v265_v2 = vpop.f32.mrf.mxu3 }
  0x9a   :  { %v374_v3 = vadd.f32 %v373_v1, %v265_v2 }
  0x9b   :  { %v285_v4 = vpop.f32.mrf.mxu0 }
  0x9c   :  { %v375_v5 = vadd.f32 %v374_v3, %v285_v4 }
  0x9d   :  { %v305_v6 = vpop.f32.mrf.mxu1 }
  0x9e   :  { %v376_v7 = vadd.f32 %v375_v5, %v305_v6 }
  0x9f   :  { %v325_v8 = vpop.f32.mrf.mxu2 }
  0xa0   :  { %v377_v9 = vadd.f32 %v376_v7, %v325_v8 }
  0xa1   :  { %v345_v10 = vpop.f32.mrf.mxu3 }
  0xa2   :  { %v378_v11 = vadd.f32 %v377_v9, %v345_v10 }
  0xa3   :  { %v365_v12 = vpop.f32.mrf.mxu0 }
  0xa4   :  { %v380_v13 = vsel %vm379_vm2, %v365_v12, 0.0 }
  0xa5   :  { %v381_v14 = vadd.f32 %v380_v13, %v378_v11 }
  0xa7   :  { %382 = vadd.xlane.f32.xlu0 %v381_v14 }
 0x11a   :  { %v383_v22 = vpop.xlane.xlu0 %382 }
 0x11b   :  { %v391_v23 = vmul.f32 %v390_v21, %v383_v22 }
 0x11d   :  { %v392_v24 = vsub.f32 %v125_v53, %v391_v23  ;;  %v393_v25 = vsub.f32 %v145_v54, %v391_v23  ;;  %v394_v26 = vsub.f32 %v165_v56, %v391_v23  ;;  %v395_v29 = vsub.f32 %v185_v58, %v391_v23 }
 0x11e   :  { %v396_v30 = vsub.f32 %v205_v60, %v391_v23  ;;  %v397_v33 = vsub.f32 %v225_v62, %v391_v23  ;;  %v398_v36 = vsub.f32 %v245_v0, %v391_v23  ;;  %v399_v39 = vsub.f32 %v265_v2, %v391_v23 }
 0x11f   :  { %v405_v27 = vmul.f32 %v392_v24, %v392_v24  ;;  %v406_v28 = vmul.f32 %v393_v25, %v393_v25  ;;  %v407_v31 = vmul.f32 %v394_v26, %v394_v26  ;;  %v408_v34 = vmul.f32 %v395_v29, %v395_v29 }
 0x120   :  { %v409_v37 = vmul.f32 %v396_v30, %v396_v30  ;;  %v410_v40 = vmul.f32 %v397_v33, %v397_v33  ;;  %v400_v42 = vsub.f32 %v285_v4, %v391_v23  ;;  %v411_v43 = vmul.f32 %v398_v36, %v398_v36 }
 0x121   :  { %v418_v32 = vadd.f32 %v406_v28, %v405_v27  ;;  %v401_v45 = vsub.f32 %v305_v6, %v391_v23  ;;  %v412_v46 = vmul.f32 %v399_v39, %v399_v39  ;;  %v402_v48 = vsub.f32 %v325_v8, %v391_v23 }
 0x122   :  { %v413_v49 = vmul.f32 %v400_v42, %v400_v42  ;;  %v404_v51 = vsub.f32 %v365_v12, %v391_v23  ;;  %v403_v52 = vsub.f32 %v345_v10, %v391_v23 }
 0x123   :  { %v419_v35 = vadd.f32 %v418_v32, %v407_v31  ;;  %v414_v53 = vmul.f32 %v401_v45, %v401_v45  ;;  %v415_v55 = vmul.f32 %v402_v48, %v402_v48 }
 0x124   :  { %v417_v57 = vmul.f32 %v404_v51, %v404_v51  ;;  %v416_v58 = vmul.f32 %v403_v52, %v403_v52 }
 0x125   :  { %v420_v38 = vadd.f32 %v419_v35, %v408_v34 }
 0x126   :  { %v429_v61 = vsel %vm379_vm2, %v417_v57, 0.0 }
 0x127   :  { %v421_v41 = vadd.f32 %v420_v38, %v409_v37 }
 0x129   :  { %v422_v44 = vadd.f32 %v421_v41, %v410_v40 }
 0x12b   :  { %v423_v47 = vadd.f32 %v422_v44, %v411_v43 }
 0x12d   :  { %v424_v50 = vadd.f32 %v423_v47, %v412_v46 }
 0x12f   :  { %v425_v54 = vadd.f32 %v424_v50, %v413_v49 }
 0x131   :  { %v426_v56 = vadd.f32 %v425_v54, %v414_v53 }
 0x133   :  { %v427_v59 = vadd.f32 %v426_v56, %v415_v55 }
 0x135   :  { %v428_v60 = vadd.f32 %v427_v59, %v416_v58 }
 0x137   :  { %v430_v62 = vadd.f32 %v429_v61, %v428_v60 }
 0x139   :  { %431 = vadd.xlane.f32.xlu0 %v430_v62 }
 0x1ac   :  { %v432_v63 = vpop.xlane.xlu0 %431 }
 0x1ad   :  { %v433_v0 = vmul.f32 %v432_v63, %v390_v21 }
 0x1af   :  { %v434_v1 = vadd.f32 0.0001, %v433_v0 }
 0x1b1   :  { %543 = vrsqrt.f32 %v434_v1  ;;  %vm441_vm5 = vweird.f32 %v434_v1 }
 0x1b7   :  { %v544_v2 = vpop.eup %543 }
 0x1b8   :  { %v436_v3 = vmul.f32 %v544_v2, %v434_v1  ;;  %vm442_vm4 = vweird.f32 %v544_v2 }
 0x1b9   :  { %vm443_vm6 = vmor %vm441_vm5, %vm442_vm4 }
 0x1ba   :  { %v437_v4 = vmul.f32 %v544_v2, %v436_v3 }
 0x1bc   :  { %v438_v5 = vmul.f32 0.5, %v437_v4 }
 0x1be   :  { %v439_v6 = vsub.f32 1.5, %v438_v5 }
 0x1c0   :  { %v440_v7 = vmul.f32 %v544_v2, %v439_v6 }
 0x1c2   :  { %v444_v8 = vsel %vm443_vm6, %v544_v2, %v440_v7 }
 0x1c3   :  { %v445_v9 = vmul.f32 %v444_v8, %v392_v24  ;;  %v446_v10 = vmul.f32 %v444_v8, %v393_v25  ;;  %v447_v11 = vmul.f32 %v444_v8, %v394_v26  ;;  %v448_v12 = vmul.f32 %v444_v8, %v395_v29 }
 0x1c4   :  { %v449_v13 = vmul.f32 %v444_v8, %v396_v30  ;;  %v450_v14 = vmul.f32 %v444_v8, %v397_v33  ;;  %v451_v15 = vmul.f32 %v444_v8, %v398_v36  ;;  %v452_v16 = vmul.f32 %v444_v8, %v399_v39 }
 0x1c5   :  { %v453_v17 = vmul.f32 %v444_v8, %v400_v42  ;;  %v454_v18 = vmul.f32 %v444_v8, %v401_v45  ;;  %v455_v19 = vmul.f32 %v444_v8, %v402_v48  ;;  %vm458_vm7 = vcmp.ge.f32.partialorder %v445_v9, 0.0 }
 0x1c6   :  { %vm459_vm8 = vcmp.ge.f32.partialorder %v446_v10, 0.0  ;;  %vm460_vm9 = vcmp.ge.f32.partialorder %v447_v11, 0.0  ;;  %vm461_vm10 = vcmp.ge.f32.partialorder %v448_v12, 0.0  ;;  %vm462_vm11 = vcmp.ge.f32.partialorder %v449_v13, 0.0 }
 0x1c7   :  { %v471_v20 = vmul.f32 0.01, %v445_v9  ;;  %v472_v21 = vmul.f32 0.01, %v446_v10  ;;  %v456_v22 = vmul.f32 %v444_v8, %v403_v52  ;;  %v473_v23 = vmul.f32 0.01, %v447_v11 }
 0x1c8   :  { %v474_v24 = vmul.f32 0.01, %v448_v12  ;;  %v475_v25 = vmul.f32 0.01, %v449_v13  ;;  %vm463_vm12 = vcmp.ge.f32.partialorder %v450_v14, 0.0  ;;  %v457_v29 = vmul.f32 %v444_v8, %v404_v51 }
 0x1c9   :  { %v476_v26 = vmul.f32 0.01, %v450_v14  ;;  %v477_v27 = vmul.f32 0.01, %v451_v15  ;;  %v484_v28 = vsel %vm458_vm7, %v445_v9, %v471_v20  ;;  %vm464_vm13 = vcmp.ge.f32.partialorder %v451_v15, 0.0 }
 0x1ca   :  { %v478_v30 = vmul.f32 0.01, %v452_v16  ;;  %v485_v31 = vsel %vm459_vm8, %v446_v10, %v472_v21  ;;  %497 = vst [vmem:[%s812_s2] sm:$0xff] %v484_v28  ;;  %vm465_vm14 = vcmp.ge.f32.partialorder %v452_v16, 0.0  ;;  %v479_v32 = vmul.f32 0.01, %v453_v17 }
 0x1cb   :  { %v486_v33 = vsel %vm460_vm9, %v447_v11, %v473_v23  ;;  %v487_v34 = vsel %vm461_vm10, %v448_v12, %v474_v24  ;;  %498 = vst [vmem:[%s812_s2 + $0x8] sm:$0xff] %v485_v31  ;;  %vm466_vm15 = vcmp.ge.f32.partialorder %v453_v17, 0.0  ;;  %v480_v35 = vmul.f32 0.01, %v454_v18 }
 0x1cc   :  { %v488_v36 = vsel %vm462_vm11, %v449_v13, %v475_v25  ;;  %v489_v37 = vsel %vm463_vm12, %v450_v14, %v476_v26  ;;  %499 = vst [vmem:[%s812_s2 + $0x10] sm:$0xff] %v486_v33  ;;  %vm467_vm0 = vcmp.ge.f32.partialorder %v454_v18, 0.0  ;;  %v481_v38 = vmul.f32 0.01, %v455_v19 }
 0x1cd   :  { %v490_v39 = vsel %vm464_vm13, %v451_v15, %v477_v27  ;;  %500 = vst [vmem:[%s812_s2 + $0x18] sm:$0xff] %v487_v34  ;;  %vm468_vm1 = vcmp.ge.f32.partialorder %v455_v19, 0.0  ;;  %v482_v40 = vmul.f32 0.01, %v456_v22  ;;  %v491_v41 = vsel %vm465_vm14, %v452_v16, %v478_v30 }
 0x1ce   :  { %501 = vst [vmem:[%s812_s2 + $0x20] sm:$0xff] %v488_v36  ;;  %vm469_vm3 = vcmp.ge.f32.partialorder %v456_v22, 0.0  ;;  %v483_v42 = vmul.f32 0.01, %v457_v29  ;;  %v492_v43 = vsel %vm466_vm15, %v453_v17, %v479_v32  ;;  %vm470_vm4 = vcmp.ge.f32.partialorder %v457_v29, 0.0 }
 0x1cf   :  { %502 = vst [vmem:[%s812_s2 + $0x28] sm:$0xff] %v489_v37  ;;  %v493_v44 = vsel %vm467_vm0, %v454_v18, %v480_v35  ;;  %v494_v45 = vsel %vm468_vm1, %v455_v19, %v481_v38  ;;  %v495_v46 = vsel %vm469_vm3, %v456_v22, %v482_v40 }
 0x1d0   :  { %503 = vst [vmem:[%s812_s2 + $0x30] sm:$0xff] %v490_v39  ;;  %v496_v47 = vsel %vm470_vm4, %v457_v29, %v483_v42 }
 0x1d1   :  { %504 = vst [vmem:[%s812_s2 + $0x38] sm:$0xff] %v491_v41 }
 0x1d2   :  { %505 = vst [vmem:[%s812_s2 + $0x40] sm:$0xff] %v492_v43 }
 0x1d3   :  { %506 = vst [vmem:[%s812_s2 + $0x48] sm:$0xff] %v493_v44 }
 0x1d4   :  { %507 = vst [vmem:[%s812_s2 + $0x50] sm:$0xff] %v494_v45 }
 0x1d5   :  { %508 = vst [vmem:[%s812_s2 + $0x58] sm:$0xff] %v495_v46 }
 0x1d6   :  { %509 = vst.msk [vmem:[%s812_s2 + $0x60] sm:$0xff] %vm379_vm2, %v496_v47 }

// kernel: ae_forward.6
= control target key start
LH: loop header
LB: loop body
LE: loop exit
PB: predicated region body
PF: predicated region fallthrough
CT: control target
= control target key end

     0   :  { %vm117_vm0 = vcmask 588800   ;;  %vm280_vm1 = vcmask 1043456   ;;  %vm286_vm2 = vcmask 60416   ;;  %vm355_vm9 = vcmask 64516   ;;  %s717_s1 = inlined_call_operand.vmem [shape: f32[200,392], index: 1, kind: input, shape index: {}]   ;;  %s718_s0 = inlined_call_operand.vmem [shape: f32[4,200], index: 0, kind: input, shape index: {}]   ;;  %s719_s2 = inlined_call_operand.vmem [shape: f32[4,392], index: 2, kind: output, shape index: {}]  }
   0x1   :  { %v72_v0 = vld [vmem:[%s717_s1 + $0x1e0] sm:$0xff]  ;;  %v73_v5 = vld [vmem:[%s717_s1 + $0x1e8] sm:$0xff]  ;;  %v74_v34 = vld [vmem:[%s717_s1 + $0x1f0] sm:$0xff] }
   0x2   :  { %v68_v1 = vld [vmem:[%s717_s1 + $0x1c0] sm:$0xff]  ;;  %120 = vmatpush.msra.mxu0 %v72_v0  ;;  %160 = vmatpush.msra.mxu2 %v73_v5  ;;  %v69_v7 = vld [vmem:[%s717_s1 + $0x1c8] sm:$0xff]  ;;  %v70_v38 = vld [vmem:[%s717_s1 + $0x1d0] sm:$0xff] }
   0x3   :  { %v108_v2 = vld [vmem:[%s717_s1 + $0x300] sm:$0xff]  ;;  %v65_v9 = vld [vmem:[%s717_s1 + $0x1a8] sm:$0xff]  ;;  %v66_v42 = vld [vmem:[%s717_s1 + $0x1b0] sm:$0xff] }
   0x4   :  { %v64_v3 = vld [vmem:[%s717_s1 + $0x1a0] sm:$0xff]  ;;  %147 = vmatpush.msra.mxu1 %v108_v2  ;;  %121 = vmatpush.msra.mxu0 %v68_v1  ;;  %v109_v11 = vld [vmem:[%s717_s1 + $0x308] sm:$0xff]  ;;  %v110_v44 = vld [vmem:[%s717_s1 + $0x310] sm:$0xff] }
   0x5   :  { %v104_v4 = vld [vmem:[%s717_s1 + $0x2e0] sm:$0xff]  ;;  %161 = vmatpush.msra.mxu2 %v69_v7  ;;  %v61_v13 = vld [vmem:[%s717_s1 + $0x188] sm:$0xff]  ;;  %187 = vmatpush.msra.mxu3 %v109_v11  ;;  %v62_v46 = vld [vmem:[%s717_s1 + $0x190] sm:$0xff] }
   0x6   :  { %v100_v6 = vld [vmem:[%s717_s1 + $0x2c0] sm:$0xff]  ;;  %148 = vmatpush.msra.mxu1 %v104_v4  ;;  %122 = vmatpush.msra.mxu0 %v64_v3  ;;  %v105_v15 = vld [vmem:[%s717_s1 + $0x2e8] sm:$0xff]  ;;  %v106_v48 = vld [vmem:[%s717_s1 + $0x2f0] sm:$0xff] }
   0x7   :  { %v60_v8 = vld [vmem:[%s717_s1 + $0x180] sm:$0xff]  ;;  %162 = vmatpush.msra.mxu2 %v65_v9  ;;  %v57_v17 = vld [vmem:[%s717_s1 + $0x168] sm:$0xff]  ;;  %188 = vmatpush.msra.mxu3 %v105_v15  ;;  %v58_v51 = vld [vmem:[%s717_s1 + $0x170] sm:$0xff] }
   0x8   :  { %v96_v10 = vld [vmem:[%s717_s1 + $0x2a0] sm:$0xff]  ;;  %149 = vmatpush.msra.mxu1 %v100_v6  ;;  %123 = vmatpush.msra.mxu0 %v60_v8  ;;  %v101_v18 = vld [vmem:[%s717_s1 + $0x2c8] sm:$0xff]  ;;  %v102_v53 = vld [vmem:[%s717_s1 + $0x2d0] sm:$0xff] }
   0x9   :  { %v56_v12 = vld [vmem:[%s717_s1 + $0x160] sm:$0xff]  ;;  %163 = vmatpush.msra.mxu2 %v61_v13  ;;  %v97_v20 = vld [vmem:[%s717_s1 + $0x2a8] sm:$0xff]  ;;  %189 = vmatpush.msra.mxu3 %v101_v18  ;;  %v54_v55 = vld [vmem:[%s717_s1 + $0x150] sm:$0xff] }
   0xa   :  { %v92_v14 = vld [vmem:[%s717_s1 + $0x280] sm:$0xff]  ;;  %150 = vmatpush.msra.mxu1 %v96_v10  ;;  %124 = vmatpush.msra.mxu0 %v56_v12  ;;  %v53_v22 = vld [vmem:[%s717_s1 + $0x148] sm:$0xff]  ;;  %v98_v57 = vld [vmem:[%s717_s1 + $0x2b0] sm:$0xff] }
   0xb   :  { %v52_v16 = vld [vmem:[%s717_s1 + $0x140] sm:$0xff]  ;;  %164 = vmatpush.msra.mxu2 %v57_v17  ;;  %v93_v24 = vld [vmem:[%s717_s1 + $0x288] sm:$0xff]  ;;  %190 = vmatpush.msra.mxu3 %v97_v20  ;;  %v50_v59 = vld [vmem:[%s717_s1 + $0x130] sm:$0xff] }
   0xc   :  { %v88_v19 = vld [vmem:[%s717_s1 + $0x260] sm:$0xff]  ;;  %151 = vmatpush.msra.mxu1 %v92_v14  ;;  %125 = vmatpush.msra.mxu0 %v52_v16  ;;  %v49_v26 = vld [vmem:[%s717_s1 + $0x128] sm:$0xff]  ;;  %v75_v60 = vld [vmem:[%s717_s1 + $0x1f8] sm:$0xff] }
   0xd   :  { %v48_v21 = vld [vmem:[%s717_s1 + $0x120] sm:$0xff]  ;;  %165 = vmatpush.msra.mxu2 %v53_v22  ;;  %v89_v28 = vld [vmem:[%s717_s1 + $0x268] sm:$0xff]  ;;  %191 = vmatpush.msra.mxu3 %v93_v24  ;;  %v46_v62 = vld [vmem:[%s717_s1 + $0x110] sm:$0xff] }
   0xe   :  { %v84_v23 = vld [vmem:[%s717_s1 + $0x240] sm:$0xff]  ;;  %152 = vmatpush.msra.mxu1 %v88_v19  ;;  %126 = vmatpush.msra.mxu0 %v48_v21  ;;  %v45_v30 = vld [vmem:[%s717_s1 + $0x108] sm:$0xff]  ;;  %v94_v63 = vld [vmem:[%s717_s1 + $0x290] sm:$0xff] }
   0xf   :  { %v44_v25 = vld [vmem:[%s717_s1 + $0x100] sm:$0xff]  ;;  %166 = vmatpush.msra.mxu2 %v49_v26  ;;  %v85_v32 = vld [vmem:[%s717_s1 + $0x248] sm:$0xff]  ;;  %192 = vmatpush.msra.mxu3 %v89_v28  ;;  %v71_v0 = vld [vmem:[%s717_s1 + $0x1d8] sm:$0xff] }
  0x10   :  { %v80_v27 = vld [vmem:[%s717_s1 + $0x220] sm:$0xff]  ;;  %153 = vmatpush.msra.mxu1 %v84_v23  ;;  %127 = vmatpush.msra.mxu0 %v44_v25  ;;  %v41_v35 = vld [vmem:[%s717_s1 + $0xe8] sm:$0xff]  ;;  %v42_v2 = vld [vmem:[%s717_s1 + $0xf0] sm:$0xff] }
  0x11   :  { %v40_v29 = vld [vmem:[%s717_s1 + $0xe0] sm:$0xff]  ;;  %167 = vmatpush.msra.mxu2 %v45_v30  ;;  %v81_v36 = vld [vmem:[%s717_s1 + $0x228] sm:$0xff]  ;;  %193 = vmatpush.msra.mxu3 %v85_v32  ;;  %v111_v3 = vld [vmem:[%s717_s1 + $0x318] sm:$0xff] }
  0x12   :  { %v76_v31 = vld [vmem:[%s717_s1 + $0x200] sm:$0xff]  ;;  %154 = vmatpush.msra.mxu1 %v80_v27  ;;  %128 = vmatpush.msra.mxu0 %v40_v29  ;;  %v37_v39 = vld [vmem:[%s717_s1 + $0xc8] sm:$0xff]  ;;  %v67_v4 = vld [vmem:[%s717_s1 + $0x1b8] sm:$0xff] }
  0x13   :  { %v36_v33 = vld [vmem:[%s717_s1 + $0xc0] sm:$0xff]  ;;  %v77_v40 = vld [vmem:[%s717_s1 + $0x208] sm:$0xff]  ;;  %168 = vmatpush.msra.mxu2 %v41_v35  ;;  %194 = vmatpush.msra.mxu3 %v81_v36  ;;  %v38_v6 = vld [vmem:[%s717_s1 + $0xd0] sm:$0xff] }
  0x14   :  { %v32_v37 = vld [vmem:[%s717_s1 + $0xa0] sm:$0xff]  ;;  %155 = vmatpush.msra.mxu1 %v76_v31  ;;  %129 = vmatpush.msra.mxu0 %v36_v33  ;;  %v33_v43 = vld [vmem:[%s717_s1 + $0xa8] sm:$0xff]  ;;  %v90_v7 = vld [vmem:[%s717_s1 + $0x270] sm:$0xff] }
  0x15   :  { %v28_v41 = vld [vmem:[%s717_s1 + $0x80] sm:$0xff]  ;;  %169 = vmatpush.msra.mxu2 %v37_v39  ;;  %195 = vmatpush.msra.mxu3 %v77_v40  ;;  %v29_v47 = vld [vmem:[%s717_s1 + $0x88] sm:$0xff]  ;;  %v63_v8 = vld [vmem:[%s717_s1 + $0x198] sm:$0xff] }
  0x16   :  { %200 = vmatpush.msrb.mxu1 %v74_v34  ;;  %130 = vmatpush.msra.mxu0 %v32_v37  ;;  %v24_v45 = vld [vmem:[%s717_s1 + $0x60] sm:$0xff]  ;;  %v25_v52 = vld [vmem:[%s717_s1 + $0x68] sm:$0xff]  ;;  %v107_v9 = vld [vmem:[%s717_s1 + $0x2f8] sm:$0xff] }
  0x17   :  { %v11_v49 = vld [vmem:[%s718_s0] sm:$0xff]  ;;  %170 = vmatpush.msra.mxu2 %v33_v43  ;;  %227 = vmatpush.msrb.mxu3 %v110_v44  ;;  %v21_v56 = vld [vmem:[%s717_s1 + $0x48] sm:$0xff]  ;;  %v34_v10 = vld [vmem:[%s717_s1 + $0xb0] sm:$0xff] }
  0x18   :  { %201 = vmatpush.msrb.mxu1 %v70_v38  ;;  %131 = vmatpush.msra.mxu0 %v28_v41  ;;  %v20_v50 = vld [vmem:[%s717_s1 + $0x40] sm:$0xff]  ;;  %113 = vst [vmem:[#allocation1] ss:$2 sm:$0xff] %v11_v49  ;;  %v17_v61 = vld [vmem:[%s717_s1 + $0x28] sm:$0xff]  ;;  %v86_v11 = vld [vmem:[%s717_s1 + $0x250] sm:$0xff] }
  0x19   :  { %v16_v54 = vld [vmem:[%s717_s1 + $0x20] sm:$0xff]  ;;  %171 = vmatpush.msra.mxu2 %v29_v47  ;;  %228 = vmatpush.msrb.mxu3 %v106_v48  ;;  %v13_v1 = vld [vmem:[%s717_s1 + $0x8] sm:$0xff]  ;;  %v59_v12 = vld [vmem:[%s717_s1 + $0x178] sm:$0xff] }
  0x1a   :  { %202 = vmatpush.msrb.mxu1 %v66_v42  ;;  %132 = vmatpush.msra.mxu0 %v24_v45  ;;  %v12_v58 = vld [vmem:[%s717_s1] sm:$0xff]  ;;  %v103_v13 = vld [vmem:[%s717_s1 + $0x2d8] sm:$0xff]  ;;  %v30_v14 = vld [vmem:[%s717_s1 + $0x90] sm:$0xff] }
  0x1b   :  { %172 = vmatpush.msra.mxu2 %v25_v52  ;;  %229 = vmatpush.msrb.mxu3 %v102_v53  ;;  %v82_v15 = vld [vmem:[%s717_s1 + $0x230] sm:$0xff]  ;;  %v55_v16 = vld [vmem:[%s717_s1 + $0x158] sm:$0xff]  ;;  %vm356_vm12 = vmor %vm355_vm9, %vm280_vm1 }
  0x1c   :  { %203 = vmatpush.msrb.mxu1 %v62_v46  ;;  %133 = vmatpush.msra.mxu0 %v20_v50  ;;  %v99_v17 = vld [vmem:[%s717_s1 + $0x2b8] sm:$0xff]  ;;  %v26_v20 = vld [vmem:[%s717_s1 + $0x70] sm:$0xff] }
  0x1d   :  { %173 = vmatpush.msra.mxu2 %v21_v56  ;;  %230 = vmatpush.msrb.mxu3 %v98_v57  ;;  %v51_v19 = vld [vmem:[%s717_s1 + $0x138] sm:$0xff]  ;;  %v78_v21 = vld [vmem:[%s717_s1 + $0x210] sm:$0xff] }
  0x1e   :  { %204 = vmatpush.msrb.mxu1 %v58_v51  ;;  %134 = vmatpush.msra.mxu0 %v16_v54  ;;  %v95_v22 = vld [vmem:[%s717_s1 + $0x298] sm:$0xff]  ;;  %v22_v24 = vld [vmem:[%s717_s1 + $0x50] sm:$0xff] }
  0x1f   :  { %174 = vmatpush.msra.mxu2 %v17_v61  ;;  %231 = vmatpush.msrb.mxu3 %v94_v63  ;;  %v594_v5 = vld.sshfl [vmem:[#allocation1 + $0x8] sm:$0xff pattern:$0x75316420]  ;;  %v114_v18 = vld.sshfl [vmem:[#allocation1] sm:$0xff pattern:$0x75316420] }
  0x20   :  { %205 = vmatpush.msrb.mxu1 %v54_v55  ;;  %135 = vmatpush.msra.mxu0 %v12_v58  ;;  %v47_v23 = vld [vmem:[%s717_s1 + $0x118] sm:$0xff]  ;;  %v18_v27 = vld [vmem:[%s717_s1 + $0x30] sm:$0xff]  ;;  %v371_v58 = vmov 392.0  }
  0x21   :  { %175 = vmatpush.msra.mxu2 %v13_v1  ;;  %363 = vmatmul.msk.f32.vlgmr.msra.gmra.mxu3 %vm117_vm0, %v594_v5  ;;  %v91_v25 = vld [vmem:[%s717_s1 + $0x278] sm:$0xff]  ;;  %v14_v30 = vld [vmem:[%s717_s1 + $0x10] sm:$0xff]  ;;  %367 = vrcp.f32 %v371_v58 }
  0x22   :  { %206 = vmatpush.msrb.mxu1 %v50_v59  ;;  %240 = vmatpush.msrb.mxu0 %v75_v60  ;;  %v43_v26 = vld [vmem:[%s717_s1 + $0xf8] sm:$0xff] }
  0x23   :  { %267 = vmatpush.msrb.mxu2 %v111_v3  ;;  %232 = vmatpush.msrb.mxu3 %v90_v7  ;;  %v87_v28 = vld [vmem:[%s717_s1 + $0x258] sm:$0xff] }
  0x24   :  { %207 = vmatpush.msrb.mxu1 %v46_v62  ;;  %241 = vmatpush.msrb.mxu0 %v71_v0  ;;  %v39_v29 = vld [vmem:[%s717_s1 + $0xd8] sm:$0xff] }
  0x25   :  { %268 = vmatpush.msrb.mxu2 %v107_v9  ;;  %233 = vmatpush.msrb.mxu3 %v86_v11  ;;  %v35_v31 = vld [vmem:[%s717_s1 + $0xb8] sm:$0xff] }
  0x26   :  { %208 = vmatpush.msrb.mxu1 %v42_v2  ;;  %242 = vmatpush.msrb.mxu0 %v67_v4  ;;  %v83_v32 = vld [vmem:[%s717_s1 + $0x238] sm:$0xff] }
  0x27   :  { %269 = vmatpush.msrb.mxu2 %v103_v13  ;;  %234 = vmatpush.msrb.mxu3 %v82_v15  ;;  %v31_v33 = vld [vmem:[%s717_s1 + $0x98] sm:$0xff]  ;;  %v368_v59 = vpop.eup %367 }
  0x28   :  { %209 = vmatpush.msrb.mxu1 %v38_v6  ;;  %243 = vmatpush.msrb.mxu0 %v63_v8  ;;  %v79_v34 = vld [vmem:[%s717_s1 + $0x218] sm:$0xff]  ;;  %v292_v60 = vmul.f32 392.0, %v368_v59  ;;  %vm296_vm3 = vweird.f32 %v368_v59 }
  0x29   :  { %270 = vmatpush.msrb.mxu2 %v99_v17  ;;  %362 = vmatmul.msk.f32.vlgmr.msra.gmra.mxu1 %vm117_vm0, %v594_v5  ;;  %v27_v35 = vld [vmem:[%s717_s1 + $0x78] sm:$0xff] }
  0x2a   :  { %210 = vmatpush.msrb.mxu1 %v34_v10  ;;  %244 = vmatpush.msrb.mxu0 %v59_v12  ;;  %v23_v36 = vld [vmem:[%s717_s1 + $0x58] sm:$0xff]  ;;  %v293_v61 = vsub.f32 1.0, %v292_v60 }
  0x2b   :  { %176 = vmatmul.f32.vlgmr.msra.gmra.mxu2 %v114_v18  ;;  %235 = vmatpush.msrb.mxu3 %v78_v21  ;;  %v19_v37 = vld [vmem:[%s717_s1 + $0x38] sm:$0xff] }
  0x2c   :  { %211 = vmatpush.msrb.mxu1 %v30_v14  ;;  %245 = vmatpush.msrb.mxu0 %v55_v16  ;;  %v15_v38 = vld [vmem:[%s717_s1 + $0x18] sm:$0xff]  ;;  %v294_v62 = vmul.f32 %v368_v59, %v293_v61 }
  0x2d   :  { %271 = vmatpush.msrb.mxu2 %v95_v22  ;;  %364 = vmatmul.msk.f32.vlgmr.msrb.gmra.mxu3 %vm117_vm0, %v594_v5 }
  0x2e   :  { %246 = vmatpush.msrb.mxu0 %v51_v19  ;;  %212 = vmatpush.msrb.mxu1 %v26_v20  ;;  %v295_v63 = vadd.f32 %v368_v59, %v294_v62 }
  0x2f   :  { %272 = vmatpush.msrb.mxu2 %v91_v25  ;;  %136 = vmatmul.f32.vlgmr.msra.gmra.mxu0 %v114_v18 }
  0x30   :  { %247 = vmatpush.msrb.mxu0 %v47_v23  ;;  %213 = vmatpush.msrb.mxu1 %v22_v24  ;;  %v297_v0 = vsel %vm296_vm3, %v368_v59, %v295_v63 }
  0x31   :  { %273 = vmatpush.msrb.mxu2 %v87_v28 }
  0x32   :  { %248 = vmatpush.msrb.mxu0 %v43_v26  ;;  %214 = vmatpush.msrb.mxu1 %v18_v27 }
  0x33   :  { %274 = vmatpush.msrb.mxu2 %v83_v32 }
  0x34   :  { %249 = vmatpush.msrb.mxu0 %v39_v29  ;;  %215 = vmatpush.msrb.mxu1 %v14_v30 }
  0x35   :  { %216 = vmatmul.f32.vlgmr.msrb.gmra.mxu1 %v114_v18  ;;  %275 = vmatpush.msrb.mxu2 %v79_v34 }
  0x36   :  { %250 = vmatpush.msrb.mxu0 %v35_v31  ;;  %365 = vmatmul.msk.f32.vlgmr.msrb.gmra.mxu2 %vm117_vm0, %v594_v5 }
  0x38   :  { %251 = vmatpush.msrb.mxu0 %v31_v33 }
  0x3a   :  { %252 = vmatpush.msrb.mxu0 %v27_v35 }
  0x3c   :  { %253 = vmatpush.msrb.mxu0 %v23_v36 }
  0x3e   :  { %254 = vmatpush.msrb.mxu0 %v19_v37 }
  0x40   :  { %255 = vmatpush.msrb.mxu0 %v15_v38 }
  0x41   :  { %256 = vmatmul.f32.vlgmr.msrb.gmra.mxu0 %v114_v18 }
  0xa4   :  { %v197_v40 = vpop.f32.mrf.mxu3 }
  0xa6   :  { %v157_v39 = vpop.f32.mrf.mxu1 }
  0xac   :  { %v137_v41 = vpop.f32.mrf.mxu0 }
  0xad   :  { %v158_v43 = vadd.f32 %v157_v39, %v137_v41 }
  0xae   :  { %v177_v42 = vpop.f32.mrf.mxu2 }
  0xaf   :  { %v198_v44 = vadd.f32 %v197_v40, %v177_v42  ;;  %v281_v47 = vsel %vm280_vm1, %v158_v43, 0.0 }
  0xb0   :  { %v237_v46 = vpop.f32.mrf.mxu3 }
  0xb1   :  { %v282_v48 = vsel %vm280_vm1, %v198_v44, 0.0 }
  0xb2   :  { %v217_v45 = vpop.f32.mrf.mxu1  ;;  %v283_v50 = vadd.f32 %v282_v48, %v281_v47 }
  0xb3   :  { %v238_v49 = vadd.f32 %v237_v46, %v217_v45 }
  0xb5   :  { %v284_v52 = vsel %vm280_vm1, %v238_v49, 0.0 }
  0xb6   :  { %v285_v55 = vadd.f32 %v284_v52, %v283_v50 }
  0xb9   :  { %v277_v51 = vpop.f32.mrf.mxu2 }
  0xbe   :  { %v257_v53 = vpop.f32.mrf.mxu0 }
  0xbf   :  { %v278_v54 = vadd.f32 %v277_v51, %v257_v53 }
  0xc1   :  { %v287_v56 = vsel %vm286_vm2, %v278_v54, 0.0 }
  0xc2   :  { %v288_v57 = vadd.f32 %v287_v56, %v285_v55 }
  0xc4   :  { %289 = vadd.xlane.f32.xlu0 %v288_v57 }
 0x137   :  { %v290_v1 = vpop.xlane.xlu0 %289 }
 0x138   :  { %v298_v2 = vmul.f32 %v297_v0, %v290_v1 }
 0x13a   :  { %v299_v3 = vsub.f32 %v158_v43, %v298_v2  ;;  %v300_v4 = vsub.f32 %v198_v44, %v298_v2  ;;  %v301_v5 = vsub.f32 %v238_v49, %v298_v2  ;;  %v302_v6 = vsub.f32 %v278_v54, %v298_v2 }
 0x13c   :  { %v303_v7 = vmul.f32 %v299_v3, %v299_v3  ;;  %v304_v8 = vmul.f32 %v300_v4, %v300_v4  ;;  %v305_v9 = vmul.f32 %v301_v5, %v301_v5  ;;  %v306_v10 = vmul.f32 %v302_v6, %v302_v6 }
 0x13e   :  { %v307_v11 = vsel %vm280_vm1, %v303_v7, 0.0  ;;  %v308_v12 = vsel %vm280_vm1, %v304_v8, 0.0  ;;  %v310_v14 = vsel %vm280_vm1, %v305_v9, 0.0  ;;  %v312_v16 = vsel %vm286_vm2, %v306_v10, 0.0 }
 0x13f   :  { %v309_v13 = vadd.f32 %v308_v12, %v307_v11 }
 0x141   :  { %v311_v15 = vadd.f32 %v310_v14, %v309_v13 }
 0x143   :  { %v313_v17 = vadd.f32 %v312_v16, %v311_v15 }
 0x145   :  { %314 = vadd.xlane.f32.xlu0 %v313_v17 }
 0x1b8   :  { %v315_v18 = vpop.xlane.xlu0 %314 }
 0x1b9   :  { %v316_v19 = vmul.f32 %v315_v18, %v297_v0 }
 0x1bb   :  { %v317_v20 = vadd.f32 0.0001, %v316_v19 }
 0x1bd   :  { %369 = vrsqrt.f32 %v317_v20  ;;  %vm324_vm5 = vweird.f32 %v317_v20 }
 0x1c3   :  { %v370_v21 = vpop.eup %369 }
 0x1c4   :  { %v319_v22 = vmul.f32 %v370_v21, %v317_v20  ;;  %vm325_vm4 = vweird.f32 %v370_v21 }
 0x1c5   :  { %vm326_vm6 = vmor %vm324_vm5, %vm325_vm4 }
 0x1c6   :  { %v320_v23 = vmul.f32 %v370_v21, %v319_v22 }
 0x1c8   :  { %v321_v24 = vmul.f32 0.5, %v320_v23 }
 0x1ca   :  { %v322_v25 = vsub.f32 1.5, %v321_v24 }
 0x1cc   :  { %v323_v26 = vmul.f32 %v370_v21, %v322_v25 }
 0x1ce   :  { %v327_v27 = vsel %vm326_vm6, %v370_v21, %v323_v26 }
 0x1cf   :  { %v328_v28 = vmul.f32 %v327_v27, %v299_v3  ;;  %v329_v29 = vmul.f32 %v327_v27, %v300_v4  ;;  %v330_v30 = vmul.f32 %v327_v27, %v301_v5  ;;  %v331_v31 = vmul.f32 %v327_v27, %v302_v6 }
 0x1d1   :  { %vm333_vm7 = vcmp.ge.f32.partialorder %v329_v29, 0.0  ;;  %vm335_vm8 = vcmp.ge.f32.partialorder %v331_v31, 0.0  ;;  %v336_v32 = vmul.f32 0.01, %v328_v28  ;;  %v337_v33 = vmul.f32 0.01, %v329_v29 }
 0x1d2   :  { %vm332_vm10 = vcmp.ge.f32.partialorder %v328_v28, 0.0  ;;  %v338_v34 = vmul.f32 0.01, %v330_v30  ;;  %v339_v35 = vmul.f32 0.01, %v331_v31  ;;  %vm334_vm11 = vcmp.ge.f32.partialorder %v330_v30, 0.0 }
 0x1d3   :  { %v341_v36 = vsel %vm333_vm7, %v329_v29, %v337_v33  ;;  %v340_v39 = vsel %vm332_vm10, %v328_v28, %v336_v32 }
 0x1d4   :  { %v343_v37 = vsel %vm335_vm8, %v331_v31, %v339_v35  ;;  %v348_v38 = vrot.slane %v341_v36, 4  ;;  %v342_v41 = vsel %vm334_vm11, %v330_v30, %v338_v34 }
 0x1d5   :  { %v349_v40 = vrot.slane %v343_v37, 4 }
 0x1d6   :  { %v350_v42 = vsel %vm280_vm1, %v340_v39, %v348_v38 }
 0x1d7   :  { %v351_v43 = vsel %vm280_vm1, %v342_v41, %v349_v40  ;;  %354 = vst [vmem:[%s719_s2] sm:$0xff] %v350_v42 }
 0x1d8   :  { %357 = vst.msk [vmem:[%s719_s2 + $0x8] sm:$0xff] %vm356_vm12, %v351_v43 }

// kernel: ae_forward.7
= control target key start
LH: loop header
LB: loop body
LE: loop exit
PB: predicated region body
PF: predicated region fallthrough
CT: control target
= control target key end

     0   :  { %vm48_vm0 = vcmask 1043456   ;;  %vm45_vm1 = vcmask 556032   ;;  %vm104_vm2 = vcmask 1041408   ;;  %vm100_vm4 = vcmask 15360   ;;  %s561_s1 = inlined_call_operand.vmem [shape: f32[196,2], index: 1, kind: input, shape index: {}]   ;;  %s562_s0 = inlined_call_operand.vmem [shape: f32[2,196], index: 0, kind: input, shape index: {}]   ;;  %s563_s2 = inlined_call_operand.vmem [shape: f32[2,256], index: 2, kind: input, shape index: {}]   ;;  %s564_s3 = inlined_call_operand.vmem [shape: f32[2,256], index: 3, kind: output, shape index: {}]  }
   0x1   :  { %v30_v0 = vld [vmem:[%s561_s1 + $0x78] sm:$0xff]  ;;  %v29_v1 = vld [vmem:[%s561_s1 + $0x70] sm:$0xff]  ;;  %v28_v2 = vld [vmem:[%s561_s1 + $0x68] sm:$0xff]  ;;  %vm149_vm5 = vcmask 517120   ;;  %v375_v40 = vmov 64.0   ;;  %v376_v44 = vmov 2.0  }
   0x2   :  { %52 = vmatpush.msra.mxu0 %v30_v0  ;;  %v39_v3 = vld [vmem:[%s561_s1 + $0xc0] sm:$0xf]  ;;  %v38_v4 = vld [vmem:[%s561_s1 + $0xb8] sm:$0xff]  ;;  %v37_v6 = vld [vmem:[%s561_s1 + $0xb0] sm:$0xff]  ;;  %362 = vrcp.f32 %v375_v40 }
   0x3   :  { %353 = vmatpush.msk.msra.mxu1 %vm48_vm0, %v39_v3  ;;  %v27_v5 = vld [vmem:[%s561_s1 + $0x60] sm:$0xff]  ;;  %v26_v7 = vld [vmem:[%s561_s1 + $0x58] sm:$0xff]  ;;  %v36_v8 = vld [vmem:[%s561_s1 + $0xa8] sm:$0xff]  ;;  %364 = vrcp.f32 %v376_v44 }
   0x4   :  { %53 = vmatpush.msra.mxu0 %v29_v1  ;;  %v25_v9 = vld [vmem:[%s561_s1 + $0x50] sm:$0xff]  ;;  %v35_v10 = vld [vmem:[%s561_s1 + $0xa0] sm:$0xff]  ;;  %v24_v12 = vld [vmem:[%s561_s1 + $0x48] sm:$0xff] }
   0x5   :  { %80 = vmatpush.msra.mxu1 %v38_v4  ;;  %v14_v11 = vld [vmem:[%s562_s0] sm:$0xf]  ;;  %v34_v13 = vld [vmem:[%s561_s1 + $0x98] sm:$0xff]  ;;  %v33_v15 = vld [vmem:[%s561_s1 + $0x90] sm:$0xff] }
   0x6   :  { %54 = vmatpush.msra.mxu0 %v28_v2  ;;  %41 = vst [vmem:[#allocation1] ss:$4 sm:$0xff] %v14_v11  ;;  %v23_v14 = vld [vmem:[%s561_s1 + $0x40] sm:$0xff]  ;;  %v22_v16 = vld [vmem:[%s561_s1 + $0x38] sm:$0xff]  ;;  %v32_v17 = vld [vmem:[%s561_s1 + $0x88] sm:$0xff] }
   0x7   :  { %81 = vmatpush.msra.mxu1 %v37_v6  ;;  %v95_v18 = vld [vmem:[%s563_s2] sm:$0xf]  ;;  %v21_v19 = vld [vmem:[%s561_s1 + $0x30] sm:$0xff]  ;;  %v20_v23 = vld [vmem:[%s561_s1 + $0x28] sm:$0xff] }
   0x8   :  { %55 = vmatpush.msra.mxu0 %v27_v5  ;;  %v31_v20 = vld [vmem:[%s561_s1 + $0x80] sm:$0xff]  ;;  %v18_v25 = vld [vmem:[%s561_s1 + $0x18] sm:$0xff]  ;;  %v17_v26 = vld [vmem:[%s561_s1 + $0x10] sm:$0xff]  ;;  %v363_v41 = vpop.eup %362 }
   0x9   :  { %82 = vmatpush.msra.mxu1 %v36_v8  ;;  %v19_v24 = vld [vmem:[%s561_s1 + $0x20] sm:$0xff]  ;;  %v16_v27 = vld [vmem:[%s561_s1 + $0x8] sm:$0xff]  ;;  %v154_v42 = vmul.f32 64.0, %v363_v41  ;;  %v365_v46 = vpop.eup %364  ;;  %vm158_vm6 = vweird.f32 %v363_v41 }
   0xa   :  { %56 = vmatpush.msra.mxu0 %v26_v7  ;;  %v15_v28 = vld [vmem:[%s561_s1] sm:$0xff]  ;;  %s374_s1 = smov 64   ;;  %v169_v48 = vmul.f32 2.0, %v365_v46  ;;  %vm173_vm7 = vweird.f32 %v365_v46 }
   0xb   :  { %83 = vmatpush.msra.mxu1 %v35_v10  ;;  %v155_v43 = vsub.f32 1.0, %v154_v42 }
   0xc   :  { %57 = vmatpush.msra.mxu0 %v25_v9  ;;  %v170_v54 = vsub.f32 1.0, %v169_v48 }
   0xd   :  { %84 = vmatpush.msra.mxu1 %v34_v13  ;;  %v42_v21 = vld.sshfl [vmem:[#allocation1] sm:$0xff pattern:$0x73625140]  ;;  %v43_v22 = vld.sshfl [vmem:[#allocation1 + $0x8] sm:$0xff pattern:$0x73625140]  ;;  %v156_v45 = vmul.f32 %v363_v41, %v155_v43 }
   0xe   :  { %58 = vmatpush.msra.mxu0 %v24_v12  ;;  %97 = vst [vmem:[#allocation1] ss:$4 sm:$0xff] %v95_v18  ;;  %v171_v57 = vmul.f32 %v365_v46, %v170_v54 }
   0xf   :  { %85 = vmatpush.msra.mxu1 %v33_v15  ;;  %v157_v47 = vadd.f32 %v363_v41, %v156_v45 }
  0x10   :  { %59 = vmatpush.msra.mxu0 %v23_v14  ;;  %v172_v62 = vadd.f32 %v365_v46, %v171_v57 }
  0x11   :  { %86 = vmatpush.msra.mxu1 %v32_v17  ;;  %v492_v50 = vsel %vm158_vm6, %v363_v41, %v157_v47 }
  0x12   :  { %60 = vmatpush.msra.mxu0 %v22_v16  ;;  %v498_v1 = vsel %vm173_vm7, %v365_v46, %v172_v62 }
  0x13   :  { %87 = vmatpush.msra.mxu1 %v31_v20 }
  0x14   :  { %61 = vmatpush.msra.mxu0 %v21_v19  ;;  %354 = vmatmul.msk.f32.vlgmr.msra.gmra.mxu1 %vm45_vm1, %v43_v22 }
  0x15   :  { %v98_v29 = vld.sshfl [vmem:[#allocation1] sm:$0xff pattern:$0x73625140]  ;;  %v99_v30 = vld.sshfl [vmem:[#allocation1 + $0x8] sm:$0xff pattern:$0x73625140] }
  0x16   :  { %62 = vmatpush.msra.mxu0 %v20_v23  ;;  %355 = vmatpush.msk.msra.mxu2 %vm104_vm2, %v98_v29 }
  0x17   :  { %357 = vmatpush.msk.msra.mxu3 %vm104_vm2, %v99_v30 }
  0x18   :  { %63 = vmatpush.msra.mxu0 %v19_v24 }
  0x1a   :  { %64 = vmatpush.msra.mxu0 %v18_v25 }
  0x1c   :  { %65 = vmatpush.msra.mxu0 %v17_v26 }
  0x1e   :  { %66 = vmatpush.msra.mxu0 %v16_v27 }
  0x20   :  { %67 = vmatpush.msra.mxu0 %v15_v28 }
  0x21   :  { %68 = vmatmul.f32.vlgmr.msra.gmra.mxu0 %v42_v21 }
  0x91   :  { %v89_v31 = vpop.f32.mrf.mxu1 }
  0x9e   :  { %v69_v32 = vpop.f32.mrf.mxu0 }
  0x9f   :  { %v90_v33 = vadd.f32 %v89_v31, %v69_v32 }
  0xa1   :  { %v93_v34 = vmul.f32 0.01, %v90_v33  ;;  %vm92_vm3 = vcmp.ge.f32.partialorder %v90_v33, 0.0 }
  0xa3   :  { %v94_v35 = vsel %vm92_vm3, %v90_v33, %v93_v34  ;;  %vm255_vm3 = vcmask 1041920  }
  0xa4   :  { %356 = vmatmul.msk.f32.vlgmr.msra.gmra.mxu2 %vm100_vm4, %v94_v35  ;;  %358 = vmatmul.msk.f32.vlgmr.msra.gmra.mxu3 %vm100_vm4, %v94_v35 }
 0x127   :  { %v480_v36 = vpop.f32.mrf.mxu2  ;;  %v486_v38 = vpop.f32.mrf.mxu3 }
 0x128   :  { %207 = vrot.lane.b32.xlu0 %v480_v36, %s374_s1  ;;  %v150_v37 = vsel %vm149_vm5, %v480_v36, 0.0  ;;  %v257_v39 = vsel %vm149_vm5, %v486_v38, 0.0 }
 0x129   :  { %151 = vadd.xlane.f32.xlu2 %v150_v37 }
 0x130   :  { %300 = vrot.lane.b32.xlu0 %v486_v38, %s374_s1 }
 0x131   :  { %258 = vadd.xlane.f32.xlu2 %v257_v39 }
 0x19a   :  { %v208_v49 = vpop.permute.xlu0 %207 }
 0x19b   :  { %v210_v51 = vsel %vm149_vm5, %v208_v49, 0.0 }
 0x19c   :  { %211 = vadd.xlane.f32.xlu1 %v210_v51  ;;  %v152_v52 = vpop.xlane.xlu2 %151 }
 0x19d   :  { %v160_v53 = vmul.f32 %v492_v50, %v152_v52 }
 0x19f   :  { %v161_v55 = vsel %vm104_vm2, %v160_v53, 0.0 }
 0x1a0   :  { %v162_v56 = vrot.slane %v161_v55, 4 }
 0x1a2   :  { %v163_v58 = vadd.f32 %v162_v56, %v161_v55  ;;  %v301_v59 = vpop.permute.xlu0 %300 }
 0x1a3   :  { %v303_v60 = vsel %vm149_vm5, %v301_v59, 0.0 }
 0x1a4   :  { %v164_v61 = vrot.slane %v163_v58, 2  ;;  %304 = vadd.xlane.f32.xlu1 %v303_v60  ;;  %v259_v21 = vpop.xlane.xlu2 %258 }
 0x1a5   :  { %v260_v26 = vmul.f32 %v259_v21, %v492_v50 }
 0x1a6   :  { %v165_v63 = vadd.f32 %v164_v61, %v163_v58 }
 0x1a7   :  { %v261_v31 = vsel %vm104_vm2, %v260_v26, 0.0 }
 0x1a8   :  { %v166_v0 = vrot.slane %v165_v63, 1 }
 0x1aa   :  { %v167_v2 = vadd.f32 %v166_v0, %v165_v63 }
 0x1ac   :  { %v175_v3 = vmul.f32 %v498_v1, %v167_v2 }
 0x1ae   :  { %v502_v4 = vsub.f32 %v480_v36, %v175_v3 }
 0x1b0   :  { %v177_v5 = vmul.f32 %v502_v4, %v502_v4 }
 0x1b2   :  { %v178_v6 = vsel %vm149_vm5, %v177_v5, 0.0 }
 0x1b3   :  { %179 = vadd.xlane.f32.xlu2 %v178_v6 }
 0x20f   :  { %v212_v7 = vpop.xlane.xlu1 %211 }
 0x210   :  { %v213_v8 = vmul.f32 %v212_v7, %v492_v50 }
 0x212   :  { %v214_v9 = vsel %vm104_vm2, %v213_v8, 0.0 }
 0x213   :  { %v215_v10 = vrot.slane %v214_v9, 4 }
 0x215   :  { %v216_v11 = vadd.f32 %v215_v10, %v214_v9 }
 0x217   :  { %v217_v12 = vrot.slane %v216_v11, 2  ;;  %v305_v13 = vpop.xlane.xlu1 %304 }
 0x218   :  { %v306_v14 = vmul.f32 %v305_v13, %v492_v50 }
 0x219   :  { %v218_v15 = vadd.f32 %v217_v12, %v216_v11 }
 0x21a   :  { %v307_v16 = vsel %vm104_vm2, %v306_v14, 0.0 }
 0x21b   :  { %v219_v17 = vrot.slane %v218_v15, 1  ;;  %v308_v18 = vrot.slane %v307_v16, 4 }
 0x21d   :  { %v220_v19 = vadd.f32 %v219_v17, %v218_v15  ;;  %v309_v20 = vadd.f32 %v308_v18, %v307_v16 }
 0x21f   :  { %v310_v22 = vrot.slane %v309_v20, 2  ;;  %v221_v23 = vmul.f32 %v220_v19, %v498_v1 }
 0x221   :  { %v311_v24 = vadd.f32 %v310_v22, %v309_v20  ;;  %v513_v25 = vsub.f32 %v480_v36, %v221_v23  ;;  %v262_v36 = vrot.slane %v261_v31, 4 }
 0x223   :  { %v312_v27 = vrot.slane %v311_v24, 1  ;;  %v223_v28 = vmul.f32 %v513_v25, %v513_v25  ;;  %v263_v41 = vadd.f32 %v262_v36, %v261_v31 }
 0x225   :  { %v313_v29 = vadd.f32 %v312_v27, %v311_v24  ;;  %225 = vrot.lane.b32.xlu0 %v223_v28, %s374_s1  ;;  %v264_v44 = vrot.slane %v263_v41, 2 }
 0x226   :  { %v180_v30 = vpop.xlane.xlu2 %179 }
 0x227   :  { %v181_v32 = vmul.f32 %v180_v30, %v492_v50  ;;  %v314_v33 = vmul.f32 %v313_v29, %v498_v1  ;;  %v265_v47 = vadd.f32 %v264_v44, %v263_v41 }
 0x229   :  { %v182_v34 = vsel %vm104_vm2, %v181_v32, 0.0  ;;  %v524_v35 = vsub.f32 %v486_v38, %v314_v33  ;;  %v266_v51 = vrot.slane %v265_v47, 1 }
 0x22a   :  { %v183_v37 = vrot.slane %v182_v34, 4 }
 0x22b   :  { %v316_v39 = vmul.f32 %v524_v35, %v524_v35  ;;  %v267_v52 = vadd.f32 %v266_v51, %v265_v47 }
 0x22c   :  { %v184_v40 = vadd.f32 %v183_v37, %v182_v34 }
 0x22d   :  { %318 = vrot.lane.b32.xlu1 %v316_v39, %s374_s1  ;;  %v268_v55 = vmul.f32 %v267_v52, %v498_v1 }
 0x22e   :  { %v185_v42 = vrot.slane %v184_v40, 2 }
 0x22f   :  { %v269_v58 = vsub.f32 %v486_v38, %v268_v55 }
 0x230   :  { %v186_v43 = vadd.f32 %v185_v42, %v184_v40 }
 0x231   :  { %v270_v61 = vmul.f32 %v269_v58, %v269_v58 }
 0x232   :  { %v187_v45 = vrot.slane %v186_v43, 1 }
 0x233   :  { %v271_v2 = vsel %vm149_vm5, %v270_v61, 0.0 }
 0x234   :  { %v188_v46 = vadd.f32 %v187_v45, %v186_v43 }
 0x236   :  { %v189_v48 = vmul.f32 %v188_v46, %v498_v1 }
 0x238   :  { %v190_v49 = vadd.f32 0.0001, %v189_v48 }
 0x23a   :  { %366 = vrsqrt.f32 %v190_v49  ;;  %vm197_vm9 = vweird.f32 %v190_v49 }
 0x240   :  { %v367_v53 = vpop.eup %366 }
 0x241   :  { %v192_v54 = vmul.f32 %v367_v53, %v190_v49  ;;  %vm198_vm8 = vweird.f32 %v367_v53 }
 0x242   :  { %vm199_vm10 = vmor %vm197_vm9, %vm198_vm8 }
 0x243   :  { %v193_v56 = vmul.f32 %v367_v53, %v192_v54 }
 0x245   :  { %v194_v57 = vmul.f32 0.5, %v193_v56 }
 0x247   :  { %v195_v59 = vsub.f32 1.5, %v194_v57 }
 0x249   :  { %v196_v60 = vmul.f32 %v367_v53, %v195_v59 }
 0x24b   :  { %v200_v62 = vsel %vm199_vm10, %v367_v53, %v196_v60 }
 0x24c   :  { %v201_v63 = vmul.f32 %v200_v62, %v502_v4 }
 0x24e   :  { %vm202_vm11 = vcmp.ge.f32.partialorder %v201_v63, 0.0  ;;  %v203_v0 = vmul.f32 0.01, %v201_v63 }
 0x24f   :  { %272 = vadd.xlane.f32.xlu0 %v271_v2 }
 0x250   :  { %v204_v3 = vsel %vm202_vm11, %v201_v63, %v203_v0 }
 0x251   :  { %205 = vst.msk [vmem:[%s564_s3] sm:$0x3] %vm149_vm5, %v204_v3 }
 0x297   :  { %v226_v38 = vpop.permute.xlu0 %225 }
 0x298   :  { %v228_v5 = vsel %vm149_vm5, %v226_v38, 0.0 }
 0x299   :  { %229 = vadd.xlane.f32.xlu2 %v228_v5 }
 0x29f   :  { %v319_v6 = vpop.permute.xlu1 %318 }
 0x2a0   :  { %v321_v7 = vsel %vm149_vm5, %v319_v6, 0.0 }
 0x2a1   :  { %322 = vadd.xlane.f32.xlu2 %v321_v7 }
 0x2c2   :  { %v273_v4 = vpop.xlane.xlu0 %272 }
 0x2c3   :  { %v274_v8 = vmul.f32 %v273_v4, %v492_v50 }
 0x2c5   :  { %v275_v9 = vsel %vm104_vm2, %v274_v8, 0.0 }
 0x2c6   :  { %v276_v10 = vrot.slane %v275_v9, 4 }
 0x2c8   :  { %v277_v11 = vadd.f32 %v276_v10, %v275_v9 }
 0x2ca   :  { %v278_v12 = vrot.slane %v277_v11, 2 }
 0x2cc   :  { %v279_v13 = vadd.f32 %v278_v12, %v277_v11 }
 0x2ce   :  { %v280_v14 = vrot.slane %v279_v13, 1 }
 0x2d0   :  { %v281_v15 = vadd.f32 %v280_v14, %v279_v13 }
 0x2d2   :  { %v282_v16 = vmul.f32 %v281_v15, %v498_v1 }
 0x2d4   :  { %v283_v17 = vadd.f32 0.0001, %v282_v16 }
 0x2d6   :  { %368 = vrsqrt.f32 %v283_v17  ;;  %vm290_vm13 = vweird.f32 %v283_v17 }
 0x2dc   :  { %v369_v18 = vpop.eup %368 }
 0x2dd   :  { %v285_v19 = vmul.f32 %v369_v18, %v283_v17  ;;  %vm291_vm12 = vweird.f32 %v369_v18 }
 0x2de   :  { %vm292_vm14 = vmor %vm290_vm13, %vm291_vm12 }
 0x2df   :  { %v286_v20 = vmul.f32 %v369_v18, %v285_v19 }
 0x2e1   :  { %v287_v21 = vmul.f32 0.5, %v286_v20 }
 0x2e3   :  { %v288_v22 = vsub.f32 1.5, %v287_v21 }
 0x2e5   :  { %v289_v23 = vmul.f32 %v369_v18, %v288_v22 }
 0x2e7   :  { %v293_v24 = vsel %vm292_vm14, %v369_v18, %v289_v23 }
 0x2e8   :  { %v294_v26 = vmul.f32 %v293_v24, %v269_v58 }
 0x2ea   :  { %vm295_vm15 = vcmp.ge.f32.partialorder %v294_v26, 0.0  ;;  %v296_v27 = vmul.f32 0.01, %v294_v26 }
 0x2ec   :  { %v297_v28 = vsel %vm295_vm15, %v294_v26, %v296_v27 }
 0x2ed   :  { %298 = vst.msk [vmem:[%s564_s3 + $0x2] sm:$0x3] %vm149_vm5, %v297_v28 }
 0x30c   :  { %v230_v29 = vpop.xlane.xlu2 %229 }
 0x30d   :  { %v231_v30 = vmul.f32 %v230_v29, %v492_v50 }
 0x30f   :  { %v232_v31 = vsel %vm104_vm2, %v231_v30, 0.0 }
 0x310   :  { %v233_v32 = vrot.slane %v232_v31, 4 }
 0x312   :  { %v234_v33 = vadd.f32 %v233_v32, %v232_v31 }
 0x314   :  { %v235_v34 = vrot.slane %v234_v33, 2  ;;  %v323_v36 = vpop.xlane.xlu2 %322 }
 0x315   :  { %v324_v37 = vmul.f32 %v323_v36, %v492_v50 }
 0x316   :  { %v236_v39 = vadd.f32 %v235_v34, %v234_v33 }
 0x317   :  { %v325_v40 = vsel %vm104_vm2, %v324_v37, 0.0 }
 0x318   :  { %v237_v41 = vrot.slane %v236_v39, 1  ;;  %v326_v42 = vrot.slane %v325_v40, 4 }
 0x31a   :  { %v238_v43 = vadd.f32 %v237_v41, %v236_v39  ;;  %v327_v44 = vadd.f32 %v326_v42, %v325_v40 }
 0x31c   :  { %v239_v45 = vmul.f32 %v238_v43, %v498_v1  ;;  %v328_v46 = vrot.slane %v327_v44, 2 }
 0x31e   :  { %v240_v47 = vadd.f32 0.0001, %v239_v45  ;;  %v329_v48 = vadd.f32 %v328_v46, %v327_v44 }
 0x320   :  { %370 = vrsqrt.f32 %v240_v47  ;;  %v330_v49 = vrot.slane %v329_v48, 1  ;;  %vm247_vm1 = vweird.f32 %v240_v47 }
 0x322   :  { %v331_v51 = vadd.f32 %v330_v49, %v329_v48 }
 0x324   :  { %v332_v52 = vmul.f32 %v331_v51, %v498_v1 }
 0x326   :  { %v371_v53 = vpop.eup %370  ;;  %v333_v54 = vadd.f32 0.0001, %v332_v52 }
 0x327   :  { %v242_v50 = vmul.f32 %v371_v53, %v240_v47  ;;  %vm248_vm0 = vweird.f32 %v371_v53 }
 0x328   :  { %372 = vrsqrt.f32 %v333_v54  ;;  %vm249_vm2 = vmor %vm247_vm1, %vm248_vm0  ;;  %vm340_vm6 = vweird.f32 %v333_v54 }
 0x329   :  { %v243_v55 = vmul.f32 %v371_v53, %v242_v50 }
 0x32b   :  { %v244_v56 = vmul.f32 0.5, %v243_v55 }
 0x32d   :  { %v245_v57 = vsub.f32 1.5, %v244_v56 }
 0x32e   :  { %v373_v58 = vpop.eup %372 }
 0x32f   :  { %v246_v59 = vmul.f32 %v371_v53, %v245_v57  ;;  %v335_v60 = vmul.f32 %v373_v58, %v333_v54  ;;  %vm341_vm5 = vweird.f32 %v373_v58 }
 0x330   :  { %vm342_vm7 = vmor %vm340_vm6, %vm341_vm5 }
 0x331   :  { %v250_v61 = vsel %vm249_vm2, %v371_v53, %v246_v59  ;;  %v336_v62 = vmul.f32 %v373_v58, %v335_v60 }
 0x332   :  { %v251_v63 = vmul.f32 %v250_v61, %v513_v25 }
 0x333   :  { %v337_v0 = vmul.f32 0.5, %v336_v62 }
 0x334   :  { %vm252_vm4 = vcmp.ge.f32.partialorder %v251_v63, 0.0  ;;  %v253_v1 = vmul.f32 0.01, %v251_v63 }
 0x335   :  { %v338_v2 = vsub.f32 1.5, %v337_v0 }
 0x336   :  { %v254_v3 = vsel %vm252_vm4, %v251_v63, %v253_v1 }
 0x337   :  { %256 = vst.msk [vmem:[%s564_s3] sm:$0x3] %vm255_vm3, %v254_v3  ;;  %v339_v38 = vmul.f32 %v373_v58, %v338_v2 }
 0x339   :  { %v343_v5 = vsel %vm342_vm7, %v373_v58, %v339_v38 }
 0x33a   :  { %v344_v6 = vmul.f32 %v343_v5, %v524_v35 }
 0x33c   :  { %vm345_vm8 = vcmp.ge.f32.partialorder %v344_v6, 0.0  ;;  %v346_v7 = vmul.f32 0.01, %v344_v6 }
 0x33e   :  { %v347_v25 = vsel %vm345_vm8, %v344_v6, %v346_v7 }
 0x33f   :  { %348 = vst.msk [vmem:[%s564_s3 + $0x2] sm:$0x3] %vm255_vm3, %v347_v25 }

// kernel: ae_forward.8
= control target key start
LH: loop header
LB: loop body
LE: loop exit
PB: predicated region body
PF: predicated region fallthrough
CT: control target
= control target key end

     0   :  { %vm68_vm0 = vcmask 1043456   ;;  %vm64_vm1 = vcmask 818176   ;;  %vm163_vm2 = vcmask 64512   ;;  %v239_v61 = vmov 392.0   ;;  %s429_s1 = inlined_call_operand.vmem [shape: f32[100,392], index: 1, kind: input, shape index: {}]   ;;  %s430_s0 = inlined_call_operand.vmem [shape: f32[8,100], index: 0, kind: input, shape index: {}]   ;;  %s431_s2 = inlined_call_operand.vmem [shape: f32[8,392], index: 2, kind: output, shape index: {}]  }
   0x1   :  { %v62_v0 = vld [vmem:[%s429_s1 + $0x190] sm:$0xf]  ;;  %v63_v1 = vld [vmem:[%s429_s1 + $0x198] sm:$0xf]  ;;  %v60_v4 = vld [vmem:[%s429_s1 + $0x180] sm:$0xf]  ;;  %235 = vrcp.f32 %v239_v61 }
   0x2   :  { %v58_v2 = vld [vmem:[%s429_s1 + $0x170] sm:$0xff]  ;;  %230 = vmatpush.msk.msra.mxu2 %vm68_vm0, %v62_v0  ;;  %232 = vmatpush.msk.msra.mxu3 %vm68_vm0, %v63_v1  ;;  %v59_v3 = vld [vmem:[%s429_s1 + $0x178] sm:$0xff]  ;;  %v61_v5 = vld [vmem:[%s429_s1 + $0x188] sm:$0xf] }
   0x3   :  { %226 = vmatpush.msk.msra.mxu0 %vm68_vm0, %v60_v4  ;;  %228 = vmatpush.msk.msra.mxu1 %vm68_vm0, %v61_v5  ;;  %v54_v6 = vld [vmem:[%s429_s1 + $0x150] sm:$0xff]  ;;  %v55_v7 = vld [vmem:[%s429_s1 + $0x158] sm:$0xff]  ;;  %v56_v8 = vld [vmem:[%s429_s1 + $0x160] sm:$0xff] }
   0x4   :  { %125 = vmatpush.msra.mxu2 %v58_v2  ;;  %145 = vmatpush.msra.mxu3 %v59_v3  ;;  %v57_v9 = vld [vmem:[%s429_s1 + $0x168] sm:$0xff]  ;;  %v50_v10 = vld [vmem:[%s429_s1 + $0x130] sm:$0xff]  ;;  %v51_v11 = vld [vmem:[%s429_s1 + $0x138] sm:$0xff] }
   0x5   :  { %85 = vmatpush.msra.mxu0 %v56_v8  ;;  %105 = vmatpush.msra.mxu1 %v57_v9  ;;  %v52_v12 = vld [vmem:[%s429_s1 + $0x140] sm:$0xff]  ;;  %v53_v13 = vld [vmem:[%s429_s1 + $0x148] sm:$0xff]  ;;  %v46_v16 = vld [vmem:[%s429_s1 + $0x110] sm:$0xff] }
   0x6   :  { %126 = vmatpush.msra.mxu2 %v54_v6  ;;  %146 = vmatpush.msra.mxu3 %v55_v7  ;;  %v48_v14 = vld [vmem:[%s429_s1 + $0x120] sm:$0xff]  ;;  %v49_v15 = vld [vmem:[%s429_s1 + $0x128] sm:$0xff]  ;;  %v47_v17 = vld [vmem:[%s429_s1 + $0x118] sm:$0xff] }
   0x7   :  { %86 = vmatpush.msra.mxu0 %v52_v12  ;;  %106 = vmatpush.msra.mxu1 %v53_v13  ;;  %v44_v18 = vld [vmem:[%s429_s1 + $0x100] sm:$0xff]  ;;  %v45_v19 = vld [vmem:[%s429_s1 + $0x108] sm:$0xff]  ;;  %v42_v20 = vld [vmem:[%s429_s1 + $0xf0] sm:$0xff]  ;;  %v236_v62 = vpop.eup %235 }
   0x8   :  { %127 = vmatpush.msra.mxu2 %v50_v10  ;;  %147 = vmatpush.msra.mxu3 %v51_v11  ;;  %v43_v21 = vld [vmem:[%s429_s1 + $0xf8] sm:$0xff]  ;;  %v40_v22 = vld [vmem:[%s429_s1 + $0xe0] sm:$0xff]  ;;  %v41_v23 = vld [vmem:[%s429_s1 + $0xe8] sm:$0xff]  ;;  %v169_v63 = vmul.f32 392.0, %v236_v62  ;;  %vm173_vm3 = vweird.f32 %v236_v62 }
   0x9   :  { %87 = vmatpush.msra.mxu0 %v48_v14  ;;  %107 = vmatpush.msra.mxu1 %v49_v15  ;;  %v38_v24 = vld [vmem:[%s429_s1 + $0xd0] sm:$0xff]  ;;  %v39_v25 = vld [vmem:[%s429_s1 + $0xd8] sm:$0xff]  ;;  %v36_v26 = vld [vmem:[%s429_s1 + $0xc0] sm:$0xff] }
   0xa   :  { %128 = vmatpush.msra.mxu2 %v46_v16  ;;  %148 = vmatpush.msra.mxu3 %v47_v17  ;;  %v37_v27 = vld [vmem:[%s429_s1 + $0xc8] sm:$0xff]  ;;  %v34_v28 = vld [vmem:[%s429_s1 + $0xb0] sm:$0xff]  ;;  %v35_v29 = vld [vmem:[%s429_s1 + $0xb8] sm:$0xff]  ;;  %v170_v0 = vsub.f32 1.0, %v169_v63 }
   0xb   :  { %88 = vmatpush.msra.mxu0 %v44_v18  ;;  %108 = vmatpush.msra.mxu1 %v45_v19  ;;  %v32_v30 = vld [vmem:[%s429_s1 + $0xa0] sm:$0xff]  ;;  %v33_v31 = vld [vmem:[%s429_s1 + $0xa8] sm:$0xff]  ;;  %v30_v32 = vld [vmem:[%s429_s1 + $0x90] sm:$0xff] }
   0xc   :  { %129 = vmatpush.msra.mxu2 %v42_v20  ;;  %149 = vmatpush.msra.mxu3 %v43_v21  ;;  %v31_v33 = vld [vmem:[%s429_s1 + $0x98] sm:$0xff]  ;;  %v28_v34 = vld [vmem:[%s429_s1 + $0x80] sm:$0xff]  ;;  %v29_v35 = vld [vmem:[%s429_s1 + $0x88] sm:$0xff]  ;;  %v171_v1 = vmul.f32 %v236_v62, %v170_v0 }
   0xd   :  { %89 = vmatpush.msra.mxu0 %v40_v22  ;;  %109 = vmatpush.msra.mxu1 %v41_v23  ;;  %v26_v36 = vld [vmem:[%s429_s1 + $0x70] sm:$0xff]  ;;  %v27_v37 = vld [vmem:[%s429_s1 + $0x78] sm:$0xff]  ;;  %v24_v38 = vld [vmem:[%s429_s1 + $0x60] sm:$0xff] }
   0xe   :  { %130 = vmatpush.msra.mxu2 %v38_v24  ;;  %150 = vmatpush.msra.mxu3 %v39_v25  ;;  %v25_v39 = vld [vmem:[%s429_s1 + $0x68] sm:$0xff]  ;;  %v22_v40 = vld [vmem:[%s429_s1 + $0x50] sm:$0xff]  ;;  %v23_v41 = vld [vmem:[%s429_s1 + $0x58] sm:$0xff]  ;;  %v172_v2 = vadd.f32 %v236_v62, %v171_v1 }
   0xf   :  { %90 = vmatpush.msra.mxu0 %v36_v26  ;;  %110 = vmatpush.msra.mxu1 %v37_v27  ;;  %v20_v42 = vld [vmem:[%s429_s1 + $0x40] sm:$0xff]  ;;  %v21_v43 = vld [vmem:[%s429_s1 + $0x48] sm:$0xff]  ;;  %v18_v44 = vld [vmem:[%s429_s1 + $0x30] sm:$0xff] }
  0x10   :  { %131 = vmatpush.msra.mxu2 %v34_v28  ;;  %151 = vmatpush.msra.mxu3 %v35_v29  ;;  %v19_v45 = vld [vmem:[%s429_s1 + $0x38] sm:$0xff]  ;;  %v16_v46 = vld [vmem:[%s429_s1 + $0x20] sm:$0xff]  ;;  %v17_v47 = vld [vmem:[%s429_s1 + $0x28] sm:$0xff]  ;;  %v174_v3 = vsel %vm173_vm3, %v236_v62, %v172_v2 }
  0x11   :  { %91 = vmatpush.msra.mxu0 %v32_v30  ;;  %111 = vmatpush.msra.mxu1 %v33_v31  ;;  %v14_v48 = vld [vmem:[%s429_s1 + $0x10] sm:$0xff]  ;;  %v15_v49 = vld [vmem:[%s429_s1 + $0x18] sm:$0xff]  ;;  %v11_v50 = vld [vmem:[%s430_s0] sm:$0xff] }
  0x12   :  { %132 = vmatpush.msra.mxu2 %v30_v32  ;;  %152 = vmatpush.msra.mxu3 %v31_v33  ;;  %v12_v51 = vld [vmem:[%s429_s1] sm:$0xff]  ;;  %v13_v52 = vld [vmem:[%s429_s1 + $0x8] sm:$0xff] }
  0x13   :  { %92 = vmatpush.msra.mxu0 %v28_v34  ;;  %112 = vmatpush.msra.mxu1 %v29_v35 }
  0x14   :  { %133 = vmatpush.msra.mxu2 %v26_v36  ;;  %153 = vmatpush.msra.mxu3 %v27_v37 }
  0x15   :  { %93 = vmatpush.msra.mxu0 %v24_v38  ;;  %113 = vmatpush.msra.mxu1 %v25_v39 }
  0x16   :  { %134 = vmatpush.msra.mxu2 %v22_v40  ;;  %154 = vmatpush.msra.mxu3 %v23_v41 }
  0x17   :  { %94 = vmatpush.msra.mxu0 %v20_v42  ;;  %114 = vmatpush.msra.mxu1 %v21_v43 }
  0x18   :  { %135 = vmatpush.msra.mxu2 %v18_v44  ;;  %155 = vmatpush.msra.mxu3 %v19_v45 }
  0x19   :  { %95 = vmatpush.msra.mxu0 %v16_v46  ;;  %115 = vmatpush.msra.mxu1 %v17_v47 }
  0x1a   :  { %136 = vmatpush.msra.mxu2 %v14_v48  ;;  %156 = vmatpush.msra.mxu3 %v15_v49 }
  0x1b   :  { %231 = vmatmul.msk.f32.vlgmr.msra.gmra.mxu2 %vm64_vm1, %v11_v50  ;;  %233 = vmatmul.msk.f32.vlgmr.msra.gmra.mxu3 %vm64_vm1, %v11_v50 }
  0x1c   :  { %96 = vmatpush.msra.mxu0 %v12_v51  ;;  %116 = vmatpush.msra.mxu1 %v13_v52 }
  0x1d   :  { %227 = vmatmul.msk.f32.vlgmr.msra.gmra.mxu0 %vm64_vm1, %v11_v50  ;;  %229 = vmatmul.msk.f32.vlgmr.msra.gmra.mxu1 %vm64_vm1, %v11_v50 }
  0x9a   :  { %v98_v53 = vpop.f32.mrf.mxu0  ;;  %v118_v54 = vpop.f32.mrf.mxu1 }
  0x9b   :  { %v161_v55 = vadd.f32 %v118_v54, %v98_v53 }
  0x9e   :  { %v138_v56 = vpop.f32.mrf.mxu2  ;;  %v158_v57 = vpop.f32.mrf.mxu3 }
  0x9f   :  { %v162_v58 = vadd.f32 %v161_v55, %v138_v56  ;;  %v164_v59 = vsel %vm163_vm2, %v158_v57, 0.0 }
  0xa1   :  { %v165_v60 = vadd.f32 %v164_v59, %v162_v58 }
  0xa3   :  { %166 = vadd.xlane.f32.xlu0 %v165_v60 }
 0x116   :  { %v167_v4 = vpop.xlane.xlu0 %166 }
 0x117   :  { %v175_v5 = vmul.f32 %v174_v3, %v167_v4 }
 0x119   :  { %v176_v6 = vsub.f32 %v98_v53, %v175_v5  ;;  %v177_v7 = vsub.f32 %v118_v54, %v175_v5  ;;  %v178_v8 = vsub.f32 %v138_v56, %v175_v5  ;;  %v179_v9 = vsub.f32 %v158_v57, %v175_v5 }
 0x11b   :  { %v180_v10 = vmul.f32 %v176_v6, %v176_v6  ;;  %v181_v11 = vmul.f32 %v177_v7, %v177_v7  ;;  %v183_v12 = vmul.f32 %v179_v9, %v179_v9  ;;  %v182_v13 = vmul.f32 %v178_v8, %v178_v8 }
 0x11d   :  { %v184_v14 = vadd.f32 %v181_v11, %v180_v10  ;;  %v186_v16 = vsel %vm163_vm2, %v183_v12, 0.0 }
 0x11f   :  { %v185_v15 = vadd.f32 %v184_v14, %v182_v13 }
 0x121   :  { %v187_v17 = vadd.f32 %v186_v16, %v185_v15 }
 0x123   :  { %188 = vadd.xlane.f32.xlu0 %v187_v17 }
 0x196   :  { %v189_v18 = vpop.xlane.xlu0 %188 }
 0x197   :  { %v190_v19 = vmul.f32 %v189_v18, %v174_v3 }
 0x199   :  { %v191_v20 = vadd.f32 0.0001, %v190_v19 }
 0x19b   :  { %237 = vrsqrt.f32 %v191_v20  ;;  %vm198_vm5 = vweird.f32 %v191_v20 }
 0x1a1   :  { %v238_v21 = vpop.eup %237 }
 0x1a2   :  { %v193_v22 = vmul.f32 %v238_v21, %v191_v20  ;;  %vm199_vm4 = vweird.f32 %v238_v21 }
 0x1a3   :  { %vm200_vm6 = vmor %vm198_vm5, %vm199_vm4 }
 0x1a4   :  { %v194_v23 = vmul.f32 %v238_v21, %v193_v22 }
 0x1a6   :  { %v195_v24 = vmul.f32 0.5, %v194_v23 }
 0x1a8   :  { %v196_v25 = vsub.f32 1.5, %v195_v24 }
 0x1aa   :  { %v197_v26 = vmul.f32 %v238_v21, %v196_v25 }
 0x1ac   :  { %v201_v27 = vsel %vm200_vm6, %v238_v21, %v197_v26 }
 0x1ad   :  { %v202_v28 = vmul.f32 %v201_v27, %v176_v6  ;;  %v203_v29 = vmul.f32 %v201_v27, %v177_v7  ;;  %v204_v30 = vmul.f32 %v201_v27, %v178_v8  ;;  %v205_v31 = vmul.f32 %v201_v27, %v179_v9 }
 0x1af   :  { %vm206_vm7 = vcmp.ge.f32.partialorder %v202_v28, 0.0  ;;  %vm207_vm8 = vcmp.ge.f32.partialorder %v203_v29, 0.0  ;;  %vm208_vm9 = vcmp.ge.f32.partialorder %v204_v30, 0.0  ;;  %vm209_vm10 = vcmp.ge.f32.partialorder %v205_v31, 0.0 }
 0x1b0   :  { %v210_v32 = vmul.f32 0.01, %v202_v28  ;;  %v211_v33 = vmul.f32 0.01, %v203_v29  ;;  %v212_v34 = vmul.f32 0.01, %v204_v30 }
 0x1b1   :  { %v213_v35 = vmul.f32 0.01, %v205_v31 }
 0x1b2   :  { %v214_v36 = vsel %vm206_vm7, %v202_v28, %v210_v32  ;;  %v215_v37 = vsel %vm207_vm8, %v203_v29, %v211_v33  ;;  %v216_v38 = vsel %vm208_vm9, %v204_v30, %v212_v34 }
 0x1b3   :  { %v217_v39 = vsel %vm209_vm10, %v205_v31, %v213_v35  ;;  %218 = vst [vmem:[%s431_s2] sm:$0xff] %v214_v36 }
 0x1b4   :  { %219 = vst [vmem:[%s431_s2 + $0x8] sm:$0xff] %v215_v37 }
 0x1b5   :  { %220 = vst [vmem:[%s431_s2 + $0x10] sm:$0xff] %v216_v38 }
 0x1b6   :  { %221 = vst.msk [vmem:[%s431_s2 + $0x18] sm:$0xff] %vm163_vm2, %v217_v39 }

// kernel: ae_forward.9
= control target key start
LH: loop header
LB: loop body
LE: loop exit
PB: predicated region body
PF: predicated region fallthrough
CT: control target
= control target key end

     0   :  { %vm341_vm0 = vcmask 588800   ;;  %s2750_s1 = inlined_call_operand.vmem [shape: f32[200,1568], index: 1, kind: input, shape index: {}]   ;;  %s2751_s0 = inlined_call_operand.vmem [shape: f32[1,200], index: 0, kind: input, shape index: {}]   ;;  %s2752_s2 = inlined_call_operand.vmem [shape: f32[1,1568], index: 2, kind: output, shape index: {}]  }
   0x1   :  { %v207_v0 = vld [vmem:[%s2750_s1 + $0x618] sm:$0xff]  ;;  %v324_v1 = vld [vmem:[%s2750_s1 + $0x9c0] sm:$0xff]  ;;  %v325_v3 = vld [vmem:[%s2750_s1 + $0x9c8] sm:$0xff] }
   0x2   :  { %v208_v2 = vld [vmem:[%s2750_s1 + $0x620] sm:$0xff]  ;;  %344 = vmatpush.msra.mxu0 %v207_v0  ;;  %371 = vmatpush.msra.mxu1 %v324_v1  ;;  %v194_v4 = vld [vmem:[%s2750_s1 + $0x5b0] sm:$0xff]  ;;  %v311_v5 = vld [vmem:[%s2750_s1 + $0x958] sm:$0xff] }
   0x3   :  { %384 = vmatpush.msra.mxu2 %v208_v2  ;;  %411 = vmatpush.msra.mxu3 %v325_v3  ;;  %v195_v6 = vld [vmem:[%s2750_s1 + $0x5b8] sm:$0xff]  ;;  %v312_v7 = vld [vmem:[%s2750_s1 + $0x960] sm:$0xff]  ;;  %v181_v8 = vld [vmem:[%s2750_s1 + $0x548] sm:$0xff] }
   0x4   :  { %345 = vmatpush.msra.mxu0 %v194_v4  ;;  %372 = vmatpush.msra.mxu1 %v311_v5  ;;  %v298_v9 = vld [vmem:[%s2750_s1 + $0x8f0] sm:$0xff]  ;;  %v299_v11 = vld [vmem:[%s2750_s1 + $0x8f8] sm:$0xff]  ;;  %v168_v12 = vld [vmem:[%s2750_s1 + $0x4e0] sm:$0xff] }
   0x5   :  { %v182_v10 = vld [vmem:[%s2750_s1 + $0x550] sm:$0xff]  ;;  %385 = vmatpush.msra.mxu2 %v195_v6  ;;  %412 = vmatpush.msra.mxu3 %v312_v7  ;;  %v285_v13 = vld [vmem:[%s2750_s1 + $0x888] sm:$0xff]  ;;  %v155_v16 = vld [vmem:[%s2750_s1 + $0x478] sm:$0xff] }
   0x6   :  { %346 = vmatpush.msra.mxu0 %v181_v8  ;;  %373 = vmatpush.msra.mxu1 %v298_v9  ;;  %v169_v14 = vld [vmem:[%s2750_s1 + $0x4e8] sm:$0xff]  ;;  %v286_v15 = vld [vmem:[%s2750_s1 + $0x890] sm:$0xff]  ;;  %v272_v17 = vld [vmem:[%s2750_s1 + $0x820] sm:$0xff] }
   0x7   :  { %386 = vmatpush.msra.mxu2 %v182_v10  ;;  %413 = vmatpush.msra.mxu3 %v299_v11  ;;  %v156_v18 = vld [vmem:[%s2750_s1 + $0x480] sm:$0xff]  ;;  %v273_v19 = vld [vmem:[%s2750_s1 + $0x828] sm:$0xff]  ;;  %v142_v20 = vld [vmem:[%s2750_s1 + $0x410] sm:$0xff] }
   0x8   :  { %347 = vmatpush.msra.mxu0 %v168_v12  ;;  %374 = vmatpush.msra.mxu1 %v285_v13  ;;  %v259_v21 = vld [vmem:[%s2750_s1 + $0x7b8] sm:$0xff]  ;;  %v260_v23 = vld [vmem:[%s2750_s1 + $0x7c0] sm:$0xff]  ;;  %v129_v24 = vld [vmem:[%s2750_s1 + $0x3a8] sm:$0xff] }
   0x9   :  { %387 = vmatpush.msra.mxu2 %v169_v14  ;;  %414 = vmatpush.msra.mxu3 %v286_v15  ;;  %v143_v22 = vld [vmem:[%s2750_s1 + $0x418] sm:$0xff]  ;;  %v246_v25 = vld [vmem:[%s2750_s1 + $0x750] sm:$0xff]  ;;  %v116_v28 = vld [vmem:[%s2750_s1 + $0x340] sm:$0xff] }
   0xa   :  { %348 = vmatpush.msra.mxu0 %v155_v16  ;;  %375 = vmatpush.msra.mxu1 %v272_v17  ;;  %v130_v26 = vld [vmem:[%s2750_s1 + $0x3b0] sm:$0xff]  ;;  %v247_v27 = vld [vmem:[%s2750_s1 + $0x758] sm:$0xff]  ;;  %v233_v29 = vld [vmem:[%s2750_s1 + $0x6e8] sm:$0xff] }
   0xb   :  { %388 = vmatpush.msra.mxu2 %v156_v18  ;;  %415 = vmatpush.msra.mxu3 %v273_v19  ;;  %v117_v30 = vld [vmem:[%s2750_s1 + $0x348] sm:$0xff]  ;;  %v234_v31 = vld [vmem:[%s2750_s1 + $0x6f0] sm:$0xff]  ;;  %v103_v32 = vld [vmem:[%s2750_s1 + $0x2d8] sm:$0xff] }
   0xc   :  { %349 = vmatpush.msra.mxu0 %v142_v20  ;;  %376 = vmatpush.msra.mxu1 %v259_v21  ;;  %v220_v33 = vld [vmem:[%s2750_s1 + $0x680] sm:$0xff]  ;;  %v221_v35 = vld [vmem:[%s2750_s1 + $0x688] sm:$0xff]  ;;  %v326_v37 = vld [vmem:[%s2750_s1 + $0x9d0] sm:$0xff] }
   0xd   :  { %389 = vmatpush.msra.mxu2 %v143_v22  ;;  %416 = vmatpush.msra.mxu3 %v260_v23  ;;  %v104_v34 = vld [vmem:[%s2750_s1 + $0x2e0] sm:$0xff]  ;;  %v209_v36 = vld [vmem:[%s2750_s1 + $0x628] sm:$0xff]  ;;  %v90_v38 = vld [vmem:[%s2750_s1 + $0x270] sm:$0xff] }
   0xe   :  { %350 = vmatpush.msra.mxu0 %v129_v24  ;;  %377 = vmatpush.msra.mxu1 %v246_v25  ;;  %v91_v39 = vld [vmem:[%s2750_s1 + $0x278] sm:$0xff]  ;;  %v196_v40 = vld [vmem:[%s2750_s1 + $0x5c0] sm:$0xff]  ;;  %v313_v41 = vld [vmem:[%s2750_s1 + $0x968] sm:$0xff] }
   0xf   :  { %390 = vmatpush.msra.mxu2 %v130_v26  ;;  %417 = vmatpush.msra.mxu3 %v247_v27  ;;  %v77_v42 = vld [vmem:[%s2750_s1 + $0x208] sm:$0xff]  ;;  %v78_v43 = vld [vmem:[%s2750_s1 + $0x210] sm:$0xff]  ;;  %v183_v44 = vld [vmem:[%s2750_s1 + $0x558] sm:$0xff] }
  0x10   :  { %351 = vmatpush.msra.mxu0 %v116_v28  ;;  %378 = vmatpush.msra.mxu1 %v233_v29  ;;  %v300_v45 = vld [vmem:[%s2750_s1 + $0x900] sm:$0xff]  ;;  %v65_v47 = vld [vmem:[%s2750_s1 + $0x1a8] sm:$0xff]  ;;  %v170_v48 = vld [vmem:[%s2750_s1 + $0x4f0] sm:$0xff] }
  0x11   :  { %391 = vmatpush.msra.mxu2 %v117_v30  ;;  %418 = vmatpush.msra.mxu3 %v234_v31  ;;  %v64_v46 = vld [vmem:[%s2750_s1 + $0x1a0] sm:$0xff]  ;;  %v287_v49 = vld [vmem:[%s2750_s1 + $0x898] sm:$0xff]  ;;  %v157_v52 = vld [vmem:[%s2750_s1 + $0x488] sm:$0xff] }
  0x12   :  { %352 = vmatpush.msra.mxu0 %v103_v32  ;;  %379 = vmatpush.msra.mxu1 %v220_v33  ;;  %v51_v50 = vld [vmem:[%s2750_s1 + $0x138] sm:$0xff]  ;;  %v52_v51 = vld [vmem:[%s2750_s1 + $0x140] sm:$0xff]  ;;  %v274_v53 = vld [vmem:[%s2750_s1 + $0x830] sm:$0xff] }
  0x13   :  { %392 = vmatpush.msra.mxu2 %v104_v34  ;;  %419 = vmatpush.msra.mxu3 %v221_v35  ;;  %v38_v54 = vld [vmem:[%s2750_s1 + $0xd0] sm:$0xff]  ;;  %v39_v55 = vld [vmem:[%s2750_s1 + $0xd8] sm:$0xff]  ;;  %v144_v56 = vld [vmem:[%s2750_s1 + $0x420] sm:$0xff] }
  0x14   :  { %424 = vmatpush.msrb.mxu1 %v209_v36  ;;  %353 = vmatpush.msra.mxu0 %v90_v38  ;;  %v261_v57 = vld [vmem:[%s2750_s1 + $0x7c8] sm:$0xff]  ;;  %v11_v58 = vld [vmem:[%s2751_s0] sm:$0x3]  ;;  %v26_v60 = vld [vmem:[%s2750_s1 + $0x70] sm:$0xff] }
  0x15   :  { %451 = vmatpush.msrb.mxu3 %v326_v37  ;;  %393 = vmatpush.msra.mxu2 %v91_v39  ;;  %v25_v59 = vld [vmem:[%s2750_s1 + $0x68] sm:$0xff]  ;;  %v131_v61 = vld [vmem:[%s2750_s1 + $0x3b8] sm:$0xff]  ;;  %v248_v62 = vld [vmem:[%s2750_s1 + $0x760] sm:$0xff]  ;;  %v1481_v1 = vperm.slane %v11_v58, 0  ;;  %v1483_v2 = vperm.slane %v11_v58, 1 }
  0x16   :  { %425 = vmatpush.msrb.mxu1 %v196_v40  ;;  %354 = vmatpush.msra.mxu0 %v77_v42  ;;  %v12_v63 = vld [vmem:[%s2750_s1] sm:$0xff]  ;;  %v13_v0 = vld [vmem:[%s2750_s1 + $0x8] sm:$0xff]  ;;  %v118_v3 = vld [vmem:[%s2750_s1 + $0x350] sm:$0xff] }
  0x17   :  { %452 = vmatpush.msrb.mxu3 %v313_v41  ;;  %394 = vmatpush.msra.mxu2 %v78_v43  ;;  %v235_v4 = vld [vmem:[%s2750_s1 + $0x6f8] sm:$0xff]  ;;  %v210_v5 = vld [vmem:[%s2750_s1 + $0x630] sm:$0xff]  ;;  %v105_v7 = vld [vmem:[%s2750_s1 + $0x2e8] sm:$0xff] }
  0x18   :  { %426 = vmatpush.msrb.mxu1 %v183_v44  ;;  %355 = vmatpush.msra.mxu0 %v64_v46  ;;  %v327_v6 = vld [vmem:[%s2750_s1 + $0x9d8] sm:$0xff]  ;;  %v222_v8 = vld [vmem:[%s2750_s1 + $0x690] sm:$0xff]  ;;  %v197_v9 = vld [vmem:[%s2750_s1 + $0x5c8] sm:$0xff] }
  0x19   :  { %453 = vmatpush.msrb.mxu3 %v300_v45  ;;  %395 = vmatpush.msra.mxu2 %v65_v47  ;;  %v314_v10 = vld [vmem:[%s2750_s1 + $0x970] sm:$0xff]  ;;  %v211_v11 = vld [vmem:[%s2750_s1 + $0x638] sm:$0xff]  ;;  %v92_v12 = vld [vmem:[%s2750_s1 + $0x280] sm:$0xff] }
  0x1a   :  { %427 = vmatpush.msrb.mxu1 %v170_v48  ;;  %356 = vmatpush.msra.mxu0 %v51_v50  ;;  %v184_v13 = vld [vmem:[%s2750_s1 + $0x560] sm:$0xff]  ;;  %v301_v14 = vld [vmem:[%s2750_s1 + $0x908] sm:$0xff]  ;;  %v198_v15 = vld [vmem:[%s2750_s1 + $0x5d0] sm:$0xff] }
  0x1b   :  { %454 = vmatpush.msrb.mxu3 %v287_v49  ;;  %396 = vmatpush.msra.mxu2 %v52_v51  ;;  %v79_v16 = vld [vmem:[%s2750_s1 + $0x218] sm:$0xff]  ;;  %v288_v18 = vld [vmem:[%s2750_s1 + $0x8a0] sm:$0xff]  ;;  %v185_v19 = vld [vmem:[%s2750_s1 + $0x568] sm:$0xff] }
  0x1c   :  { %428 = vmatpush.msrb.mxu1 %v157_v52  ;;  %357 = vmatpush.msra.mxu0 %v38_v54  ;;  %v171_v17 = vld [vmem:[%s2750_s1 + $0x4f8] sm:$0xff]  ;;  %v66_v20 = vld [vmem:[%s2750_s1 + $0x1b0] sm:$0xff]  ;;  %v172_v23 = vld [vmem:[%s2750_s1 + $0x500] sm:$0xff] }
  0x1d   :  { %455 = vmatpush.msrb.mxu3 %v274_v53  ;;  %397 = vmatpush.msra.mxu2 %v39_v55  ;;  %v158_v21 = vld [vmem:[%s2750_s1 + $0x490] sm:$0xff]  ;;  %v275_v22 = vld [vmem:[%s2750_s1 + $0x838] sm:$0xff]  ;;  %v53_v24 = vld [vmem:[%s2750_s1 + $0x148] sm:$0xff] }
  0x1e   :  { %429 = vmatpush.msrb.mxu1 %v144_v56  ;;  %358 = vmatpush.msra.mxu0 %v25_v59  ;;  %v145_v25 = vld [vmem:[%s2750_s1 + $0x428] sm:$0xff]  ;;  %v262_v26 = vld [vmem:[%s2750_s1 + $0x7d0] sm:$0xff]  ;;  %v40_v27 = vld [vmem:[%s2750_s1 + $0xe0] sm:$0xff] }
  0x1f   :  { %456 = vmatpush.msrb.mxu3 %v261_v57  ;;  %398 = vmatpush.msra.mxu2 %v26_v60  ;;  %v159_v28 = vld [vmem:[%s2750_s1 + $0x498] sm:$0xff]  ;;  %v132_v29 = vld [vmem:[%s2750_s1 + $0x3c0] sm:$0xff]  ;;  %v249_v30 = vld [vmem:[%s2750_s1 + $0x768] sm:$0xff] }
  0x20   :  { %430 = vmatpush.msrb.mxu1 %v131_v61  ;;  %359 = vmatpush.msra.mxu0 %v12_v63  ;;  %v27_v31 = vld [vmem:[%s2750_s1 + $0x78] sm:$0xff]  ;;  %v146_v32 = vld [vmem:[%s2750_s1 + $0x430] sm:$0xff]  ;;  %v236_v34 = vld [vmem:[%s2750_s1 + $0x700] sm:$0xff] }
  0x21   :  { %457 = vmatpush.msrb.mxu3 %v248_v62  ;;  %399 = vmatpush.msra.mxu2 %v13_v0  ;;  %v119_v33 = vld [vmem:[%s2750_s1 + $0x358] sm:$0xff]  ;;  %v14_v35 = vld [vmem:[%s2750_s1 + $0x10] sm:$0xff]  ;;  %v133_v36 = vld [vmem:[%s2750_s1 + $0x3c8] sm:$0xff] }
  0x22   :  { %360 = vmatmul.f32.vlgmr.msra.gmra.mxu0 %v1481_v1  ;;  %1206 = vmatmul.msk.f32.vlgmr.msra.gmra.mxu1 %vm341_vm0, %v1483_v2  ;;  %v106_v37 = vld [vmem:[%s2750_s1 + $0x2f0] sm:$0xff]  ;;  %v223_v38 = vld [vmem:[%s2750_s1 + $0x698] sm:$0xff]  ;;  %v120_v39 = vld [vmem:[%s2750_s1 + $0x360] sm:$0xff] }
  0x23   :  { %400 = vmatmul.f32.vlgmr.msra.gmra.mxu2 %v1481_v1  ;;  %1207 = vmatmul.msk.f32.vlgmr.msra.gmra.mxu3 %vm341_vm0, %v1483_v2  ;;  %v328_v40 = vld [vmem:[%s2750_s1 + $0x9e0] sm:$0xff]  ;;  %v93_v42 = vld [vmem:[%s2750_s1 + $0x288] sm:$0xff]  ;;  %v107_v43 = vld [vmem:[%s2750_s1 + $0x2f8] sm:$0xff] }
  0x24   :  { %431 = vmatpush.msrb.mxu1 %v118_v3  ;;  %458 = vmatpush.msrb.mxu3 %v235_v4  ;;  %v212_v41 = vld [vmem:[%s2750_s1 + $0x640] sm:$0xff]  ;;  %v315_v44 = vld [vmem:[%s2750_s1 + $0x978] sm:$0xff]  ;;  %v94_v47 = vld [vmem:[%s2750_s1 + $0x290] sm:$0xff] }
  0x25   :  { %464 = vmatpush.msrb.mxu0 %v210_v5  ;;  %491 = vmatpush.msrb.mxu2 %v327_v6  ;;  %v199_v45 = vld [vmem:[%s2750_s1 + $0x5d8] sm:$0xff]  ;;  %v80_v46 = vld [vmem:[%s2750_s1 + $0x220] sm:$0xff]  ;;  %v302_v48 = vld [vmem:[%s2750_s1 + $0x910] sm:$0xff] }
  0x26   :  { %432 = vmatpush.msrb.mxu1 %v105_v7  ;;  %459 = vmatpush.msrb.mxu3 %v222_v8  ;;  %v186_v49 = vld [vmem:[%s2750_s1 + $0x570] sm:$0xff]  ;;  %v67_v50 = vld [vmem:[%s2750_s1 + $0x1b8] sm:$0xff]  ;;  %v81_v51 = vld [vmem:[%s2750_s1 + $0x228] sm:$0xff] }
  0x27   :  { %465 = vmatpush.msrb.mxu0 %v197_v9  ;;  %492 = vmatpush.msrb.mxu2 %v314_v10  ;;  %v289_v52 = vld [vmem:[%s2750_s1 + $0x8a8] sm:$0xff]  ;;  %v54_v54 = vld [vmem:[%s2750_s1 + $0x150] sm:$0xff]  ;;  %v68_v55 = vld [vmem:[%s2750_s1 + $0x1c0] sm:$0xff] }
  0x28   :  { %504 = vmatpush.msra.mxu3 %v211_v11  ;;  %433 = vmatpush.msrb.mxu1 %v92_v12  ;;  %v173_v53 = vld [vmem:[%s2750_s1 + $0x508] sm:$0xff]  ;;  %v276_v56 = vld [vmem:[%s2750_s1 + $0x840] sm:$0xff]  ;;  %v55_v59 = vld [vmem:[%s2750_s1 + $0x158] sm:$0xff] }
  0x29   :  { %466 = vmatpush.msrb.mxu0 %v184_v13  ;;  %493 = vmatpush.msrb.mxu2 %v301_v14  ;;  %v160_v57 = vld [vmem:[%s2750_s1 + $0x4a0] sm:$0xff]  ;;  %v41_v58 = vld [vmem:[%s2750_s1 + $0xe8] sm:$0xff]  ;;  %v263_v60 = vld [vmem:[%s2750_s1 + $0x7d8] sm:$0xff] }
  0x2a   :  { %505 = vmatpush.msra.mxu3 %v198_v15  ;;  %434 = vmatpush.msrb.mxu1 %v79_v16  ;;  %v147_v61 = vld [vmem:[%s2750_s1 + $0x438] sm:$0xff]  ;;  %v28_v62 = vld [vmem:[%s2750_s1 + $0x80] sm:$0xff]  ;;  %v42_v63 = vld [vmem:[%s2750_s1 + $0xf0] sm:$0xff] }
  0x2b   :  { %467 = vmatpush.msrb.mxu0 %v171_v17  ;;  %494 = vmatpush.msrb.mxu2 %v288_v18  ;;  %v250_v0 = vld [vmem:[%s2750_s1 + $0x770] sm:$0xff]  ;;  %v15_v4 = vld [vmem:[%s2750_s1 + $0x18] sm:$0xff]  ;;  %v29_v5 = vld [vmem:[%s2750_s1 + $0x88] sm:$0xff] }
  0x2c   :  { %506 = vmatpush.msra.mxu3 %v185_v19  ;;  %435 = vmatpush.msrb.mxu1 %v66_v20  ;;  %v134_v3 = vld [vmem:[%s2750_s1 + $0x3d0] sm:$0xff]  ;;  %v237_v6 = vld [vmem:[%s2750_s1 + $0x708] sm:$0xff]  ;;  %v16_v9 = vld [vmem:[%s2750_s1 + $0x20] sm:$0xff] }
  0x2d   :  { %468 = vmatpush.msrb.mxu0 %v158_v21  ;;  %495 = vmatpush.msrb.mxu2 %v275_v22  ;;  %v121_v7 = vld [vmem:[%s2750_s1 + $0x368] sm:$0xff]  ;;  %v224_v10 = vld [vmem:[%s2750_s1 + $0x6a0] sm:$0xff]  ;;  %v330_v14 = vld [vmem:[%s2750_s1 + $0x9f0] sm:$0xff] }
  0x2e   :  { %507 = vmatpush.msra.mxu3 %v172_v23  ;;  %436 = vmatpush.msrb.mxu1 %v53_v24  ;;  %v329_v8 = vld [vmem:[%s2750_s1 + $0x9e8] sm:$0xff]  ;;  %v108_v11 = vld [vmem:[%s2750_s1 + $0x300] sm:$0xff]  ;;  %v95_v15 = vld [vmem:[%s2750_s1 + $0x298] sm:$0xff] }
  0x2f   :  { %469 = vmatpush.msrb.mxu0 %v145_v25  ;;  %496 = vmatpush.msrb.mxu2 %v262_v26  ;;  %v316_v12 = vld [vmem:[%s2750_s1 + $0x980] sm:$0xff]  ;;  %v213_v13 = vld [vmem:[%s2750_s1 + $0x648] sm:$0xff]  ;;  %v303_v16 = vld [vmem:[%s2750_s1 + $0x918] sm:$0xff] }
  0x30   :  { %1208 = vmatmul.msk.f32.vlgmr.msrb.gmra.mxu3 %vm341_vm0, %v1483_v2  ;;  %437 = vmatpush.msrb.mxu1 %v40_v27  ;;  %v200_v17 = vld [vmem:[%s2750_s1 + $0x5e0] sm:$0xff]  ;;  %v317_v18 = vld [vmem:[%s2750_s1 + $0x988] sm:$0xff]  ;;  %v82_v19 = vld [vmem:[%s2750_s1 + $0x230] sm:$0xff] }
  0x31   :  { %508 = vmatpush.msra.mxu3 %v159_v28  ;;  %470 = vmatpush.msrb.mxu0 %v132_v29  ;;  %v290_v20 = vld [vmem:[%s2750_s1 + $0x8b0] sm:$0xff]  ;;  %v187_v21 = vld [vmem:[%s2750_s1 + $0x578] sm:$0xff]  ;;  %v304_v22 = vld [vmem:[%s2750_s1 + $0x920] sm:$0xff] }
  0x32   :  { %497 = vmatpush.msrb.mxu2 %v249_v30  ;;  %438 = vmatpush.msrb.mxu1 %v27_v31  ;;  %v69_v23 = vld [vmem:[%s2750_s1 + $0x1c8] sm:$0xff]  ;;  %v174_v25 = vld [vmem:[%s2750_s1 + $0x510] sm:$0xff]  ;;  %v291_v26 = vld [vmem:[%s2750_s1 + $0x8b8] sm:$0xff] }
  0x33   :  { %509 = vmatpush.msra.mxu3 %v146_v32  ;;  %471 = vmatpush.msrb.mxu0 %v119_v33  ;;  %v277_v24 = vld [vmem:[%s2750_s1 + $0x848] sm:$0xff]  ;;  %v56_v27 = vld [vmem:[%s2750_s1 + $0x160] sm:$0xff]  ;;  %v278_v30 = vld [vmem:[%s2750_s1 + $0x850] sm:$0xff] }
  0x34   :  { %498 = vmatpush.msrb.mxu2 %v236_v34  ;;  %439 = vmatpush.msrb.mxu1 %v14_v35  ;;  %v264_v28 = vld [vmem:[%s2750_s1 + $0x7e0] sm:$0xff]  ;;  %v161_v29 = vld [vmem:[%s2750_s1 + $0x4a8] sm:$0xff]  ;;  %v43_v31 = vld [vmem:[%s2750_s1 + $0xf8] sm:$0xff] }
  0x35   :  { %510 = vmatpush.msra.mxu3 %v133_v36  ;;  %472 = vmatpush.msrb.mxu0 %v106_v37  ;;  %v251_v32 = vld [vmem:[%s2750_s1 + $0x778] sm:$0xff]  ;;  %v148_v33 = vld [vmem:[%s2750_s1 + $0x440] sm:$0xff]  ;;  %v265_v34 = vld [vmem:[%s2750_s1 + $0x7e8] sm:$0xff] }
  0x36   :  { %499 = vmatpush.msrb.mxu2 %v223_v38  ;;  %440 = vmatmul.f32.vlgmr.msrb.gmra.mxu1 %v1481_v1  ;;  %v30_v35 = vld [vmem:[%s2750_s1 + $0x90] sm:$0xff]  ;;  %v135_v37 = vld [vmem:[%s2750_s1 + $0x3d8] sm:$0xff]  ;;  %v252_v38 = vld [vmem:[%s2750_s1 + $0x780] sm:$0xff] }
  0x37   :  { %511 = vmatpush.msra.mxu3 %v120_v39  ;;  %531 = vmatpush.msra.mxu1 %v328_v40  ;;  %v238_v36 = vld [vmem:[%s2750_s1 + $0x710] sm:$0xff]  ;;  %v17_v39 = vld [vmem:[%s2750_s1 + $0x28] sm:$0xff] }
  0x38   :  { %544 = vmatpush.msra.mxu2 %v212_v41  ;;  %473 = vmatpush.msrb.mxu0 %v93_v42  ;;  %v225_v40 = vld [vmem:[%s2750_s1 + $0x6a8] sm:$0xff]  ;;  %v122_v41 = vld [vmem:[%s2750_s1 + $0x370] sm:$0xff]  ;;  %v239_v42 = vld [vmem:[%s2750_s1 + $0x718] sm:$0xff] }
  0x39   :  { %512 = vmatpush.msra.mxu3 %v107_v43  ;;  %532 = vmatpush.msra.mxu1 %v315_v44  ;;  %v214_v43 = vld [vmem:[%s2750_s1 + $0x650] sm:$0xff]  ;;  %v331_v44 = vld [vmem:[%s2750_s1 + $0x9f8] sm:$0xff] }
  0x3a   :  { %545 = vmatpush.msra.mxu2 %v199_v45  ;;  %474 = vmatpush.msrb.mxu0 %v80_v46  ;;  %v109_v45 = vld [vmem:[%s2750_s1 + $0x308] sm:$0xff]  ;;  %v226_v46 = vld [vmem:[%s2750_s1 + $0x6b0] sm:$0xff] }
  0x3b   :  { %513 = vmatpush.msra.mxu3 %v94_v47  ;;  %533 = vmatpush.msra.mxu1 %v302_v48  ;;  %v201_v47 = vld [vmem:[%s2750_s1 + $0x5e8] sm:$0xff]  ;;  %v318_v48 = vld [vmem:[%s2750_s1 + $0x990] sm:$0xff] }
  0x3c   :  { %546 = vmatpush.msra.mxu2 %v186_v49  ;;  %475 = vmatpush.msrb.mxu0 %v67_v50  ;;  %v215_v49 = vld [vmem:[%s2750_s1 + $0x658] sm:$0xff]  ;;  %v96_v50 = vld [vmem:[%s2750_s1 + $0x2a0] sm:$0xff] }
  0x3d   :  { %514 = vmatpush.msra.mxu3 %v81_v51  ;;  %534 = vmatpush.msra.mxu1 %v289_v52  ;;  %v188_v51 = vld [vmem:[%s2750_s1 + $0x580] sm:$0xff]  ;;  %v305_v52 = vld [vmem:[%s2750_s1 + $0x928] sm:$0xff] }
  0x3e   :  { %547 = vmatpush.msra.mxu2 %v173_v53  ;;  %476 = vmatpush.msrb.mxu0 %v54_v54  ;;  %v202_v53 = vld [vmem:[%s2750_s1 + $0x5f0] sm:$0xff]  ;;  %v83_v54 = vld [vmem:[%s2750_s1 + $0x238] sm:$0xff] }
  0x3f   :  { %1209 = vmatmul.msk.f32.vlgmr.msrb.gmra.mxu2 %vm341_vm0, %v1483_v2  ;;  %515 = vmatpush.msra.mxu3 %v68_v55  ;;  %v175_v55 = vld [vmem:[%s2750_s1 + $0x518] sm:$0xff] }
  0x40   :  { %535 = vmatpush.msra.mxu1 %v276_v56  ;;  %548 = vmatpush.msra.mxu2 %v160_v57  ;;  %v292_v56 = vld [vmem:[%s2750_s1 + $0x8c0] sm:$0xff]  ;;  %v189_v57 = vld [vmem:[%s2750_s1 + $0x588] sm:$0xff] }
  0x41   :  { %477 = vmatpush.msrb.mxu0 %v41_v58  ;;  %516 = vmatpush.msra.mxu3 %v55_v59  ;;  %v70_v58 = vld [vmem:[%s2750_s1 + $0x1d0] sm:$0xff] }
  0x42   :  { %536 = vmatpush.msra.mxu1 %v263_v60  ;;  %549 = vmatpush.msra.mxu2 %v147_v61  ;;  %v162_v59 = vld [vmem:[%s2750_s1 + $0x4b0] sm:$0xff]  ;;  %v279_v60 = vld [vmem:[%s2750_s1 + $0x858] sm:$0xff]  ;;  %v176_v61 = vld [vmem:[%s2750_s1 + $0x520] sm:$0xff] }
  0x43   :  { %478 = vmatpush.msrb.mxu0 %v28_v62  ;;  %517 = vmatpush.msra.mxu3 %v42_v63  ;;  %v57_v62 = vld [vmem:[%s2750_s1 + $0x168] sm:$0xff] }
  0x44   :  { %537 = vmatpush.msra.mxu1 %v250_v0  ;;  %550 = vmatpush.msra.mxu2 %v134_v3  ;;  %v149_v63 = vld [vmem:[%s2750_s1 + $0x448] sm:$0xff]  ;;  %v266_v0 = vld [vmem:[%s2750_s1 + $0x7f0] sm:$0xff]  ;;  %v44_v3 = vld [vmem:[%s2750_s1 + $0x100] sm:$0xff] }
  0x45   :  { %479 = vmatpush.msrb.mxu0 %v15_v4  ;;  %518 = vmatpush.msra.mxu3 %v29_v5  ;;  %v163_v4 = vld [vmem:[%s2750_s1 + $0x4b8] sm:$0xff]  ;;  %v136_v5 = vld [vmem:[%s2750_s1 + $0x3e0] sm:$0xff] }
  0x46   :  { %480 = vmatmul.f32.vlgmr.msrb.gmra.mxu0 %v1481_v1  ;;  %538 = vmatpush.msra.mxu1 %v237_v6  ;;  %v253_v6 = vld [vmem:[%s2750_s1 + $0x788] sm:$0xff] }
  0x47   :  { %551 = vmatpush.msra.mxu2 %v121_v7  ;;  %571 = vmatpush.msra.mxu0 %v329_v8  ;;  %v31_v7 = vld [vmem:[%s2750_s1 + $0x98] sm:$0xff]  ;;  %v150_v8 = vld [vmem:[%s2750_s1 + $0x450] sm:$0xff] }
  0x48   :  { %519 = vmatpush.msra.mxu3 %v16_v9  ;;  %539 = vmatpush.msra.mxu1 %v224_v10  ;;  %v123_v9 = vld [vmem:[%s2750_s1 + $0x378] sm:$0xff]  ;;  %v240_v10 = vld [vmem:[%s2750_s1 + $0x720] sm:$0xff] }
  0x49   :  { %552 = vmatpush.msra.mxu2 %v108_v11  ;;  %572 = vmatpush.msra.mxu0 %v316_v12  ;;  %v18_v11 = vld [vmem:[%s2750_s1 + $0x30] sm:$0xff]  ;;  %v137_v12 = vld [vmem:[%s2750_s1 + $0x3e8] sm:$0xff] }
  0x4a   :  { %520 = vmatmul.f32.vlgmr.msra.gmra.mxu3 %v1481_v1  ;;  %584 = vmatpush.msrb.mxu1 %v213_v13  ;;  %v110_v13 = vld [vmem:[%s2750_s1 + $0x310] sm:$0xff] }
  0x4b   :  { %611 = vmatpush.msrb.mxu3 %v330_v14  ;;  %553 = vmatpush.msra.mxu2 %v95_v15  ;;  %v227_v14 = vld [vmem:[%s2750_s1 + $0x6b8] sm:$0xff]  ;;  %v124_v15 = vld [vmem:[%s2750_s1 + $0x380] sm:$0xff] }
  0x4c   :  { %573 = vmatpush.msra.mxu0 %v303_v16  ;;  %585 = vmatpush.msrb.mxu1 %v200_v17  ;;  %v332_v16 = vld [vmem:[%s2750_s1 + $0xa00] sm:$0xff] }
  0x4d   :  { %612 = vmatpush.msrb.mxu3 %v317_v18  ;;  %554 = vmatpush.msra.mxu2 %v82_v19  ;;  %v216_v17 = vld [vmem:[%s2750_s1 + $0x660] sm:$0xff]  ;;  %v97_v18 = vld [vmem:[%s2750_s1 + $0x2a8] sm:$0xff]  ;;  %v111_v19 = vld [vmem:[%s2750_s1 + $0x318] sm:$0xff] }
  0x4e   :  { %574 = vmatpush.msra.mxu0 %v290_v20  ;;  %586 = vmatpush.msrb.mxu1 %v187_v21  ;;  %v319_v20 = vld [vmem:[%s2750_s1 + $0x998] sm:$0xff] }
  0x4f   :  { %613 = vmatpush.msrb.mxu3 %v304_v22  ;;  %555 = vmatpush.msra.mxu2 %v69_v23  ;;  %v203_v21 = vld [vmem:[%s2750_s1 + $0x5f8] sm:$0xff]  ;;  %v84_v22 = vld [vmem:[%s2750_s1 + $0x240] sm:$0xff]  ;;  %v98_v23 = vld [vmem:[%s2750_s1 + $0x2b0] sm:$0xff] }
  0x50   :  { %575 = vmatpush.msra.mxu0 %v277_v24  ;;  %1210 = vmatmul.msk.f32.vlgmr.msra.gmra.mxu1 %vm341_vm0, %v1483_v2  ;;  %v306_v24 = vld [vmem:[%s2750_s1 + $0x930] sm:$0xff] }
  0x51   :  { %587 = vmatpush.msrb.mxu1 %v174_v25  ;;  %614 = vmatpush.msrb.mxu3 %v291_v26  ;;  %v190_v25 = vld [vmem:[%s2750_s1 + $0x590] sm:$0xff]  ;;  %v71_v26 = vld [vmem:[%s2750_s1 + $0x1d8] sm:$0xff] }
  0x52   :  { %556 = vmatpush.msra.mxu2 %v56_v27  ;;  %576 = vmatpush.msra.mxu0 %v264_v28  ;;  %v85_v27 = vld [vmem:[%s2750_s1 + $0x248] sm:$0xff] }
  0x53   :  { %588 = vmatpush.msrb.mxu1 %v161_v29  ;;  %615 = vmatpush.msrb.mxu3 %v278_v30  ;;  %v293_v28 = vld [vmem:[%s2750_s1 + $0x8c8] sm:$0xff]  ;;  %v58_v30 = vld [vmem:[%s2750_s1 + $0x170] sm:$0xff] }
  0x54   :  { %557 = vmatpush.msra.mxu2 %v43_v31  ;;  %577 = vmatpush.msra.mxu0 %v251_v32  ;;  %v177_v29 = vld [vmem:[%s2750_s1 + $0x528] sm:$0xff]  ;;  %v72_v31 = vld [vmem:[%s2750_s1 + $0x1e0] sm:$0xff] }
  0x55   :  { %589 = vmatpush.msrb.mxu1 %v148_v33  ;;  %616 = vmatpush.msrb.mxu3 %v265_v34  ;;  %v280_v32 = vld [vmem:[%s2750_s1 + $0x860] sm:$0xff]  ;;  %v45_v34 = vld [vmem:[%s2750_s1 + $0x108] sm:$0xff] }
  0x56   :  { %558 = vmatpush.msra.mxu2 %v30_v35  ;;  %578 = vmatpush.msra.mxu0 %v238_v36  ;;  %v164_v33 = vld [vmem:[%s2750_s1 + $0x4c0] sm:$0xff]  ;;  %v59_v35 = vld [vmem:[%s2750_s1 + $0x178] sm:$0xff] }
  0x57   :  { %590 = vmatpush.msrb.mxu1 %v135_v37  ;;  %617 = vmatpush.msrb.mxu3 %v252_v38  ;;  %v267_v36 = vld [vmem:[%s2750_s1 + $0x7f8] sm:$0xff]  ;;  %v32_v38 = vld [vmem:[%s2750_s1 + $0xa0] sm:$0xff] }
  0x58   :  { %559 = vmatpush.msra.mxu2 %v17_v39  ;;  %579 = vmatpush.msra.mxu0 %v225_v40  ;;  %v151_v37 = vld [vmem:[%s2750_s1 + $0x458] sm:$0xff]  ;;  %v46_v39 = vld [vmem:[%s2750_s1 + $0x110] sm:$0xff] }
  0x59   :  { %560 = vmatmul.f32.vlgmr.msra.gmra.mxu2 %v1481_v1  ;;  %591 = vmatpush.msrb.mxu1 %v122_v41  ;;  %v254_v40 = vld [vmem:[%s2750_s1 + $0x790] sm:$0xff] }
  0x5a   :  { %618 = vmatpush.msrb.mxu3 %v239_v42  ;;  %624 = vmatpush.msrb.mxu0 %v214_v43  ;;  %v138_v41 = vld [vmem:[%s2750_s1 + $0x3f0] sm:$0xff]  ;;  %v19_v42 = vld [vmem:[%s2750_s1 + $0x38] sm:$0xff]  ;;  %v33_v43 = vld [vmem:[%s2750_s1 + $0xa8] sm:$0xff] }
  0x5b   :  { %651 = vmatpush.msrb.mxu2 %v331_v44  ;;  %592 = vmatpush.msrb.mxu1 %v109_v45  ;;  %v241_v44 = vld [vmem:[%s2750_s1 + $0x728] sm:$0xff] }
  0x5c   :  { %619 = vmatpush.msrb.mxu3 %v226_v46  ;;  %625 = vmatpush.msrb.mxu0 %v201_v47  ;;  %v125_v45 = vld [vmem:[%s2750_s1 + $0x388] sm:$0xff]  ;;  %v20_v47 = vld [vmem:[%s2750_s1 + $0x40] sm:$0xff] }
  0x5d   :  { %652 = vmatpush.msrb.mxu2 %v318_v48  ;;  %593 = vmatpush.msrb.mxu1 %v96_v50  ;;  %v333_v46 = vld [vmem:[%s2750_s1 + $0xa08] sm:$0xff]  ;;  %v228_v48 = vld [vmem:[%s2750_s1 + $0x6c0] sm:$0xff] }
  0x5e   :  { %664 = vmatpush.msra.mxu3 %v215_v49  ;;  %626 = vmatpush.msrb.mxu0 %v188_v51  ;;  %v112_v49 = vld [vmem:[%s2750_s1 + $0x320] sm:$0xff]  ;;  %v217_v51 = vld [vmem:[%s2750_s1 + $0x668] sm:$0xff] }
  0x5f   :  { %653 = vmatpush.msrb.mxu2 %v305_v52  ;;  %1211 = vmatmul.msk.f32.vlgmr.msra.gmra.mxu0 %vm341_vm0, %v1483_v2  ;;  %v320_v50 = vld [vmem:[%s2750_s1 + $0x9a0] sm:$0xff]  ;;  %v334_v52 = vld [vmem:[%s2750_s1 + $0xa10] sm:$0xff] }
  0x60   :  { %665 = vmatpush.msra.mxu3 %v202_v53  ;;  %594 = vmatpush.msrb.mxu1 %v83_v54  ;;  %v99_v53 = vld [vmem:[%s2750_s1 + $0x2b8] sm:$0xff] }
  0x61   :  { %627 = vmatpush.msrb.mxu0 %v175_v55  ;;  %654 = vmatpush.msrb.mxu2 %v292_v56  ;;  %v307_v54 = vld [vmem:[%s2750_s1 + $0x938] sm:$0xff]  ;;  %v204_v55 = vld [vmem:[%s2750_s1 + $0x600] sm:$0xff]  ;;  %v321_v56 = vld [vmem:[%s2750_s1 + $0x9a8] sm:$0xff] }
  0x62   :  { %666 = vmatpush.msra.mxu3 %v189_v57  ;;  %595 = vmatpush.msrb.mxu1 %v70_v58  ;;  %v86_v57 = vld [vmem:[%s2750_s1 + $0x250] sm:$0xff] }
  0x63   :  { %628 = vmatpush.msrb.mxu0 %v162_v59  ;;  %655 = vmatpush.msrb.mxu2 %v279_v60  ;;  %v294_v58 = vld [vmem:[%s2750_s1 + $0x8d0] sm:$0xff]  ;;  %v191_v59 = vld [vmem:[%s2750_s1 + $0x598] sm:$0xff]  ;;  %v308_v60 = vld [vmem:[%s2750_s1 + $0x940] sm:$0xff] }
  0x64   :  { %667 = vmatpush.msra.mxu3 %v176_v61  ;;  %596 = vmatpush.msrb.mxu1 %v57_v62  ;;  %v73_v61 = vld [vmem:[%s2750_s1 + $0x1e8] sm:$0xff] }
  0x65   :  { %629 = vmatpush.msrb.mxu0 %v149_v63  ;;  %656 = vmatpush.msrb.mxu2 %v266_v0  ;;  %v281_v62 = vld [vmem:[%s2750_s1 + $0x868] sm:$0xff]  ;;  %v178_v63 = vld [vmem:[%s2750_s1 + $0x530] sm:$0xff]  ;;  %v295_v0 = vld [vmem:[%s2750_s1 + $0x8d8] sm:$0xff] }
  0x66   :  { %1212 = vmatmul.msk.f32.vlgmr.msrb.gmra.mxu3 %vm341_vm0, %v1483_v2  ;;  %597 = vmatpush.msrb.mxu1 %v44_v3  ;;  %v60_v3 = vld [vmem:[%s2750_s1 + $0x180] sm:$0xff] }
  0x67   :  { %668 = vmatpush.msra.mxu3 %v163_v4  ;;  %630 = vmatpush.msrb.mxu0 %v136_v5  ;;  %v268_v4 = vld [vmem:[%s2750_s1 + $0x800] sm:$0xff]  ;;  %v165_v5 = vld [vmem:[%s2750_s1 + $0x4c8] sm:$0xff] }
  0x68   :  { %657 = vmatpush.msrb.mxu2 %v253_v6  ;;  %598 = vmatpush.msrb.mxu1 %v31_v7  ;;  %v282_v6 = vld [vmem:[%s2750_s1 + $0x870] sm:$0xff]  ;;  %v47_v7 = vld [vmem:[%s2750_s1 + $0x118] sm:$0xff] }
  0x69   :  { %669 = vmatpush.msra.mxu3 %v150_v8  ;;  %631 = vmatpush.msrb.mxu0 %v123_v9  ;;  %v255_v8 = vld [vmem:[%s2750_s1 + $0x798] sm:$0xff]  ;;  %v152_v9 = vld [vmem:[%s2750_s1 + $0x460] sm:$0xff] }
  0x6a   :  { %658 = vmatpush.msrb.mxu2 %v240_v10  ;;  %599 = vmatpush.msrb.mxu1 %v18_v11  ;;  %v269_v10 = vld [vmem:[%s2750_s1 + $0x808] sm:$0xff]  ;;  %v34_v11 = vld [vmem:[%s2750_s1 + $0xb0] sm:$0xff] }
  0x6b   :  { %670 = vmatpush.msra.mxu3 %v137_v12  ;;  %632 = vmatpush.msrb.mxu0 %v110_v13  ;;  %v242_v12 = vld [vmem:[%s2750_s1 + $0x730] sm:$0xff]  ;;  %v139_v13 = vld [vmem:[%s2750_s1 + $0x3f8] sm:$0xff] }
  0x6c   :  { %659 = vmatpush.msrb.mxu2 %v227_v14  ;;  %600 = vmatmul.f32.vlgmr.msrb.gmra.mxu1 %v1481_v1  ;;  %v256_v14 = vld [vmem:[%s2750_s1 + $0x7a0] sm:$0xff] }
  0x6d   :  { %671 = vmatpush.msra.mxu3 %v124_v15  ;;  %691 = vmatpush.msra.mxu1 %v332_v16  ;;  %v21_v15 = vld [vmem:[%s2750_s1 + $0x48] sm:$0xff] }
  0x6e   :  { %704 = vmatpush.msra.mxu2 %v216_v17  ;;  %633 = vmatpush.msrb.mxu0 %v97_v18  ;;  %v229_v16 = vld [vmem:[%s2750_s1 + $0x6c8] sm:$0xff]  ;;  %v126_v17 = vld [vmem:[%s2750_s1 + $0x390] sm:$0xff]  ;;  %v243_v18 = vld [vmem:[%s2750_s1 + $0x738] sm:$0xff] }
  0x6f   :  { %672 = vmatpush.msra.mxu3 %v111_v19  ;;  %692 = vmatpush.msra.mxu1 %v319_v20  ;;  %v218_v19 = vld [vmem:[%s2750_s1 + $0x670] sm:$0xff]  ;;  %v113_v20 = vld [vmem:[%s2750_s1 + $0x328] sm:$0xff] }
  0x70   :  { %705 = vmatpush.msra.mxu2 %v203_v21  ;;  %634 = vmatpush.msrb.mxu0 %v84_v22  ;;  %v230_v21 = vld [vmem:[%s2750_s1 + $0x6d0] sm:$0xff]  ;;  %v205_v22 = vld [vmem:[%s2750_s1 + $0x608] sm:$0xff] }
  0x71   :  { %673 = vmatpush.msra.mxu3 %v98_v23  ;;  %693 = vmatpush.msra.mxu1 %v306_v24  ;;  %v219_v23 = vld [vmem:[%s2750_s1 + $0x678] sm:$0xff]  ;;  %v100_v24 = vld [vmem:[%s2750_s1 + $0x2c0] sm:$0xff] }
  0x72   :  { %706 = vmatpush.msra.mxu2 %v190_v25  ;;  %635 = vmatpush.msrb.mxu0 %v71_v26  ;;  %v192_v25 = vld [vmem:[%s2750_s1 + $0x5a0] sm:$0xff]  ;;  %v335_v26 = vld [vmem:[%s2750_s1 + $0xa18] sm:$0xff] }
  0x73   :  { %674 = vmatpush.msra.mxu3 %v85_v27  ;;  %694 = vmatpush.msra.mxu1 %v293_v28  ;;  %v206_v27 = vld [vmem:[%s2750_s1 + $0x610] sm:$0xff]  ;;  %v87_v28 = vld [vmem:[%s2750_s1 + $0x258] sm:$0xff] }
  0x74   :  { %707 = vmatpush.msra.mxu2 %v177_v29  ;;  %636 = vmatpush.msrb.mxu0 %v58_v30  ;;  %v179_v29 = vld [vmem:[%s2750_s1 + $0x538] sm:$0xff]  ;;  %v322_v30 = vld [vmem:[%s2750_s1 + $0x9b0] sm:$0xff] }
  0x75   :  { %1213 = vmatmul.msk.f32.vlgmr.msrb.gmra.mxu2 %vm341_vm0, %v1483_v2  ;;  %675 = vmatpush.msra.mxu3 %v72_v31  ;;  %v193_v31 = vld [vmem:[%s2750_s1 + $0x5a8] sm:$0xff] }
  0x76   :  { %695 = vmatpush.msra.mxu1 %v280_v32  ;;  %708 = vmatpush.msra.mxu2 %v164_v33  ;;  %v74_v32 = vld [vmem:[%s2750_s1 + $0x1f0] sm:$0xff] }
  0x77   :  { %637 = vmatpush.msrb.mxu0 %v45_v34  ;;  %676 = vmatpush.msra.mxu3 %v59_v35  ;;  %v166_v33 = vld [vmem:[%s2750_s1 + $0x4d0] sm:$0xff]  ;;  %v180_v34 = vld [vmem:[%s2750_s1 + $0x540] sm:$0xff]  ;;  %v61_v35 = vld [vmem:[%s2750_s1 + $0x188] sm:$0xff] }
  0x78   :  { %696 = vmatpush.msra.mxu1 %v267_v36  ;;  %709 = vmatpush.msra.mxu2 %v151_v37  ;;  %v153_v36 = vld [vmem:[%s2750_s1 + $0x468] sm:$0xff] }
  0x79   :  { %638 = vmatpush.msrb.mxu0 %v32_v38  ;;  %677 = vmatpush.msra.mxu3 %v46_v39  ;;  %v309_v37 = vld [vmem:[%s2750_s1 + $0x948] sm:$0xff]  ;;  %v167_v38 = vld [vmem:[%s2750_s1 + $0x4d8] sm:$0xff]  ;;  %v48_v39 = vld [vmem:[%s2750_s1 + $0x120] sm:$0xff] }
  0x7a   :  { %697 = vmatpush.msra.mxu1 %v254_v40  ;;  %710 = vmatpush.msra.mxu2 %v138_v41  ;;  %v140_v40 = vld [vmem:[%s2750_s1 + $0x400] sm:$0xff] }
  0x7b   :  { %639 = vmatpush.msrb.mxu0 %v19_v42  ;;  %678 = vmatpush.msra.mxu3 %v33_v43  ;;  %v296_v41 = vld [vmem:[%s2750_s1 + $0x8e0] sm:$0xff]  ;;  %v154_v42 = vld [vmem:[%s2750_s1 + $0x470] sm:$0xff]  ;;  %v35_v43 = vld [vmem:[%s2750_s1 + $0xb8] sm:$0xff] }
  0x7c   :  { %640 = vmatmul.f32.vlgmr.msrb.gmra.mxu0 %v1481_v1  ;;  %698 = vmatpush.msra.mxu1 %v241_v44  ;;  %v127_v44 = vld [vmem:[%s2750_s1 + $0x398] sm:$0xff] }
  0x7d   :  { %711 = vmatpush.msra.mxu2 %v125_v45  ;;  %731 = vmatpush.msra.mxu0 %v333_v46  ;;  %v283_v45 = vld [vmem:[%s2750_s1 + $0x878] sm:$0xff]  ;;  %v141_v46 = vld [vmem:[%s2750_s1 + $0x408] sm:$0xff] }
  0x7e   :  { %679 = vmatpush.msra.mxu3 %v20_v47  ;;  %699 = vmatpush.msra.mxu1 %v228_v48  ;;  %v22_v47 = vld [vmem:[%s2750_s1 + $0x50] sm:$0xff] }
  0x7f   :  { %712 = vmatpush.msra.mxu2 %v112_v49  ;;  %732 = vmatpush.msra.mxu0 %v320_v50  ;;  %v114_v48 = vld [vmem:[%s2750_s1 + $0x330] sm:$0xff]  ;;  %v128_v49 = vld [vmem:[%s2750_s1 + $0x3a0] sm:$0xff] }
  0x80   :  { %680 = vmatmul.f32.vlgmr.msra.gmra.mxu3 %v1481_v1  ;;  %744 = vmatpush.msrb.mxu1 %v217_v51  ;;  %v270_v50 = vld [vmem:[%s2750_s1 + $0x810] sm:$0xff]  ;;  %v101_v51 = vld [vmem:[%s2750_s1 + $0x2c8] sm:$0xff] }
  0x81   :  { %771 = vmatpush.msrb.mxu3 %v334_v52  ;;  %713 = vmatpush.msra.mxu2 %v99_v53  ;;  %v336_v52 = vld [vmem:[%s2750_s1 + $0xa20] sm:$0xff]  ;;  %v115_v53 = vld [vmem:[%s2750_s1 + $0x338] sm:$0xff] }
  0x82   :  { %733 = vmatpush.msra.mxu0 %v307_v54  ;;  %745 = vmatpush.msrb.mxu1 %v204_v55  ;;  %v257_v54 = vld [vmem:[%s2750_s1 + $0x7a8] sm:$0xff]  ;;  %v88_v55 = vld [vmem:[%s2750_s1 + $0x260] sm:$0xff] }
  0x83   :  { %772 = vmatpush.msrb.mxu3 %v321_v56  ;;  %714 = vmatpush.msra.mxu2 %v86_v57  ;;  %v323_v56 = vld [vmem:[%s2750_s1 + $0x9b8] sm:$0xff]  ;;  %v102_v57 = vld [vmem:[%s2750_s1 + $0x2d0] sm:$0xff] }
  0x84   :  { %734 = vmatpush.msra.mxu0 %v294_v58  ;;  %746 = vmatpush.msrb.mxu1 %v191_v59  ;;  %v244_v58 = vld [vmem:[%s2750_s1 + $0x740] sm:$0xff]  ;;  %v75_v59 = vld [vmem:[%s2750_s1 + $0x1f8] sm:$0xff] }
  0x85   :  { %773 = vmatpush.msrb.mxu3 %v308_v60  ;;  %715 = vmatpush.msra.mxu2 %v73_v61  ;;  %v310_v60 = vld [vmem:[%s2750_s1 + $0x950] sm:$0xff]  ;;  %v89_v61 = vld [vmem:[%s2750_s1 + $0x268] sm:$0xff] }
  0x86   :  { %735 = vmatpush.msra.mxu0 %v281_v62  ;;  %1214 = vmatmul.msk.f32.vlgmr.msra.gmra.mxu1 %vm341_vm0, %v1483_v2  ;;  %v231_v62 = vld [vmem:[%s2750_s1 + $0x6d8] sm:$0xff] }
  0x87   :  { %747 = vmatpush.msrb.mxu1 %v178_v63  ;;  %774 = vmatpush.msrb.mxu3 %v295_v0  ;;  %v62_v63 = vld [vmem:[%s2750_s1 + $0x190] sm:$0xff]  ;;  %v76_v0 = vld [vmem:[%s2750_s1 + $0x200] sm:$0xff] }
  0x88   :  { %716 = vmatpush.msra.mxu2 %v60_v3  ;;  %736 = vmatpush.msra.mxu0 %v268_v4  ;;  %v297_v3 = vld [vmem:[%s2750_s1 + $0x8e8] sm:$0xff] }
  0x89   :  { %748 = vmatpush.msrb.mxu1 %v165_v5  ;;  %775 = vmatpush.msrb.mxu3 %v282_v6  ;;  %v49_v4 = vld [vmem:[%s2750_s1 + $0x128] sm:$0xff]  ;;  %v63_v5 = vld [vmem:[%s2750_s1 + $0x198] sm:$0xff]  ;;  %v284_v6 = vld [vmem:[%s2750_s1 + $0x880] sm:$0xff] }
  0x8a   :  { %717 = vmatpush.msra.mxu2 %v47_v7  ;;  %737 = vmatpush.msra.mxu0 %v255_v8  ;;  %v36_v7 = vld [vmem:[%s2750_s1 + $0xc0] sm:$0xff]  ;;  %v50_v8 = vld [vmem:[%s2750_s1 + $0x130] sm:$0xff] }
  0x8b   :  { %749 = vmatpush.msrb.mxu1 %v152_v9  ;;  %776 = vmatpush.msrb.mxu3 %v269_v10  ;;  %v271_v9 = vld [vmem:[%s2750_s1 + $0x818] sm:$0xff] }
  0x8c   :  { %718 = vmatpush.msra.mxu2 %v34_v11  ;;  %738 = vmatpush.msra.mxu0 %v242_v12  ;;  %v23_v10 = vld [vmem:[%s2750_s1 + $0x58] sm:$0xff]  ;;  %v37_v11 = vld [vmem:[%s2750_s1 + $0xc8] sm:$0xff]  ;;  %v258_v12 = vld [vmem:[%s2750_s1 + $0x7b0] sm:$0xff] }
  0x8d   :  { %750 = vmatpush.msrb.mxu1 %v139_v13  ;;  %777 = vmatpush.msrb.mxu3 %v256_v14  ;;  %v24_v13 = vld [vmem:[%s2750_s1 + $0x60] sm:$0xff]  ;;  %v245_v14 = vld [vmem:[%s2750_s1 + $0x748] sm:$0xff] }
  0x8e   :  { %719 = vmatpush.msra.mxu2 %v21_v15  ;;  %739 = vmatpush.msra.mxu0 %v229_v16  ;;  %v232_v15 = vld [vmem:[%s2750_s1 + $0x6e0] sm:$0xff] }
  0x8f   :  { %720 = vmatmul.f32.vlgmr.msra.gmra.mxu2 %v1481_v1  ;;  %751 = vmatpush.msrb.mxu1 %v126_v17 }
  0x90   :  { %778 = vmatpush.msrb.mxu3 %v243_v18  ;;  %784 = vmatpush.msrb.mxu0 %v218_v19 }
  0x91   :  { %752 = vmatpush.msrb.mxu1 %v113_v20  ;;  %1215 = vmatmul.msk.f32.vlgmr.msra.gmra.mxu0 %vm341_vm0, %v1483_v2 }
  0x92   :  { %779 = vmatpush.msrb.mxu3 %v230_v21  ;;  %785 = vmatpush.msrb.mxu0 %v205_v22 }
  0x93   :  { %753 = vmatpush.msrb.mxu1 %v100_v24  ;;  %811 = vmatpush.msrb.mxu2 %v335_v26 }
  0x94   :  { %824 = vmatpush.msra.mxu3 %v219_v23  ;;  %786 = vmatpush.msrb.mxu0 %v192_v25 }
  0x95   :  { %754 = vmatpush.msrb.mxu1 %v87_v28  ;;  %812 = vmatpush.msrb.mxu2 %v322_v30 }
  0x96   :  { %825 = vmatpush.msra.mxu3 %v206_v27  ;;  %787 = vmatpush.msrb.mxu0 %v179_v29 }
  0x97   :  { %755 = vmatpush.msrb.mxu1 %v74_v32  ;;  %1216 = vmatmul.msk.f32.vlgmr.msrb.gmra.mxu3 %vm341_vm0, %v1483_v2 }
  0x98   :  { %826 = vmatpush.msra.mxu3 %v193_v31  ;;  %788 = vmatpush.msrb.mxu0 %v166_v33 }
  0x99   :  { %756 = vmatpush.msrb.mxu1 %v61_v35  ;;  %813 = vmatpush.msrb.mxu2 %v309_v37 }
  0x9a   :  { %827 = vmatpush.msra.mxu3 %v180_v34  ;;  %789 = vmatpush.msrb.mxu0 %v153_v36 }
  0x9b   :  { %757 = vmatpush.msrb.mxu1 %v48_v39  ;;  %814 = vmatpush.msrb.mxu2 %v296_v41 }
  0x9c   :  { %828 = vmatpush.msra.mxu3 %v167_v38  ;;  %790 = vmatpush.msrb.mxu0 %v140_v40 }
  0x9d   :  { %758 = vmatpush.msrb.mxu1 %v35_v43  ;;  %815 = vmatpush.msrb.mxu2 %v283_v45 }
  0x9e   :  { %829 = vmatpush.msra.mxu3 %v154_v42  ;;  %791 = vmatpush.msrb.mxu0 %v127_v44 }
  0x9f   :  { %759 = vmatpush.msrb.mxu1 %v22_v47  ;;  %816 = vmatpush.msrb.mxu2 %v270_v50  ;;  %v361_v16 = vpop.f32.mrf.mxu0  ;;  %v381_v17 = vpop.f32.mrf.mxu1 }
  0xa0   :  { %830 = vmatpush.msra.mxu3 %v141_v46  ;;  %792 = vmatpush.msrb.mxu0 %v114_v48  ;;  %v2307_v20 = vadd.f32 %v381_v17, %v361_v16 }
  0xa1   :  { %760 = vmatmul.f32.vlgmr.msrb.gmra.mxu1 %v1481_v1  ;;  %817 = vmatpush.msrb.mxu2 %v257_v54 }
  0xa2   :  { %831 = vmatpush.msra.mxu3 %v128_v49  ;;  %793 = vmatpush.msrb.mxu0 %v101_v51  ;;  %v864_v21 = vand.u32 2147483647, %v2307_v20  ;;  %vm916_vm1 = vcmp.ge.f32.partialorder %v2307_v20, 0.0 }
  0xa3   :  { %851 = vmatpush.msra.mxu1 %v336_v52  ;;  %818 = vmatpush.msrb.mxu2 %v244_v58 }
  0xa4   :  { %832 = vmatpush.msra.mxu3 %v115_v53  ;;  %794 = vmatpush.msrb.mxu0 %v88_v55  ;;  %v877_v26 = vsub.f32 0.0, %v864_v21 }
  0xa5   :  { %852 = vmatpush.msra.mxu1 %v323_v56  ;;  %819 = vmatpush.msrb.mxu2 %v231_v62 }
  0xa6   :  { %833 = vmatpush.msra.mxu3 %v102_v57  ;;  %795 = vmatpush.msrb.mxu0 %v75_v59  ;;  %v421_v18 = vpop.f32.mrf.mxu3  ;;  %v401_v19 = vpop.f32.mrf.mxu2  ;;  %v890_v28 = vmul.f32 1.442695, %v877_v26 }
  0xa7   :  { %853 = vmatpush.msra.mxu1 %v310_v60  ;;  %1217 = vmatmul.msk.f32.vlgmr.msrb.gmra.mxu2 %vm341_vm0, %v1483_v2  ;;  %v2310_v27 = vadd.f32 %v421_v18, %v401_v19 }
  0xa8   :  { %834 = vmatpush.msra.mxu3 %v89_v61  ;;  %796 = vmatpush.msrb.mxu0 %v62_v63  ;;  %1219 = vpow2.f32 %v890_v28 }
  0xa9   :  { %854 = vmatpush.msra.mxu1 %v297_v3  ;;  %vm917_vm5 = vcmp.ge.f32.partialorder %v2310_v27, 0.0 }
  0xaa   :  { %835 = vmatpush.msra.mxu3 %v76_v0  ;;  %797 = vmatpush.msrb.mxu0 %v49_v4 }
  0xab   :  { %855 = vmatpush.msra.mxu1 %v284_v6 }
  0xac   :  { %836 = vmatpush.msra.mxu3 %v63_v5  ;;  %798 = vmatpush.msrb.mxu0 %v36_v7 }
  0xad   :  { %856 = vmatpush.msra.mxu1 %v271_v9 }
  0xae   :  { %837 = vmatpush.msra.mxu3 %v50_v8  ;;  %799 = vmatpush.msrb.mxu0 %v23_v10  ;;  %v2324_v43 = vpop.eup %1219 }
  0xaf   :  { %800 = vmatmul.f32.vlgmr.msrb.gmra.mxu0 %v1481_v1  ;;  %857 = vmatpush.msra.mxu1 %v258_v12  ;;  %v2328_v47 = vadd.f32 1.0, %v2324_v43 }
  0xb0   :  { %838 = vmatpush.msra.mxu3 %v37_v11 }
  0xb1   :  { %858 = vmatpush.msra.mxu1 %v245_v14  ;;  %vm960_vm2 = vweird.f32 %v2328_v47  ;;  %v964_v19 = vand.u32 2147483647, %v2328_v47  ;;  %v966_v21 = vand.u32 2147483648, %v2328_v47 }
  0xb2   :  { %839 = vmatpush.msra.mxu3 %v24_v13 }
  0xb3   :  { %840 = vmatmul.f32.vlgmr.msra.gmra.mxu3 %v1481_v1  ;;  %859 = vmatpush.msra.mxu1 %v232_v15  ;;  %v441_v22 = vpop.f32.mrf.mxu1  ;;  %v461_v23 = vpop.f32.mrf.mxu3  ;;  %vm2402_vm6 = vcmp.eq.f32.partialorder %v964_v19, 8.507059e+37 }
  0xb4   :  { %1218 = vmatmul.msk.f32.vlgmr.msra.gmra.mxu1 %vm341_vm0, %v1483_v2  ;;  %v865_v2 = vand.u32 2147483647, %v2310_v27  ;;  %v2315_v29 = vadd.f32 %v461_v23, %v441_v22 }
  0xb6   :  { %v878_v33 = vsub.f32 0.0, %v865_v2  ;;  %v866_v34 = vand.u32 2147483647, %v2315_v29  ;;  %vm918_vm8 = vcmp.ge.f32.partialorder %v2315_v29, 0.0 }
  0xb8   :  { %v892_v40 = vmul.f32 1.442695, %v878_v33  ;;  %v879_v41 = vsub.f32 0.0, %v866_v34  ;;  %v967_v34 = vor.u32 1.1754944e-38, %v966_v21 }
  0xba   :  { %1221 = vpow2.f32 %v892_v40  ;;  %v894_v46 = vmul.f32 1.442695, %v879_v41 }
  0xc0   :  { %v2331_v51 = vpop.eup %1221 }
  0xc1   :  { %v2338_v57 = vadd.f32 1.0, %v2331_v51 }
  0xc2   :  { %v501_v25 = vpop.f32.mrf.mxu2 }
  0xc3   :  { %v481_v24 = vpop.f32.mrf.mxu0  ;;  %vm975_vm7 = vweird.f32 %v2338_v57  ;;  %v979_v20 = vand.u32 2147483647, %v2338_v57 }
  0xc4   :  { %v2312_v1 = vadd.f32 %v501_v25, %v481_v24 }
  0xc5   :  { %vm2436_vm13 = vcmp.eq.f32.partialorder %v979_v20, 8.507059e+37 }
  0xc6   :  { %v867_v30 = vand.u32 2147483647, %v2312_v1  ;;  %vm919_vm0 = vcmp.ge.f32.partialorder %v2312_v1, 0.0 }
  0xc8   :  { %v880_v37 = vsub.f32 0.0, %v867_v30 }
  0xca   :  { %v896_v44 = vmul.f32 1.442695, %v880_v37 }
  0xcc   :  { %1223 = vpow2.f32 %v896_v44 }
  0xcd   :  { %v521_v31 = vpop.f32.mrf.mxu3  ;;  %v541_v32 = vpop.f32.mrf.mxu1  ;;  %1225 = vpow2.f32 %v894_v46 }
  0xce   :  { %v2319_v35 = vadd.f32 %v541_v32, %v521_v31  ;;  %1227 = vrcp.f32 %v2328_v47  ;;  %v929_v32 = vsel %vm916_vm1, 1.0, %v2324_v43  ;;  %v981_v43 = vand.u32 2147483648, %v2338_v57 }
  0xd0   :  { %v868_v42 = vand.u32 2147483647, %v2319_v35 }
  0xd2   :  { %v881_v48 = vsub.f32 0.0, %v868_v42  ;;  %v2335_v56 = vpop.eup %1223  ;;  %v2412_v42 = vsel %vm917_vm5, 1.0, %v2331_v51 }
  0xd3   :  { %v2341_v59 = vpop.eup %1225  ;;  %v2344_v61 = vadd.f32 1.0, %v2335_v56 }
  0xd4   :  { %v898_v50 = vmul.f32 1.442695, %v881_v48  ;;  %v1228_v60 = vpop.eup %1227  ;;  %v2348_v63 = vadd.f32 1.0, %v2341_v59  ;;  %v2461_v19 = vsel %vm918_vm8, 1.0, %v2341_v59 }
  0xd5   :  { %v956_v0 = vmul.f32 %v1228_v60, %v2328_v47  ;;  %vm961_vm3 = vweird.f32 %v1228_v60  ;;  %vm1005_vm11 = vweird.f32 %v2344_v61 }
  0xd6   :  { %1229 = vpow2.f32 %v898_v50  ;;  %vm2390_vm4 = vmor %vm960_vm2, %vm961_vm3  ;;  %vm990_vm10 = vweird.f32 %v2348_v63  ;;  %v994_v51 = vand.u32 2147483647, %v2348_v63 }
  0xd7   :  { %v957_v6 = vsub.f32 1.0, %v956_v0 }
  0xd8   :  { %vm2481_vm3 = vcmp.eq.f32.partialorder %v994_v51, 8.507059e+37 }
  0xd9   :  { %v958_v13 = vmul.f32 %v1228_v60, %v957_v6  ;;  %v982_v6 = vor.u32 1.1754944e-38, %v981_v43 }
  0xdb   :  { %v959_v23 = vadd.f32 %v1228_v60, %v958_v13 }
  0xdc   :  { %v561_v36 = vpop.f32.mrf.mxu2  ;;  %v581_v38 = vpop.f32.mrf.mxu0 }
  0xdd   :  { %v2321_v39 = vadd.f32 %v581_v38, %v561_v36  ;;  %v2351_v4 = vpop.eup %1229  ;;  %v963_v37 = vsel %vm2390_vm4, %v1228_v60, %v959_v23 }
  0xde   :  { %v2358_v7 = vadd.f32 1.0, %v2351_v4  ;;  %v968_v46 = vsel %vm2402_vm6, %v967_v34, %v963_v37 }
  0xdf   :  { %v869_v45 = vand.u32 2147483647, %v2321_v39  ;;  %v2442_v0 = vmul.f32 %v968_v46, %v929_v32 }
  0xe0   :  { %vm1020_vm5 = vweird.f32 %v2358_v7  ;;  %v1026_v32 = vand.u32 2147483648, %v2358_v7 }
  0xe1   :  { %v882_v49 = vsub.f32 0.0, %v869_v45 }
  0xe2   :  { %v1027_v1 = vor.u32 1.1754944e-38, %v1026_v32 }
  0xe3   :  { %v900_v52 = vmul.f32 1.442695, %v882_v49 }
  0xe5   :  { %1231 = vpow2.f32 %v900_v52  ;;  %v996_v52 = vand.u32 2147483648, %v2348_v63 }
  0xe6   :  { %1233 = vrcp.f32 %v2338_v57 }
  0xe7   :  { %1235 = vrcp.f32 %v2344_v61 }
  0xe9   :  { %v601_v53 = vpop.f32.mrf.mxu1  ;;  %v621_v54 = vpop.f32.mrf.mxu3 }
  0xea   :  { %v2333_v55 = vadd.f32 %v621_v54, %v601_v53  ;;  %v1009_v53 = vand.u32 2147483647, %v2344_v61 }
  0xeb   :  { %v2354_v5 = vpop.eup %1231 }
  0xec   :  { %v870_v58 = vand.u32 2147483647, %v2333_v55  ;;  %v2360_v8 = vpop.eup %1233  ;;  %v2363_v9 = vadd.f32 1.0, %v2354_v5  ;;  %vm2485_vm4 = vcmp.eq.f32.partialorder %v1009_v53, 8.507059e+37 }
  0xed   :  { %v2365_v10 = vpop.eup %1235  ;;  %v971_v14 = vmul.f32 %v2360_v8, %v2338_v57  ;;  %vm976_vm9 = vweird.f32 %v2360_v8 }
  0xee   :  { %v883_v62 = vsub.f32 0.0, %v870_v58  ;;  %v1001_v22 = vmul.f32 %v2365_v10, %v2344_v61  ;;  %vm1006_vm12 = vweird.f32 %v2365_v10  ;;  %v1011_v58 = vand.u32 2147483648, %v2344_v61  ;;  %vm2448_vm15 = vmor %vm975_vm7, %vm976_vm9 }
  0xef   :  { %v972_v24 = vsub.f32 1.0, %v971_v14  ;;  %vm2469_vm1 = vmor %vm1005_vm11, %vm1006_vm12  ;;  %vm1035_vm7 = vweird.f32 %v2363_v9  ;;  %v1039_v37 = vand.u32 2147483647, %v2363_v9 }
  0xf0   :  { %v902_v3 = vmul.f32 1.442695, %v883_v62  ;;  %v1002_v36 = vsub.f32 1.0, %v1001_v22  ;;  %v1012_v23 = vor.u32 1.1754944e-38, %v1011_v58 }
  0xf1   :  { %v973_v38 = vmul.f32 %v2360_v8, %v972_v24 }
  0xf2   :  { %1237 = vpow2.f32 %v902_v3  ;;  %v1003_v47 = vmul.f32 %v2365_v10, %v1002_v36 }
  0xf3   :  { %1239 = vrcp.f32 %v2348_v63  ;;  %v974_v49 = vadd.f32 %v2360_v8, %v973_v38 }
  0xf4   :  { %1241 = vrcp.f32 %v2358_v7 }
  0xf5   :  { %1243 = vrcp.f32 %v2363_v9 }
  0xf8   :  { %v661_v11 = vpop.f32.mrf.mxu2  ;;  %v2367_v12 = vpop.eup %1237 }
  0xf9   :  { %v641_v15 = vpop.f32.mrf.mxu0  ;;  %v2372_v16 = vpop.eup %1239  ;;  %v2376_v17 = vadd.f32 1.0, %v2367_v12 }
  0xfa   :  { %v2378_v18 = vadd.f32 %v661_v11, %v641_v15  ;;  %v986_v25 = vmul.f32 %v2372_v16, %v2348_v63  ;;  %v2394_v2 = vpop.eup %1241  ;;  %vm991_vm14 = vweird.f32 %v2372_v16  ;;  %v1004_v11 = vadd.f32 %v2365_v10, %v1003_v47 }
  0xfb   :  { %1245 = vrcp.f32 %v2376_v17  ;;  %v2397_v31 = vpop.eup %1243  ;;  %v1016_v44 = vmul.f32 %v2394_v2, %v2358_v7  ;;  %v978_v15 = vsel %vm2448_vm15, %v2360_v8, %v974_v49  ;;  %vm2477_vm2 = vmor %vm990_vm10, %vm991_vm14  ;;  %v997_v8 = vor.u32 1.1754944e-38, %v996_v52 }
  0xfc   :  { %v871_v26 = vand.u32 2147483647, %v2378_v18  ;;  %v987_v40 = vsub.f32 1.0, %v986_v25  ;;  %v1031_v45 = vmul.f32 %v2397_v31, %v2363_v9  ;;  %v1008_v25 = vsel %vm2469_vm1, %v2365_v10, %v1004_v11 }
  0xfd   :  { %v1017_v60 = vsub.f32 1.0, %v1016_v44  ;;  %vm1021_vm6 = vweird.f32 %v2394_v2  ;;  %vm1036_vm8 = vweird.f32 %v2397_v31  ;;  %v1041_v10 = vand.u32 2147483648, %v2363_v9 }
  0xfe   :  { %v884_v30 = vsub.f32 0.0, %v871_v26  ;;  %v988_v50 = vmul.f32 %v2372_v16, %v987_v40  ;;  %v1032_v62 = vsub.f32 1.0, %v1031_v45  ;;  %vm1050_vm9 = vweird.f32 %v2376_v17  ;;  %vm2516_vm11 = vmor %vm1020_vm5, %vm1021_vm6 }
  0xff   :  { %v1018_v24 = vmul.f32 %v2394_v2, %v1017_v60  ;;  %v1013_v33 = vsel %vm2485_vm4, %v1012_v23, %v1008_v25  ;;  %v983_v38 = vsel %vm2436_vm13, %v982_v6, %v978_v15  ;;  %vm2524_vm12 = vmor %vm1035_vm7, %vm1036_vm8  ;;  %v1054_v20 = vand.u32 2147483647, %v2376_v17 }
 0x100   :  { %v904_v27 = vmul.f32 1.442695, %v884_v30  ;;  %v989_v57 = vadd.f32 %v2372_v16, %v988_v50  ;;  %v1033_v63 = vmul.f32 %v2397_v31, %v1032_v62  ;;  %v1024_v30 = vand.u32 2147483647, %v2358_v7 }
 0x101   :  { %v2409_v41 = vpop.eup %1245  ;;  %v1019_v34 = vadd.f32 %v2394_v2, %v1018_v24  ;;  %v1056_v7 = vand.u32 2147483648, %v2376_v17  ;;  %v932_v9 = vsel %vm919_vm0, 1.0, %v2335_v56  ;;  %vm920_vm14 = vcmp.ge.f32.partialorder %v2319_v35, 0.0 }
 0x102   :  { %1247 = vpow2.f32 %v904_v27  ;;  %v1046_v48 = vmul.f32 %v2409_v41, %v2376_v17  ;;  %v993_v28 = vsel %vm2477_vm2, %v2372_v16, %v989_v57  ;;  %vm1051_vm10 = vweird.f32 %v2409_v41 }
 0x103   :  { %v1034_v36 = vadd.f32 %v2397_v31, %v1033_v63  ;;  %v998_v43 = vsel %vm2481_vm3, %v997_v8, %v993_v28  ;;  %vm921_vm13 = vcmp.ge.f32.partialorder %v2321_v39, 0.0  ;;  %vm2542_vm15 = vmor %vm1050_vm9, %vm1051_vm10  ;;  %v1014_v46 = vmul.f32 %v1013_v33, %v932_v9  ;;  %v681_v51 = vpop.f32.mrf.mxu3  ;;  %v701_v3 = vpop.f32.mrf.mxu1 }
 0x104   :  { %v1047_v13 = vsub.f32 1.0, %v1046_v48  ;;  %vm2546_vm1 = vcmp.eq.f32.partialorder %v1024_v30, 8.507059e+37  ;;  %v1042_v56 = vor.u32 1.1754944e-38, %v1041_v10  ;;  %v1023_v48 = vsel %vm2516_vm11, %v2394_v2, %v1019_v34 }
 0x105   :  { %v1038_v17 = vsel %vm2524_vm12, %v2397_v31, %v1034_v36  ;;  %vm2556_vm0 = vcmp.eq.f32.partialorder %v1039_v37, 8.507059e+37  ;;  %vm2564_vm2 = vcmp.eq.f32.partialorder %v1054_v20, 8.507059e+37  ;;  %v1057_v2 = vor.u32 1.1754944e-38, %v1056_v7 }
 0x106   :  { %v1048_v26 = vmul.f32 %v2409_v41, %v1047_v13  ;;  %v984_v6 = vmul.f32 %v983_v38, %v2412_v42  ;;  %vm1174_vm5 = vcmask 1040384   ;;  %v934_v11 = vsel %vm921_vm13, 1.0, %v2354_v5 }
 0x107   :  { %v1043_v13 = vsel %vm2556_vm0, %v1042_v56, %v1038_v17  ;;  %v1028_v15 = vsel %vm2546_vm1, %v1027_v1, %v1023_v48  ;;  %vm922_vm6 = vcmp.ge.f32.partialorder %v2333_v55, 0.0  ;;  %v1165_v29 = vrot.slane %v1014_v46, 5 }
 0x108   :  { %v2453_v14 = vpop.eup %1247  ;;  %v1049_v27 = vadd.f32 %v2409_v41, %v1048_v26  ;;  %v933_v42 = vsel %vm920_vm14, 1.0, %v2351_v4  ;;  %v1044_v55 = vmul.f32 %v1043_v13, %v934_v11  ;;  %vm923_vm8 = vcmp.ge.f32.partialorder %v2378_v18, 0.0 }
 0x109   :  { %v2490_v61 = vadd.f32 1.0, %v2453_v14  ;;  %vm1176_vm10 = vcmask 1042434   ;;  %v1029_v8 = vmul.f32 %v1028_v15, %v933_v42  ;;  %v935_v35 = vsel %vm922_vm6, 1.0, %v2367_v12 }
 0x10a   :  { %v1053_v52 = vsel %vm2542_vm15, %v2409_v41, %v1049_v27  ;;  %v999_v41 = vmul.f32 %v998_v43, %v2461_v19  ;;  %v2597_v4 = vadd.f32 %v701_v3, %v681_v51  ;;  %v1163_v25 = vrot.slane %v984_v6, 7 }
 0x10b   :  { %1249 = vrcp.f32 %v2490_v61  ;;  %v1071_v54 = vand.u32 2147483648, %v2490_v61  ;;  %vm1065_vm3 = vweird.f32 %v2490_v61  ;;  %v1069_v62 = vand.u32 2147483647, %v2490_v61 }
 0x10c   :  { %v1058_v39 = vsel %vm2564_vm2, %v1057_v2, %v1053_v52  ;;  %v1164_v22 = vrot.slane %v999_v41, 6  ;;  %vm1178_vm11 = vcmask 1041408   ;;  %v936_v18 = vsel %vm923_vm8, 1.0, %v2453_v14 }
 0x10d   :  { %v1072_v19 = vor.u32 1.1754944e-38, %v1071_v54  ;;  %vm1070_vm9 = vcmp.eq.f32.partialorder %v1069_v62, 8.507059e+37  ;;  %v1059_v23 = vmul.f32 %v1058_v39, %v935_v35  ;;  %v1167_v30 = vrot.slane %v1044_v55, 3 }
 0x10e   :  { %v741_v31 = vpop.f32.mrf.mxu0  ;;  %v1177_v28 = vsel %vm1176_vm10, %v1164_v22, %v1165_v29  ;;  %vm1180_vm12 = vcmask 1044484   ;;  %v1166_v10 = vrot.slane %v1029_v8, 4  ;;  %vm1182_vm14 = vcmask 1046534  }
 0x10f   :  { %v872_v33 = vand.u32 2147483647, %v2597_v4  ;;  %v1168_v16 = vrot.slane %v1059_v23, 2  ;;  %vm1184_vm13 = vcmask 1045508   ;;  %vm1186_vm15 = vcmask 1043456  }
 0x110   :  { %v1175_v14 = vsel %vm1174_vm5, %v2442_v0, %v1163_v25  ;;  %v1181_v40 = vsel %vm1180_vm12, %v1166_v10, %v1167_v30 }
 0x111   :  { %v1250_v45 = vpop.eup %1249  ;;  %v1179_v20 = vsel %vm1178_vm11, %v1175_v14, %v1177_v28  ;;  %v885_v43 = vsub.f32 0.0, %v872_v33 }
 0x112   :  { %v1061_v50 = vmul.f32 %v1250_v45, %v2490_v61  ;;  %v721_v58 = vpop.f32.mrf.mxu2  ;;  %vm1066_vm4 = vweird.f32 %v1250_v45 }
 0x113   :  { %v2581_v21 = vadd.f32 %v741_v31, %v721_v58  ;;  %vm2591_vm7 = vmor %vm1065_vm3, %vm1066_vm4  ;;  %v906_v47 = vmul.f32 1.442695, %v885_v43 }
 0x114   :  { %v1062_v60 = vsub.f32 1.0, %v1061_v50 }
 0x115   :  { %v873_v24 = vand.u32 2147483647, %v2581_v21  ;;  %vm925_vm6 = vcmp.ge.f32.partialorder %v2581_v21, 0.0 }
 0x116   :  { %v1063_v57 = vmul.f32 %v1250_v45, %v1062_v60 }
 0x117   :  { %v886_v37 = vsub.f32 0.0, %v873_v24 }
 0x118   :  { %v1064_v59 = vadd.f32 %v1250_v45, %v1063_v57 }
 0x11a   :  { %v1068_v61 = vsel %vm2591_vm7, %v1250_v45, %v1064_v59  ;;  %v781_v63 = vpop.f32.mrf.mxu3  ;;  %v908_v45 = vmul.f32 1.442695, %v886_v37 }
 0x11b   :  { %v1073_v26 = vsel %vm1070_vm9, %v1072_v19, %v1068_v61 }
 0x11c   :  { %v1074_v32 = vmul.f32 %v1073_v26, %v936_v18  ;;  %1251 = vpow2.f32 %v908_v45 }
 0x11e   :  { %v761_v12 = vpop.f32.mrf.mxu1  ;;  %v1169_v36 = vrot.slane %v1074_v32, 1 }
 0x11f   :  { %v2604_v34 = vadd.f32 %v781_v63, %v761_v12 }
 0x120   :  { %v1183_v27 = vsel %vm1182_vm14, %v1168_v16, %v1169_v36 }
 0x121   :  { %v874_v38 = vand.u32 2147483647, %v2604_v34  ;;  %v1185_v7 = vsel %vm1184_vm13, %v1181_v40, %v1183_v27 }
 0x122   :  { %v1187_v44 = vsel %vm1186_vm15, %v1179_v20, %v1185_v7  ;;  %v2613_v56 = vpop.eup %1251 }
 0x123   :  { %v887_v9 = vsub.f32 0.0, %v874_v38  ;;  %1196 = vst [vmem:[%s2752_s2] sm:$0xff] %v1187_v44  ;;  %v2623_v51 = vadd.f32 1.0, %v2613_v56 }
 0x125   :  { %v910_v46 = vmul.f32 1.442695, %v887_v9  ;;  %vm1095_vm1 = vweird.f32 %v2623_v51  ;;  %v1101_v25 = vand.u32 2147483648, %v2623_v51  ;;  %v1099_v28 = vand.u32 2147483647, %v2623_v51 }
 0x127   :  { %1253 = vpow2.f32 %v910_v46  ;;  %v1102_v38 = vor.u32 1.1754944e-38, %v1101_v25  ;;  %vm1100_vm14 = vcmp.eq.f32.partialorder %v1099_v28, 8.507059e+37 }
 0x128   :  { %1255 = vpow2.f32 %v906_v47 }
 0x129   :  { %1257 = vrcp.f32 %v2623_v51 }
 0x12a   :  { %v821_v1 = vpop.f32.mrf.mxu2 }
 0x12c   :  { %v801_v0 = vpop.f32.mrf.mxu0 }
 0x12d   :  { %v2615_v48 = vadd.f32 %v821_v1, %v801_v0  ;;  %v2617_v17 = vpop.eup %1253  ;;  %v938_v0 = vsel %vm925_vm6, 1.0, %v2613_v56 }
 0x12e   :  { %v2620_v50 = vpop.eup %1255  ;;  %v2626_v53 = vadd.f32 1.0, %v2617_v17 }
 0x12f   :  { %v875_v49 = vand.u32 2147483647, %v2615_v48  ;;  %v2629_v2 = vadd.f32 1.0, %v2620_v50  ;;  %v2637_v3 = vpop.eup %1257  ;;  %vm927_vm6 = vcmp.ge.f32.partialorder %v2615_v48, 0.0 }
 0x130   :  { %v1091_v29 = vmul.f32 %v2637_v3, %v2623_v51  ;;  %vm1096_vm0 = vweird.f32 %v2637_v3  ;;  %vm1110_vm2 = vweird.f32 %v2626_v53  ;;  %v1116_v30 = vand.u32 2147483648, %v2626_v53 }
 0x131   :  { %v888_v52 = vsub.f32 0.0, %v875_v49  ;;  %v861_v58 = vpop.f32.mrf.mxu1  ;;  %vm1080_vm4 = vweird.f32 %v2629_v2  ;;  %vm2679_vm7 = vmor %vm1095_vm1, %vm1096_vm0  ;;  %v1114_v10 = vand.u32 2147483647, %v2626_v53  ;;  %v1084_v16 = vand.u32 2147483647, %v2629_v2 }
 0x132   :  { %v1092_v5 = vsub.f32 1.0, %v1091_v29  ;;  %v1086_v36 = vand.u32 2147483648, %v2629_v2  ;;  %v1117_v20 = vor.u32 1.1754944e-38, %v1116_v30  ;;  %vm926_vm0 = vcmp.ge.f32.partialorder %v2604_v34, 0.0 }
 0x133   :  { %v912_v54 = vmul.f32 1.442695, %v888_v52  ;;  %vm1115_vm15 = vcmp.eq.f32.partialorder %v1114_v10, 8.507059e+37  ;;  %vm2713_vm1 = vcmp.eq.f32.partialorder %v1084_v16, 8.507059e+37 }
 0x134   :  { %v1093_v22 = vmul.f32 %v2637_v3, %v1092_v5  ;;  %v1087_v47 = vor.u32 1.1754944e-38, %v1086_v36 }
 0x135   :  { %1259 = vpow2.f32 %v912_v54 }
 0x136   :  { %v841_v31 = vpop.f32.mrf.mxu3  ;;  %1261 = vrcp.f32 %v2626_v53  ;;  %v1094_v26 = vadd.f32 %v2637_v3, %v1093_v22 }
 0x137   :  { %v2633_v60 = vadd.f32 %v861_v58, %v841_v31  ;;  %1263 = vrcp.f32 %v2629_v2  ;;  %v939_v31 = vsel %vm926_vm0, 1.0, %v2617_v17 }
 0x138   :  { %v1098_v27 = vsel %vm2679_vm7, %v2637_v3, %v1094_v26 }
 0x139   :  { %v876_v62 = vand.u32 2147483647, %v2633_v60  ;;  %v1103_v49 = vsel %vm1100_vm14, %v1102_v38, %v1098_v27  ;;  %vm1190_vm14 = vcmask 1043459  }
 0x13a   :  { %v1104_v56 = vmul.f32 %v1103_v49, %v938_v0 }
 0x13b   :  { %v889_v6 = vsub.f32 0.0, %v876_v62  ;;  %v2639_v41 = vpop.eup %1259 }
 0x13c   :  { %v2641_v11 = vpop.eup %1261  ;;  %v2644_v13 = vadd.f32 1.0, %v2639_v41  ;;  %v1170_v29 = vrot.slane %v1104_v56, 7 }
 0x13d   :  { %v914_v15 = vmul.f32 1.442695, %v889_v6  ;;  %v2646_v57 = vpop.eup %1263  ;;  %v1106_v42 = vmul.f32 %v2641_v11, %v2626_v53  ;;  %vm1111_vm3 = vweird.f32 %v2641_v11 }
 0x13e   :  { %1265 = vrcp.f32 %v2644_v13  ;;  %v1076_v39 = vmul.f32 %v2646_v57, %v2629_v2  ;;  %vm1081_vm8 = vweird.f32 %v2646_v57  ;;  %vm2691_vm9 = vmor %vm1110_vm2, %vm1111_vm3  ;;  %vm1125_vm10 = vweird.f32 %v2644_v13 }
 0x13f   :  { %1267 = vpow2.f32 %v914_v15  ;;  %v1107_v19 = vsub.f32 1.0, %v1106_v42  ;;  %v1131_v7 = vand.u32 2147483648, %v2644_v13  ;;  %vm2704_vm13 = vmor %vm1080_vm4, %vm1081_vm8  ;;  %v1129_v44 = vand.u32 2147483647, %v2644_v13 }
 0x140   :  { %v1077_v59 = vsub.f32 1.0, %v1076_v39  ;;  %vm924_vm8 = vcmp.ge.f32.partialorder %v2597_v4, 0.0  ;;  %v1197_v39 = vlaneseq }
 0x141   :  { %v1108_v61 = vmul.f32 %v2641_v11, %v1107_v19  ;;  %v1132_v2 = vor.u32 1.1754944e-38, %v1131_v7  ;;  %vm1130_vm3 = vcmp.eq.f32.partialorder %v1129_v44, 8.507059e+37  ;;  %v937_v5 = vsel %vm924_vm8, 1.0, %v2620_v50 }
 0x142   :  { %v1078_v63 = vmul.f32 %v2646_v57, %v1077_v59 }
 0x143   :  { %v1109_v12 = vadd.f32 %v2641_v11, %v1108_v61 }
 0x144   :  { %v2655_v55 = vpop.eup %1265  ;;  %v1079_v33 = vadd.f32 %v2646_v57, %v1078_v63 }
 0x145   :  { %v2657_v8 = vpop.eup %1267  ;;  %v1121_v35 = vmul.f32 %v2655_v55, %v2644_v13  ;;  %vm1126_vm12 = vweird.f32 %v2655_v55  ;;  %v1113_v9 = vsel %vm2691_vm9, %v2641_v11, %v1109_v12  ;;  %v940_v13 = vsel %vm927_vm6, 1.0, %v2639_v41 }
 0x146   :  { %v2663_v23 = vadd.f32 1.0, %v2657_v8  ;;  %vm2720_vm2 = vmor %vm1125_vm10, %vm1126_vm12  ;;  %v1083_v34 = vsel %vm2704_vm13, %v2646_v57, %v1079_v33  ;;  %v1118_v53 = vsel %vm1115_vm15, %v1117_v20, %v1113_v9  ;;  %vm928_vm10 = vcmp.ge.f32.partialorder %v2633_v60, 0.0 }
 0x147   :  { %v1122_v24 = vsub.f32 1.0, %v1121_v35  ;;  %v1119_v3 = vmul.f32 %v1118_v53, %v939_v31  ;;  %v1088_v11 = vsel %vm2713_vm1, %v1087_v47, %v1083_v34  ;;  %v941_v48 = vsel %vm928_vm10, 1.0, %v2657_v8 }
 0x148   :  { %1269 = vrcp.f32 %v2663_v23  ;;  %v1146_v54 = vand.u32 2147483648, %v2663_v23  ;;  %v1144_v21 = vand.u32 2147483647, %v2663_v23  ;;  %vm1140_vm7 = vweird.f32 %v2663_v23 }
 0x149   :  { %v1123_v18 = vmul.f32 %v2655_v55, %v1122_v24  ;;  %v1171_v4 = vrot.slane %v1119_v3, 6  ;;  %vm1192_vm13 = vcmask 1042432   ;;  %vm1199_vm15 = vcmp.lt.s32.totalorder %v1197_v39, 544 }
 0x14a   :  { %v1147_v15 = vor.u32 1.1754944e-38, %v1146_v54  ;;  %vm1145_vm12 = vcmp.eq.f32.partialorder %v1144_v21, 8.507059e+37 }
 0x14b   :  { %v1124_v14 = vadd.f32 %v2655_v55, %v1123_v18 }
 0x14d   :  { %v1128_v51 = vsel %vm2720_vm2, %v2655_v55, %v1124_v14  ;;  %v1089_v55 = vmul.f32 %v1088_v11, %v937_v5 }
 0x14e   :  { %v1270_v40 = vpop.eup %1269  ;;  %v1133_v62 = vsel %vm1130_vm3, %v1132_v2, %v1128_v51 }
 0x14f   :  { %v1136_v45 = vmul.f32 %v1270_v40, %v2663_v23  ;;  %vm1141_vm4 = vweird.f32 %v1270_v40  ;;  %v1134_v57 = vmul.f32 %v1133_v62, %v940_v13  ;;  %v1188_v35 = vsel %vm1174_vm5, %v1089_v55, %v1170_v29 }
 0x150   :  { %vm1142_vm9 = vmor %vm1140_vm7, %vm1141_vm4  ;;  %v1189_v60 = vsel %vm1178_vm11, %v1188_v35, %v1171_v4 }
 0x151   :  { %v1137_v52 = vsub.f32 1.0, %v1136_v45  ;;  %v1172_v59 = vrot.slane %v1134_v57, 5 }
 0x153   :  { %v1138_v58 = vmul.f32 %v1270_v40, %v1137_v52 }
 0x155   :  { %v1139_v6 = vadd.f32 %v1270_v40, %v1138_v58 }
 0x157   :  { %v1143_v17 = vsel %vm1142_vm9, %v1270_v40, %v1139_v6 }
 0x158   :  { %v1148_v42 = vsel %vm1145_vm12, %v1147_v15, %v1143_v17 }
 0x159   :  { %v1149_v19 = vmul.f32 %v1148_v42, %v941_v48 }
 0x15b   :  { %v1173_v41 = vrot.slane %v1149_v19, 4 }
 0x15d   :  { %v1191_v22 = vsel %vm1190_vm14, %v1172_v59, %v1173_v41 }
 0x15e   :  { %v1193_v23 = vsel %vm1192_vm13, %v1189_v60, %v1191_v22 }
 0x15f   :  { %1201 = vst.msk [vmem:[%s2752_s2 + $0x8] sm:$0x1f] %vm1199_vm15, %v1193_v23 }

</bundles_post_ra>
